<compile_context>
chip_gen: v7x
topology: tpu7x:2x2x1
jax: 0.10.0
libtpu: 0.0.40
codegen_flags: <defaults>
</compile_context>

<pallas_src>
import jax
import jax.numpy as jnp
from jax.experimental import pallas as pl
from jax.experimental.pallas import tpu as pltpu

# ---- hyper-parameters from the reference module ----
EMB_DIM = 300
EMB_PAD = 384          # E padded up to a lane-aligned K
GRU_LEN = 128          # hidden size per direction
NUM_CAPSULE = 10
DIM_CAPSULE = 16
ROUTINGS = 5
T_EPSILON = 1e-7
NUM_CLASSES = 30


# ----------------------------------------------------------------------
# tiling helpers (small demo shapes always take the "full dim" path, which
# satisfies the (8,128) BlockSpec constraint trivially)
# ----------------------------------------------------------------------
def _largest_divisor_leq(n, cap, mult=16):
    """Largest divisor of n that is <= cap and a multiple of `mult`.
    Falls back to n (full dimension) if none exists."""
    if n <= cap:
        return n
    t = (cap // mult) * mult
    while t >= mult:
        if n % t == 0:
            return t
        t -= mult
    return n


def _time_chunk(t_len, bt, budget_rows=8192):
    """Largest divisor of t_len with chunk*bt <= budget_rows (VMEM bound)."""
    cap = max(1, budget_rows // max(bt, 1))
    if t_len <= cap:
        return t_len
    tc = min(t_len, cap)
    while tc >= 1:
        if t_len % tc == 0:
            return tc
        tc -= 1
    return t_len


def _caps_batch_tile(n, l, budget_rows=4096):
    """Samples per capsule-kernel tile; keep NB*L rows bounded for VMEM."""
    cap = max(1, budget_rows // max(l, 1))
    if n <= cap:
        return n
    nb = min(n, cap)
    while nb >= 1:
        if n % nb == 0 and nb % 8 == 0 and (nb * l) % 16 == 0:
            return nb
        nb -= 1
    return n


# ======================================================================
# Kernel 1: GRU input projection, both directions in one matmul
#   gi[m, :] = x[m, :] @ [W_ih_fwd | W_ih_bwd] + [b_fwd | b_bwd]
#   (bf16 operands, f32 accumulate, bf16 output; b_hr/b_hz pre-folded)
# ======================================================================
def _in_proj_kernel(x_ref, w_ref, b_ref, o_ref):
    acc = jnp.dot(x_ref[...], w_ref[...], preferred_element_type=jnp.float32)
    o_ref[...] = (acc + b_ref[...]).astype(o_ref.dtype)


def gru_input_proj(x_flat, w_cat, b_cat):
    """x_flat: (M, 384) bf16; w_cat: (384, 768) bf16; b_cat: (1, 768) f32
       -> (M, 768) bf16  (lanes [0:384] fwd gates, [384:768] bwd gates)."""
    M, Ep = x_flat.shape
    sixH = w_cat.shape[1]
    tm = _largest_divisor_leq(M, 2048)
    return pl.pallas_call(
        _in_proj_kernel,
        out_shape=jax.ShapeDtypeStruct((M, sixH), jnp.bfloat16),
        grid=(M // tm,),
        in_specs=[
            pl.BlockSpec((tm, Ep), lambda m: (m, 0)),
            pl.BlockSpec((Ep, sixH), lambda m: (0, 0)),
            pl.BlockSpec((1, sixH), lambda m: (0, 0)),
        ],
        out_specs=pl.BlockSpec((tm, sixH), lambda m: (m, 0)),
        compiler_params=pltpu.CompilerParams(dimension_semantics=("parallel",)),
    )(x_flat, w_cat, b_cat)


# ======================================================================
# Kernel 2: fused bidirectional GRU recurrence, time-chunked
#   grid = (direction, batch-tile, time-chunk["arbitrary"]); hidden state
#   lives in VMEM scratch and is carried across chunks.  Only the
#   h-dependent (Bt,H)x(H,3H) bf16 matmul sits on the serial critical path.
# ======================================================================
def _bigru_kernel(gi_ref, whh_ref, bhn_ref, o_ref, h_ref):
    d = pl.program_id(0)
    c = pl.program_id(2)
    Tc = gi_ref.shape[0]
    H = o_ref.shape[2]

    @pl.when(c == 0)
    def _():
        h_ref[...] = jnp.zeros_like(h_ref)

    whh = whh_ref[...]                       # (H, 3H) bf16
    bhn = bhn_ref[...]                       # (1, 3H) f32 (only n-gate bias)
    is_fwd = d == 0

    def step(i, carry):
        t = jnp.where(is_fwd, i, Tc - 1 - i)
        gi = gi_ref[t].astype(jnp.float32)   # (Bt, 3H) precomputed input gates
        h = h_ref[...]                       # (Bt, H) f32
        gh = jnp.dot(h.astype(jnp.bfloat16), whh,
                     preferred_element_type=jnp.float32) + bhn
        r = jax.nn.sigmoid(gi[:, 0:H] + gh[:, 0:H])
        z = jax.nn.sigmoid(gi[:, H:2 * H] + gh[:, H:2 * H])
        n = jnp.tanh(gi[:, 2 * H:3 * H] + r * gh[:, 2 * H:3 * H])
        h_new = (1.0 - z) * n + z * h        # gate math kept f32 (v5e-safe)
        h_ref[...] = h_new
        o_ref[t] = h_new.astype(o_ref.dtype)
        return carry

    jax.lax.fori_loop(0, Tc, step, 0, unroll=2)


def bigru_recurrence(gi, whh_both, bhn_both):
    """gi: (T, B, 6H) bf16 -> (T, B, 2H) bf16 (fwd in [:H], bwd in [H:])."""
    T, B, sixH = gi.shape
    H = sixH // 6
    Bt = _largest_divisor_leq(B, 256)
    Tc = _time_chunk(T, Bt)
    nC = T // Tc

    def io_map(d, bt, c):
        # backward direction walks the time chunks in reverse order
        cc = jnp.where(d == 0, c, nC - 1 - c)
        return (cc, bt, d)

    def w_map(d, bt, c):
        return (d, 0, 0)

    return pl.pallas_call(
        _bigru_kernel,
        out_shape=jax.ShapeDtypeStruct((T, B, 2 * H), jnp.bfloat16),
        grid=(2, B // Bt, nC),
        in_specs=[
            pl.BlockSpec((Tc, Bt, 3 * H), io_map),
            pl.BlockSpec((None, H, 3 * H), w_map),
            pl.BlockSpec((None, 1, 3 * H), w_map),
        ],
        out_specs=pl.BlockSpec((Tc, Bt, H), io_map),
        scratch_shapes=[pltpu.VMEM((Bt, H), jnp.float32)],
        compiler_params=pltpu.CompilerParams(
            dimension_semantics=("parallel", "parallel", "arbitrary")),
    )(gi, whh_both, bhn_both)


# ======================================================================
# Kernel 3: fused u_hat projection + batched dynamic routing + dense head
#   All routing sums are expressed as 2-D MXU matmuls with static 0/1
#   expansion (C -> C*D lanes), block-sum (C*D -> C) and per-sample segment
#   matrices, so the whole NB-sample tile is processed with no serial loop.
# ======================================================================
def _caps_dense_kernel(x_ref, caps_w_ref, dense_w_ref, dense_b_ref, o_ref):
    NB = o_ref.shape[0]
    NBL = x_ref.shape[0]
    L = NBL // NB
    C, D, CD = NUM_CAPSULE, DIM_CAPSULE, NUM_CAPSULE * DIM_CAPSULE
    f32 = jnp.float32

    # u_hat for every (sample, input-capsule) row in one bf16 MXU matmul
    # u[n*L + l, i*D + k] = u_hat_vecs[n, l, i, k]   (capsule-major lanes)
    u = jnp.dot(x_ref[...], caps_w_ref[...],
                preferred_element_type=f32)                       # (NBL, CD)

    # static 0/1 helper matrices (built once, folded by the compiler)
    lane = jax.lax.broadcasted_iota(jnp.int32, (C, CD), 1)
    cap = jax.lax.broadcasted_iota(jnp.int32, (C, CD), 0)
    expand = ((lane >= cap * D) & (lane < (cap + 1) * D)).astype(f32)   # (C, CD)
    lane_t = jax.lax.broadcasted_iota(jnp.int32, (CD, C), 0)
    cap_t = jax.lax.broadcasted_iota(jnp.int32, (CD, C), 1)
    collect = ((lane_t >= cap_t * D) & (lane_t < (cap_t + 1) * D)).astype(f32)  # (CD, C)
    r_n = jax.lax.broadcasted_iota(jnp.int32, (NB, NBL), 0)
    r_m = jax.lax.broadcasted_iota(jnp.int32, (NB, NBL), 1)
    seg = ((r_m >= r_n * L) & (r_m < (r_n + 1) * L)).astype(f32)        # (NB, NBL)
    c_m = jax.lax.broadcasted_iota(jnp.int32, (NBL, NB), 0)
    c_n = jax.lax.broadcasted_iota(jnp.int32, (NBL, NB), 1)
    segT = ((c_m >= c_n * L) & (c_m < (c_n + 1) * L)).astype(f32)       # (NBL, NB)

    b = jnp.zeros((NBL, C), f32)
    out = jnp.zeros((NB, CD), f32)
    for it in range(ROUTINGS):
        # softmax over the output-capsule axis for every (sample, input caps.)
        bmax = jnp.max(b, axis=-1, keepdims=True)
        e = jnp.exp(b - bmax)
        coeff = e / jnp.sum(e, axis=-1, keepdims=True)                  # (NBL, C)
        # s[n, i, k] = sum_l coeff[n,l,i] * u_hat[n,l,i,k]
        w = jnp.dot(coeff, expand, preferred_element_type=f32) * u      # (NBL, CD)
        s = jnp.dot(seg, w, preferred_element_type=f32)                 # (NB, CD)
        # squash (reference variant): x / sqrt(sum_k x^2 + eps), per capsule
        ssq = jnp.dot(s * s, collect, preferred_element_type=f32)       # (NB, C)
        scale = jax.lax.rsqrt(ssq + T_EPSILON)
        out = s * jnp.dot(scale, expand, preferred_element_type=f32)    # (NB, CD)
        if it < ROUTINGS - 1:
            # b[n,l,i] = sum_k outputs[n,i,k] * u_hat[n,l,i,k]
            out_rows = jnp.dot(segT, out, preferred_element_type=f32)   # (NBL, CD)
            b = jnp.dot(out_rows * u, collect, preferred_element_type=f32)  # (NBL, C)

    # Dense_Layer epilogue: Linear(160 -> 30) + Sigmoid, one matmul + one store
    y = jnp.dot(out, dense_w_ref[...], preferred_element_type=f32) + dense_b_ref[...]
    o_ref[...] = jax.nn.sigmoid(y)


def caps_dense(x2d, N, L, caps_w_b16, dense_w_t, dense_b):
    """x2d: (N*L, 2H) bf16 -> (N, NUM_CLASSES) f32."""
    D2 = x2d.shape[1]
    CD = NUM_CAPSULE * DIM_CAPSULE
    NB = _caps_batch_tile(N, L)
    NBL = NB * L
    return pl.pallas_call(
        _caps_dense_kernel,
        out_shape=jax.ShapeDtypeStruct((N, NUM_CLASSES), jnp.float32),
        grid=(N // NB,),
        in_specs=[
            pl.BlockSpec((NBL, D2), lambda n: (n, 0)),
            pl.BlockSpec((D2, CD), lambda n: (0, 0)),
            pl.BlockSpec((CD, NUM_CLASSES), lambda n: (0, 0)),
            pl.BlockSpec((1, NUM_CLASSES), lambda n: (0, 0)),
        ],
        out_specs=pl.BlockSpec((NB, NUM_CLASSES), lambda n: (n, 0)),
        compiler_params=pltpu.CompilerParams(dimension_semantics=("parallel",)),
    )(x2d, caps_w_b16, dense_w_t, dense_b)


# ======================================================================
# Full forward pass (glue in plain JAX, hot paths in Pallas)
# ======================================================================
def capsule_main_forward(content, params):
    N, L = content.shape
    H = GRU_LEN
    E, Ep = EMB_DIM, EMB_PAD

    # Embed_Layer: pad E->384 once, cast bf16, gather in XLA glue; dropout = id.
    emb_tab = jnp.pad(params["embedding"], ((0, 0), (0, Ep - E))
                      ).astype(jnp.bfloat16)                     # (V+1, 384)
    emb = jnp.take(emb_tab, content, axis=0)                     # (N, L, 384)
    x_flat = emb.reshape(N * L, Ep)

    # GRU weight prep (one-time glue, fused under jit):
    #  - W_ih^T padded to K=384, both directions concatenated -> (384, 768)
    #  - b_hr/b_hz folded into the projection bias; only b_hn stays in-loop
    def prep_dir(w_ih, b_ih, b_hh):
        w = jnp.pad(w_ih.T, ((0, Ep - E), (0, 0)))               # (384, 3H)
        rz = jnp.concatenate([b_hh[:2 * H], jnp.zeros((H,), jnp.float32)])
        return w, b_ih + rz

    wf, bf = prep_dir(params["w_ih_f"], params["b_ih_f"], params["b_hh_f"])
    wb, bb = prep_dir(params["w_ih_b"], params["b_ih_b"], params["b_hh_b"])
    w_cat = jnp.concatenate([wf, wb], axis=1).astype(jnp.bfloat16)   # (384, 768)
    b_cat = jnp.concatenate([bf, bb]).reshape(1, 6 * H)              # (1, 768)

    whh_both = jnp.stack([params["w_hh_f"].T, params["w_hh_b"].T]
                         ).astype(jnp.bfloat16)                  # (2, H, 3H)

    def bhn_only(b_hh):
        return jnp.concatenate([jnp.zeros((2 * H,), jnp.float32), b_hh[2 * H:]])

    bhn_both = jnp.stack([bhn_only(params["b_hh_f"]),
                          bhn_only(params["b_hh_b"])]).reshape(2, 1, 3 * H)

    # Kernel 1: input projection for all time steps, both directions at once.
    gi = gru_input_proj(x_flat, w_cat, b_cat)                    # (N*L, 768) bf16
    gi = gi.reshape(N, L, 6 * H)

    # Kernel 2: fused bidirectional recurrence (time = axis 0 = N, as in ref).
    gru_out = bigru_recurrence(gi, whh_both, bhn_both)           # (N, L, 256) bf16
    gru2d = gru_out.reshape(N * L, 2 * H)

    # Kernel 3: fused Caps_Layer (u_hat + routing) + Dense_Layer (Linear+Sigmoid).
    return caps_dense(gru2d, N, L,
                      params["caps_w"].astype(jnp.bfloat16),
                      params["dense_w_t"],
                      params["dense_b"].reshape(1, NUM_CLASSES))  # (N, 30)


# ======================================================================
# Deterministic parameter construction + demo run
# ======================================================================
def make_params(key, vocab_size):
    ks = jax.random.split(key, 12)

    def xavier(k, shape):
        fan_in = shape[-1]
        fan_out = shape[-2] if len(shape) > 1 else shape[-1]
        std = (2.0 / (fan_in + fan_out)) ** 0.5
        return std * jax.random.normal(k, shape, jnp.float32)

    return {
        "embedding": 0.1 * jax.random.normal(ks[0], (vocab_size + 1, EMB_DIM), jnp.float32),
        # GRU weights (PyTorch layout: W_ih (3H, E), W_hh (3H, H), gate order r,z,n)
        "w_ih_f": xavier(ks[1], (3 * GRU_LEN, EMB_DIM)),
        "w_hh_f": xavier(ks[2], (3 * GRU_LEN, GRU_LEN)),
        "b_ih_f": jnp.zeros((3 * GRU_LEN,), jnp.float32),
        "b_hh_f": jnp.zeros((3 * GRU_LEN,), jnp.float32),
        "w_ih_b": xavier(ks[3], (3 * GRU_LEN, EMB_DIM)),
        "w_hh_b": xavier(ks[4], (3 * GRU_LEN, GRU_LEN)),
        "b_ih_b": jnp.zeros((3 * GRU_LEN,), jnp.float32),
        "b_hh_b": jnp.zeros((3 * GRU_LEN,), jnp.float32),
        # Caps_Layer shared weight W: (input_dim=256, num_capsule*dim_capsule=160)
        "caps_w": xavier(ks[5], (2 * GRU_LEN, NUM_CAPSULE * DIM_CAPSULE)),
        # Dense_Layer: Linear(160 -> 30), stored pre-transposed for the kernel
        "dense_w_t": xavier(ks[6], (NUM_CAPSULE * DIM_CAPSULE, NUM_CLASSES)),
        "dense_b": jnp.zeros((NUM_CLASSES,), jnp.float32),
    }


if __name__ == "__main__":
    key = jax.random.PRNGKey(0)
    k_tok, k_par = jax.random.split(key)

    vocab_size = 50
    N, L = 2, 8                                   # small shapes: batch=2, seq=8
    content = jax.random.randint(k_tok, (N, L), 0, vocab_size + 1, dtype=jnp.int32)
    params = make_params(k_par, vocab_size)

    forward = jax.jit(capsule_main_forward)
    out = forward(content, params)
    out = jax.block_until_ready(out)
    assert out.shape == (N, NUM_CLASSES)
    assert bool(jnp.all(jnp.isfinite(out)))
    print("KERNEL_OK")
</pallas_src>

<mosaic_0001>
module attributes {stable_mosaic.version = 11 : i64} {
  func.func @_in_proj_kernel(%arg0: i32, %arg1: memref<16x384xbf16, #tpu.memory_space<vmem>>, %arg2: memref<384x768xbf16, #tpu.memory_space<vmem>>, %arg3: memref<1x768xf32, #tpu.memory_space<vmem>>, %arg4: memref<16x768xbf16, #tpu.memory_space<vmem>>) attributes {dimension_semantics = [#tpu.dimension_semantics<parallel>], iteration_bounds = array<i64: 1>, scalar_prefetch = 0 : i64, scratch_operands = 0 : i64, tpu.core_type = #tpu.core_type<tc>, window_params = [{transform_indices = @transform_0, window_bounds = array<i64: 16, 384>}, {pipeline_mode = #tpu.pipeline_mode<synchronous>, transform_indices = @transform_1, window_bounds = array<i64: 384, 768>}, {pipeline_mode = #tpu.pipeline_mode<synchronous>, transform_indices = @transform_2, window_bounds = array<i64: 1, 768>}, {transform_indices = @transform_3, window_bounds = array<i64: 16, 768>}]} {
    %c0 = arith.constant 0 : index
    %c0_0 = arith.constant 0 : index
    %0 = vector.load %arg1[%c0, %c0_0] : memref<16x384xbf16, #tpu.memory_space<vmem>>, vector<16x384xbf16>
    %c0_1 = arith.constant 0 : index
    %c0_2 = arith.constant 0 : index
    %1 = vector.load %arg2[%c0_1, %c0_2] : memref<384x768xbf16, #tpu.memory_space<vmem>>, vector<384x768xbf16>
    %cst = arith.constant dense<0.000000e+00> : vector<16x768xf32>
    %2 = tpu.matmul %0, %1, %cst {dimension_numbers = #tpu.dot_dimension_numbers<[1], [0], [0], [1], [0, 0, 1, 1], [], []>} : vector<16x384xbf16>, vector<384x768xbf16>, vector<16x768xf32> -> vector<16x768xf32>
    %c0_3 = arith.constant 0 : index
    %c0_4 = arith.constant 0 : index
    %3 = vector.load %arg3[%c0_3, %c0_4] : memref<1x768xf32, #tpu.memory_space<vmem>>, vector<1x768xf32>
    %4 = vector.broadcast %3 : vector<1x768xf32> to vector<16x768xf32>
    %5 = arith.addf %2, %4 : vector<16x768xf32>
    %6 = arith.truncf %5 : vector<16x768xf32> to vector<16x768xbf16>
    %c0_5 = arith.constant 0 : index
    %c0_6 = arith.constant 0 : index
    %7 = vector.load %arg4[%c0_5, %c0_6] : memref<16x768xbf16, #tpu.memory_space<vmem>>, vector<16x768xbf16>
    tpu.vector_store %arg4[%c0_5, %c0_6], %6 {strides = array<i32>} : memref<16x768xbf16, #tpu.memory_space<vmem>>, vector<16x768xbf16>,
    return
  }
  func.func @transform_0(%arg0: i32) -> (i32, i32) {
    %c0_i32 = arith.constant 0 : i32
    %c0_i32_0 = arith.constant 0 : i32
    return %arg0, %c0_i32 : i32, i32
  }
  func.func @transform_1(%arg0: i32) -> (i32, i32) {
    %c0_i32 = arith.constant 0 : i32
    %c0_i32_0 = arith.constant 0 : i32
    %c0_i32_1 = arith.constant 0 : i32
    return %c0_i32, %c0_i32_0 : i32, i32
  }
  func.func @transform_2(%arg0: i32) -> (i32, i32) {
    %c0_i32 = arith.constant 0 : i32
    %c0_i32_0 = arith.constant 0 : i32
    %c0_i32_1 = arith.constant 0 : i32
    return %c0_i32, %c0_i32_0 : i32, i32
  }
  func.func @transform_3(%arg0: i32) -> (i32, i32) {
    %c0_i32 = arith.constant 0 : i32
    %c0_i32_0 = arith.constant 0 : i32
    return %arg0, %c0_i32 : i32, i32
  }
}

module attributes {stable_mosaic.version = 11 : i64} {
  func.func @_caps_dense_kernel(%arg0: i32, %arg1: memref<16x256xbf16, #tpu.memory_space<vmem>>, %arg2: memref<256x160xbf16, #tpu.memory_space<vmem>>, %arg3: memref<160x30xf32, #tpu.memory_space<vmem>>, %arg4: memref<1x30xf32, #tpu.memory_space<vmem>>, %arg5: memref<2x30xf32, #tpu.memory_space<vmem>>) attributes {dimension_semantics = [#tpu.dimension_semantics<parallel>], iteration_bounds = array<i64: 1>, scalar_prefetch = 0 : i64, scratch_operands = 0 : i64, tpu.core_type = #tpu.core_type<tc>, window_params = [{transform_indices = @transform_0, window_bounds = array<i64: 16, 256>}, {pipeline_mode = #tpu.pipeline_mode<synchronous>, transform_indices = @transform_1, window_bounds = array<i64: 256, 160>}, {pipeline_mode = #tpu.pipeline_mode<synchronous>, transform_indices = @transform_2, window_bounds = array<i64: 160, 30>}, {pipeline_mode = #tpu.pipeline_mode<synchronous>, transform_indices = @transform_3, window_bounds = array<i64: 1, 30>}, {transform_indices = @transform_4, window_bounds = array<i64: 2, 30>}]} {
    %c0 = arith.constant 0 : index
    %c0_0 = arith.constant 0 : index
    %0 = vector.load %arg1[%c0, %c0_0] : memref<16x256xbf16, #tpu.memory_space<vmem>>, vector<16x256xbf16>
    %c0_1 = arith.constant 0 : index
    %c0_2 = arith.constant 0 : index
    %1 = vector.load %arg2[%c0_1, %c0_2] : memref<256x160xbf16, #tpu.memory_space<vmem>>, vector<256x160xbf16>
    %cst = arith.constant dense<0.000000e+00> : vector<16x160xf32>
    %2 = tpu.matmul %0, %1, %cst {dimension_numbers = #tpu.dot_dimension_numbers<[1], [0], [0], [1], [0, 0, 1, 1], [], []>} : vector<16x256xbf16>, vector<256x160xbf16>, vector<16x160xf32> -> vector<16x160xf32>
    %3 = tpu.iota {dimensions = array<i32: 1>} : vector<10x160xi32>
    %4 = tpu.iota {dimensions = array<i32: 0>} : vector<10x160xi32>
    %c16_i32 = arith.constant 16 : i32
    %5 = vector.broadcast %c16_i32 : i32 to vector<10x160xi32>
    %6 = arith.muli %4, %5 : vector<10x160xi32>
    %7 = arith.cmpi sge, %3, %6 : vector<10x160xi32>
    %c1_i32 = arith.constant 1 : i32
    %8 = vector.broadcast %c1_i32 : i32 to vector<10x160xi32>
    %9 = arith.addi %4, %8 : vector<10x160xi32>
    %c16_i32_3 = arith.constant 16 : i32
    %10 = vector.broadcast %c16_i32_3 : i32 to vector<10x160xi32>
    %11 = arith.muli %9, %10 : vector<10x160xi32>
    %12 = arith.cmpi slt, %3, %11 : vector<10x160xi32>
    %13 = arith.andi %7, %12 : vector<10x160xi1>
    %14 = arith.extui %13 : vector<10x160xi1> to vector<10x160xi32>
    %15 = arith.sitofp %14 : vector<10x160xi32> to vector<10x160xf32>
    %16 = tpu.iota {dimensions = array<i32: 0>} : vector<160x10xi32>
    %17 = tpu.iota {dimensions = array<i32: 1>} : vector<160x10xi32>
    %c16_i32_4 = arith.constant 16 : i32
    %18 = vector.broadcast %c16_i32_4 : i32 to vector<160x10xi32>
    %19 = arith.muli %17, %18 : vector<160x10xi32>
    %20 = arith.cmpi sge, %16, %19 : vector<160x10xi32>
    %c1_i32_5 = arith.constant 1 : i32
    %21 = vector.broadcast %c1_i32_5 : i32 to vector<160x10xi32>
    %22 = arith.addi %17, %21 : vector<160x10xi32>
    %c16_i32_6 = arith.constant 16 : i32
    %23 = vector.broadcast %c16_i32_6 : i32 to vector<160x10xi32>
    %24 = arith.muli %22, %23 : vector<160x10xi32>
    %25 = arith.cmpi slt, %16, %24 : vector<160x10xi32>
    %26 = arith.andi %20, %25 : vector<160x10xi1>
    %27 = arith.extui %26 : vector<160x10xi1> to vector<160x10xi32>
    %28 = arith.sitofp %27 : vector<160x10xi32> to vector<160x10xf32>
    %29 = tpu.iota {dimensions = array<i32: 0>} : vector<2x16xi32>
    %30 = tpu.iota {dimensions = array<i32: 1>} : vector<2x16xi32>
    %c8_i32 = arith.constant 8 : i32
    %31 = vector.broadcast %c8_i32 : i32 to vector<2x16xi32>
    %32 = arith.muli %29, %31 : vector<2x16xi32>
    %33 = arith.cmpi sge, %30, %32 : vector<2x16xi32>
    %c1_i32_7 = arith.constant 1 : i32
    %34 = vector.broadcast %c1_i32_7 : i32 to vector<2x16xi32>
    %35 = arith.addi %29, %34 : vector<2x16xi32>
    %c8_i32_8 = arith.constant 8 : i32
    %36 = vector.broadcast %c8_i32_8 : i32 to vector<2x16xi32>
    %37 = arith.muli %35, %36 : vector<2x16xi32>
    %38 = arith.cmpi slt, %30, %37 : vector<2x16xi32>
    %39 = arith.andi %33, %38 : vector<2x16xi1>
    %40 = arith.extui %39 : vector<2x16xi1> to vector<2x16xi32>
    %41 = arith.sitofp %40 : vector<2x16xi32> to vector<2x16xf32>
    %42 = tpu.iota {dimensions = array<i32: 0>} : vector<16x2xi32>
    %43 = tpu.iota {dimensions = array<i32: 1>} : vector<16x2xi32>
    %c8_i32_9 = arith.constant 8 : i32
    %44 = vector.broadcast %c8_i32_9 : i32 to vector<16x2xi32>
    %45 = arith.muli %43, %44 : vector<16x2xi32>
    %46 = arith.cmpi sge, %42, %45 : vector<16x2xi32>
    %c1_i32_10 = arith.constant 1 : i32
    %47 = vector.broadcast %c1_i32_10 : i32 to vector<16x2xi32>
    %48 = arith.addi %43, %47 : vector<16x2xi32>
    %c8_i32_11 = arith.constant 8 : i32
    %49 = vector.broadcast %c8_i32_11 : i32 to vector<16x2xi32>
    %50 = arith.muli %48, %49 : vector<16x2xi32>
    %51 = arith.cmpi slt, %42, %50 : vector<16x2xi32>
    %52 = arith.andi %46, %51 : vector<16x2xi1>
    %53 = arith.extui %52 : vector<16x2xi1> to vector<16x2xi32>
    %54 = arith.sitofp %53 : vector<16x2xi32> to vector<16x2xf32>
    %cst_12 = arith.constant 0.000000e+00 : f32
    %55 = vector.broadcast %cst_12 : f32 to vector<16x10xf32>
    %cst_13 = arith.constant dense<0xFF800000> : vector<16xf32>
    %56 = vector.multi_reduction <maximumf>, %55, %cst_13 [1] : vector<16x10xf32> to vector<16xf32>
    %57 = vector.shape_cast %56 : vector<16xf32> to vector<16x1xf32>
    %58 = vector.broadcast %57 : vector<16x1xf32> to vector<16x10xf32>
    %59 = arith.subf %55, %58 : vector<16x10xf32>
    %60 = math.exp %59 : vector<16x10xf32>
    %cst_14 = arith.constant dense<0.000000e+00> : vector<16xf32>
    %61 = vector.multi_reduction <add>, %60, %cst_14 [1] : vector<16x10xf32> to vector<16xf32>
    %62 = vector.shape_cast %61 : vector<16xf32> to vector<16x1xf32>
    %63 = vector.broadcast %62 : vector<16x1xf32> to vector<16x10xf32>
    %64 = arith.divf %60, %63 : vector<16x10xf32>
    %cst_15 = arith.constant dense<0.000000e+00> : vector<16x160xf32>
    %65 = tpu.matmul %64, %15, %cst_15 {dimension_numbers = #tpu.dot_dimension_numbers<[1], [0], [0], [1], [0, 0, 1, 1], [], []>} : vector<16x10xf32>, vector<10x160xf32>, vector<16x160xf32> -> vector<16x160xf32>
    %66 = arith.mulf %65, %2 : vector<16x160xf32>
    %cst_16 = arith.constant dense<0.000000e+00> : vector<2x160xf32>
    %67 = tpu.matmul %41, %66, %cst_16 {dimension_numbers = #tpu.dot_dimension_numbers<[1], [0], [0], [1], [0, 0, 1, 1], [], []>} : vector<2x16xf32>, vector<16x160xf32>, vector<2x160xf32> -> vector<2x160xf32>
    %68 = arith.mulf %67, %67 : vector<2x160xf32>
    %cst_17 = arith.constant dense<0.000000e+00> : vector<2x10xf32>
    %69 = tpu.matmul %68, %28, %cst_17 {dimension_numbers = #tpu.dot_dimension_numbers<[1], [0], [0], [1], [0, 0, 1, 1], [], []>} : vector<2x160xf32>, vector<160x10xf32>, vector<2x10xf32> -> vector<2x10xf32>
    %cst_18 = arith.constant 1.000000e-07 : f32
    %70 = vector.broadcast %cst_18 : f32 to vector<2x10xf32>
    %71 = arith.addf %69, %70 : vector<2x10xf32>
    %72 = math.rsqrt %71 : vector<2x10xf32>
    %cst_19 = arith.constant dense<0.000000e+00> : vector<2x160xf32>
    %73 = tpu.matmul %72, %15, %cst_19 {dimension_numbers = #tpu.dot_dimension_numbers<[1], [0], [0], [1], [0, 0, 1, 1], [], []>} : vector<2x10xf32>, vector<10x160xf32>, vector<2x160xf32> -> vector<2x160xf32>
    %74 = arith.mulf %67, %73 : vector<2x160xf32>
    %cst_20 = arith.constant dense<0.000000e+00> : vector<16x160xf32>
    %75 = tpu.matmul %54, %74, %cst_20 {dimension_numbers = #tpu.dot_dimension_numbers<[1], [0], [0], [1], [0, 0, 1, 1], [], []>} : vector<16x2xf32>, vector<2x160xf32>, vector<16x160xf32> -> vector<16x160xf32>
    %76 = arith.mulf %75, %2 : vector<16x160xf32>
    %cst_21 = arith.constant dense<0.000000e+00> : vector<16x10xf32>
    %77 = tpu.matmul %76, %28, %cst_21 {dimension_numbers = #tpu.dot_dimension_numbers<[1], [0], [0], [1], [0, 0, 1, 1], [], []>} : vector<16x160xf32>, vector<160x10xf32>, vector<16x10xf32> -> vector<16x10xf32>
    %cst_22 = arith.constant dense<0xFF800000> : vector<16xf32>
    %78 = vector.multi_reduction <maximumf>, %77, %cst_22 [1] : vector<16x10xf32> to vector<16xf32>
    %79 = vector.shape_cast %78 : vector<16xf32> to vector<16x1xf32>
    %80 = vector.broadcast %79 : vector<16x1xf32> to vector<16x10xf32>
    %81 = arith.subf %77, %80 : vector<16x10xf32>
    %82 = math.exp %81 : vector<16x10xf32>
    %cst_23 = arith.constant dense<0.000000e+00> : vector<16xf32>
    %83 = vector.multi_reduction <add>, %82, %cst_23 [1] : vector<16x10xf32> to vector<16xf32>
    %84 = vector.shape_cast %83 : vector<16xf32> to vector<16x1xf32>
    %85 = vector.broadcast %84 : vector<16x1xf32> to vector<16x10xf32>
    %86 = arith.divf %82, %85 : vector<16x10xf32>
    %cst_24 = arith.constant dense<0.000000e+00> : vector<16x160xf32>
    %87 = tpu.matmul %86, %15, %cst_24 {dimension_numbers = #tpu.dot_dimension_numbers<[1], [0], [0], [1], [0, 0, 1, 1], [], []>} : vector<16x10xf32>, vector<10x160xf32>, vector<16x160xf32> -> vector<16x160xf32>
    %88 = arith.mulf %87, %2 : vector<16x160xf32>
    %cst_25 = arith.constant dense<0.000000e+00> : vector<2x160xf32>
    %89 = tpu.matmul %41, %88, %cst_25 {dimension_numbers = #tpu.dot_dimension_numbers<[1], [0], [0], [1], [0, 0, 1, 1], [], []>} : vector<2x16xf32>, vector<16x160xf32>, vector<2x160xf32> -> vector<2x160xf32>
    %90 = arith.mulf %89, %89 : vector<2x160xf32>
    %cst_26 = arith.constant dense<0.000000e+00> : vector<2x10xf32>
    %91 = tpu.matmul %90, %28, %cst_26 {dimension_numbers = #tpu.dot_dimension_numbers<[1], [0], [0], [1], [0, 0, 1, 1], [], []>} : vector<2x160xf32>, vector<160x10xf32>, vector<2x10xf32> -> vector<2x10xf32>
    %cst_27 = arith.constant 1.000000e-07 : f32
    %92 = vector.broadcast %cst_27 : f32 to vector<2x10xf32>
    %93 = arith.addf %91, %92 : vector<2x10xf32>
    %94 = math.rsqrt %93 : vector<2x10xf32>
    %cst_28 = arith.constant dense<0.000000e+00> : vector<2x160xf32>
    %95 = tpu.matmul %94, %15, %cst_28 {dimension_numbers = #tpu.dot_dimension_numbers<[1], [0], [0], [1], [0, 0, 1, 1], [], []>} : vector<2x10xf32>, vector<10x160xf32>, vector<2x160xf32> -> vector<2x160xf32>
    %96 = arith.mulf %89, %95 : vector<2x160xf32>
    %cst_29 = arith.constant dense<0.000000e+00> : vector<16x160xf32>
    %97 = tpu.matmul %54, %96, %cst_29 {dimension_numbers = #tpu.dot_dimension_numbers<[1], [0], [0], [1], [0, 0, 1, 1], [], []>} : vector<16x2xf32>, vector<2x160xf32>, vector<16x160xf32> -> vector<16x160xf32>
    %98 = arith.mulf %97, %2 : vector<16x160xf32>
    %cst_30 = arith.constant dense<0.000000e+00> : vector<16x10xf32>
    %99 = tpu.matmul %98, %28, %cst_30 {dimension_numbers = #tpu.dot_dimension_numbers<[1], [0], [0], [1], [0, 0, 1, 1], [], []>} : vector<16x160xf32>, vector<160x10xf32>, vector<16x10xf32> -> vector<16x10xf32>
    %cst_31 = arith.constant dense<0xFF800000> : vector<16xf32>
    %100 = vector.multi_reduction <maximumf>, %99, %cst_31 [1] : vector<16x10xf32> to vector<16xf32>
    %101 = vector.shape_cast %100 : vector<16xf32> to vector<16x1xf32>
    %102 = vector.broadcast %101 : vector<16x1xf32> to vector<16x10xf32>
    %103 = arith.subf %99, %102 : vector<16x10xf32>
    %104 = math.exp %103 : vector<16x10xf32>
    %cst_32 = arith.constant dense<0.000000e+00> : vector<16xf32>
    %105 = vector.multi_reduction <add>, %104, %cst_32 [1] : vector<16x10xf32> to vector<16xf32>
    %106 = vector.shape_cast %105 : vector<16xf32> to vector<16x1xf32>
    %107 = vector.broadcast %106 : vector<16x1xf32> to vector<16x10xf32>
    %108 = arith.divf %104, %107 : vector<16x10xf32>
    %cst_33 = arith.constant dense<0.000000e+00> : vector<16x160xf32>
    %109 = tpu.matmul %108, %15, %cst_33 {dimension_numbers = #tpu.dot_dimension_numbers<[1], [0], [0], [1], [0, 0, 1, 1], [], []>} : vector<16x10xf32>, vector<10x160xf32>, vector<16x160xf32> -> vector<16x160xf32>
    %110 = arith.mulf %109, %2 : vector<16x160xf32>
    %cst_34 = arith.constant dense<0.000000e+00> : vector<2x160xf32>
    %111 = tpu.matmul %41, %110, %cst_34 {dimension_numbers = #tpu.dot_dimension_numbers<[1], [0], [0], [1], [0, 0, 1, 1], [], []>} : vector<2x16xf32>, vector<16x160xf32>, vector<2x160xf32> -> vector<2x160xf32>
    %112 = arith.mulf %111, %111 : vector<2x160xf32>
    %cst_35 = arith.constant dense<0.000000e+00> : vector<2x10xf32>
    %113 = tpu.matmul %112, %28, %cst_35 {dimension_numbers = #tpu.dot_dimension_numbers<[1], [0], [0], [1], [0, 0, 1, 1], [], []>} : vector<2x160xf32>, vector<160x10xf32>, vector<2x10xf32> -> vector<2x10xf32>
    %cst_36 = arith.constant 1.000000e-07 : f32
    %114 = vector.broadcast %cst_36 : f32 to vector<2x10xf32>
    %115 = arith.addf %113, %114 : vector<2x10xf32>
    %116 = math.rsqrt %115 : vector<2x10xf32>
    %cst_37 = arith.constant dense<0.000000e+00> : vector<2x160xf32>
    %117 = tpu.matmul %116, %15, %cst_37 {dimension_numbers = #tpu.dot_dimension_numbers<[1], [0], [0], [1], [0, 0, 1, 1], [], []>} : vector<2x10xf32>, vector<10x160xf32>, vector<2x160xf32> -> vector<2x160xf32>
    %118 = arith.mulf %111, %117 : vector<2x160xf32>
    %cst_38 = arith.constant dense<0.000000e+00> : vector<16x160xf32>
    %119 = tpu.matmul %54, %118, %cst_38 {dimension_numbers = #tpu.dot_dimension_numbers<[1], [0], [0], [1], [0, 0, 1, 1], [], []>} : vector<16x2xf32>, vector<2x160xf32>, vector<16x160xf32> -> vector<16x160xf32>
    %120 = arith.mulf %119, %2 : vector<16x160xf32>
    %cst_39 = arith.constant dense<0.000000e+00> : vector<16x10xf32>
    %121 = tpu.matmul %120, %28, %cst_39 {dimension_numbers = #tpu.dot_dimension_numbers<[1], [0], [0], [1], [0, 0, 1, 1], [], []>} : vector<16x160xf32>, vector<160x10xf32>, vector<16x10xf32> -> vector<16x10xf32>
    %cst_40 = arith.constant dense<0xFF800000> : vector<16xf32>
    %122 = vector.multi_reduction <maximumf>, %121, %cst_40 [1] : vector<16x10xf32> to vector<16xf32>
    %123 = vector.shape_cast %122 : vector<16xf32> to vector<16x1xf32>
    %124 = vector.broadcast %123 : vector<16x1xf32> to vector<16x10xf32>
    %125 = arith.subf %121, %124 : vector<16x10xf32>
    %126 = math.exp %125 : vector<16x10xf32>
    %cst_41 = arith.constant dense<0.000000e+00> : vector<16xf32>
    %127 = vector.multi_reduction <add>, %126, %cst_41 [1] : vector<16x10xf32> to vector<16xf32>
    %128 = vector.shape_cast %127 : vector<16xf32> to vector<16x1xf32>
    %129 = vector.broadcast %128 : vector<16x1xf32> to vector<16x10xf32>
    %130 = arith.divf %126, %129 : vector<16x10xf32>
    %cst_42 = arith.constant dense<0.000000e+00> : vector<16x160xf32>
    %131 = tpu.matmul %130, %15, %cst_42 {dimension_numbers = #tpu.dot_dimension_numbers<[1], [0], [0], [1], [0, 0, 1, 1], [], []>} : vector<16x10xf32>, vector<10x160xf32>, vector<16x160xf32> -> vector<16x160xf32>
    %132 = arith.mulf %131, %2 : vector<16x160xf32>
    %cst_43 = arith.constant dense<0.000000e+00> : vector<2x160xf32>
    %133 = tpu.matmul %41, %132, %cst_43 {dimension_numbers = #tpu.dot_dimension_numbers<[1], [0], [0], [1], [0, 0, 1, 1], [], []>} : vector<2x16xf32>, vector<16x160xf32>, vector<2x160xf32> -> vector<2x160xf32>
    %134 = arith.mulf %133, %133 : vector<2x160xf32>
    %cst_44 = arith.constant dense<0.000000e+00> : vector<2x10xf32>
    %135 = tpu.matmul %134, %28, %cst_44 {dimension_numbers = #tpu.dot_dimension_numbers<[1], [0], [0], [1], [0, 0, 1, 1], [], []>} : vector<2x160xf32>, vector<160x10xf32>, vector<2x10xf32> -> vector<2x10xf32>
    %cst_45 = arith.constant 1.000000e-07 : f32
    %136 = vector.broadcast %cst_45 : f32 to vector<2x10xf32>
    %137 = arith.addf %135, %136 : vector<2x10xf32>
    %138 = math.rsqrt %137 : vector<2x10xf32>
    %cst_46 = arith.constant dense<0.000000e+00> : vector<2x160xf32>
    %139 = tpu.matmul %138, %15, %cst_46 {dimension_numbers = #tpu.dot_dimension_numbers<[1], [0], [0], [1], [0, 0, 1, 1], [], []>} : vector<2x10xf32>, vector<10x160xf32>, vector<2x160xf32> -> vector<2x160xf32>
    %140 = arith.mulf %133, %139 : vector<2x160xf32>
    %cst_47 = arith.constant dense<0.000000e+00> : vector<16x160xf32>
    %141 = tpu.matmul %54, %140, %cst_47 {dimension_numbers = #tpu.dot_dimension_numbers<[1], [0], [0], [1], [0, 0, 1, 1], [], []>} : vector<16x2xf32>, vector<2x160xf32>, vector<16x160xf32> -> vector<16x160xf32>
    %142 = arith.mulf %141, %2 : vector<16x160xf32>
    %cst_48 = arith.constant dense<0.000000e+00> : vector<16x10xf32>
    %143 = tpu.matmul %142, %28, %cst_48 {dimension_numbers = #tpu.dot_dimension_numbers<[1], [0], [0], [1], [0, 0, 1, 1], [], []>} : vector<16x160xf32>, vector<160x10xf32>, vector<16x10xf32> -> vector<16x10xf32>
    %cst_49 = arith.constant dense<0xFF800000> : vector<16xf32>
    %144 = vector.multi_reduction <maximumf>, %143, %cst_49 [1] : vector<16x10xf32> to vector<16xf32>
    %145 = vector.shape_cast %144 : vector<16xf32> to vector<16x1xf32>
    %146 = vector.broadcast %145 : vector<16x1xf32> to vector<16x10xf32>
    %147 = arith.subf %143, %146 : vector<16x10xf32>
    %148 = math.exp %147 : vector<16x10xf32>
    %cst_50 = arith.constant dense<0.000000e+00> : vector<16xf32>
    %149 = vector.multi_reduction <add>, %148, %cst_50 [1] : vector<16x10xf32> to vector<16xf32>
    %150 = vector.shape_cast %149 : vector<16xf32> to vector<16x1xf32>
    %151 = vector.broadcast %150 : vector<16x1xf32> to vector<16x10xf32>
    %152 = arith.divf %148, %151 : vector<16x10xf32>
    %cst_51 = arith.constant dense<0.000000e+00> : vector<16x160xf32>
    %153 = tpu.matmul %152, %15, %cst_51 {dimension_numbers = #tpu.dot_dimension_numbers<[1], [0], [0], [1], [0, 0, 1, 1], [], []>} : vector<16x10xf32>, vector<10x160xf32>, vector<16x160xf32> -> vector<16x160xf32>
    %154 = arith.mulf %153, %2 : vector<16x160xf32>
    %cst_52 = arith.constant dense<0.000000e+00> : vector<2x160xf32>
    %155 = tpu.matmul %41, %154, %cst_52 {dimension_numbers = #tpu.dot_dimension_numbers<[1], [0], [0], [1], [0, 0, 1, 1], [], []>} : vector<2x16xf32>, vector<16x160xf32>, vector<2x160xf32> -> vector<2x160xf32>
    %156 = arith.mulf %155, %155 : vector<2x160xf32>
    %cst_53 = arith.constant dense<0.000000e+00> : vector<2x10xf32>
    %157 = tpu.matmul %156, %28, %cst_53 {dimension_numbers = #tpu.dot_dimension_numbers<[1], [0], [0], [1], [0, 0, 1, 1], [], []>} : vector<2x160xf32>, vector<160x10xf32>, vector<2x10xf32> -> vector<2x10xf32>
    %cst_54 = arith.constant 1.000000e-07 : f32
    %158 = vector.broadcast %cst_54 : f32 to vector<2x10xf32>
    %159 = arith.addf %157, %158 : vector<2x10xf32>
    %160 = math.rsqrt %159 : vector<2x10xf32>
    %cst_55 = arith.constant dense<0.000000e+00> : vector<2x160xf32>
    %161 = tpu.matmul %160, %15, %cst_55 {dimension_numbers = #tpu.dot_dimension_numbers<[1], [0], [0], [1], [0, 0, 1, 1], [], []>} : vector<2x10xf32>, vector<10x160xf32>, vector<2x160xf32> -> vector<2x160xf32>
    %162 = arith.mulf %155, %161 : vector<2x160xf32>
    %c0_56 = arith.constant 0 : index
    %c0_57 = arith.constant 0 : index
    %163 = vector.load %arg3[%c0_56, %c0_57] : memref<160x30xf32, #tpu.memory_space<vmem>>, vector<160x30xf32>
    %cst_58 = arith.constant dense<0.000000e+00> : vector<2x30xf32>
    %164 = tpu.matmul %162, %163, %cst_58 {dimension_numbers = #tpu.dot_dimension_numbers<[1], [0], [0], [1], [0, 0, 1, 1], [], []>} : vector<2x160xf32>, vector<160x30xf32>, vector<2x30xf32> -> vector<2x30xf32>
    %c0_59 = arith.constant 0 : index
    %c0_60 = arith.constant 0 : index
    %165 = vector.load %arg4[%c0_59, %c0_60] : memref<1x30xf32, #tpu.memory_space<vmem>>, vector<1x30xf32>
    %166 = vector.broadcast %165 : vector<1x30xf32> to vector<2x30xf32>
    %167 = arith.addf %164, %166 : vector<2x30xf32>
    %168 = arith.negf %167 : vector<2x30xf32>
    %169 = math.exp %168 : vector<2x30xf32>
    %cst_61 = arith.constant 1.000000e+00 : f32
    %170 = vector.broadcast %cst_61 : f32 to vector<2x30xf32>
    %171 = arith.addf %170, %169 : vector<2x30xf32>
    %172 = arith.divf %170, %171 : vector<2x30xf32>
    %c0_62 = arith.constant 0 : index
    %c0_63 = arith.constant 0 : index
    %173 = vector.load %arg5[%c0_62, %c0_63] : memref<2x30xf32, #tpu.memory_space<vmem>>, vector<2x30xf32>
    tpu.vector_store %arg5[%c0_62, %c0_63], %172 {strides = array<i32>} : memref<2x30xf32, #tpu.memory_space<vmem>>, vector<2x30xf32>,
    return
  }
  func.func @transform_0(%arg0: i32) -> (i32, i32) {
    %c0_i32 = arith.constant 0 : i32
    %c0_i32_0 = arith.constant 0 : i32
    return %arg0, %c0_i32 : i32, i32
  }
  func.func @transform_1(%arg0: i32) -> (i32, i32) {
    %c0_i32 = arith.constant 0 : i32
    %c0_i32_0 = arith.constant 0 : i32
    %c0_i32_1 = arith.constant 0 : i32
    return %c0_i32, %c0_i32_0 : i32, i32
  }
  func.func @transform_2(%arg0: i32) -> (i32, i32) {
    %c0_i32 = arith.constant 0 : i32
    %c0_i32_0 = arith.constant 0 : i32
    %c0_i32_1 = arith.constant 0 : i32
    return %c0_i32, %c0_i32_0 : i32, i32
  }
  func.func @transform_3(%arg0: i32) -> (i32, i32) {
    %c0_i32 = arith.constant 0 : i32
    %c0_i32_0 = arith.constant 0 : i32
    %c0_i32_1 = arith.constant 0 : i32
    return %c0_i32, %c0_i32_0 : i32, i32
  }
  func.func @transform_4(%arg0: i32) -> (i32, i32) {
    %c0_i32 = arith.constant 0 : i32
    %c0_i32_0 = arith.constant 0 : i32
    return %arg0, %c0_i32 : i32, i32
  }
}

module attributes {stable_mosaic.version = 11 : i64} {
  func.func @_bigru_kernel(%arg0: i32, %arg1: i32, %arg2: i32, %arg3: memref<2x8x384xbf16, #tpu.memory_space<vmem>>, %arg4: memref<1x128x384xbf16, #tpu.memory_space<vmem>>, %arg5: memref<1x1x384xf32, #tpu.memory_space<vmem>>, %arg6: memref<2x8x128xbf16, #tpu.memory_space<vmem>>, %arg7: memref<8x128xf32, #tpu.memory_space<vmem>>) attributes {dimension_semantics = [#tpu.dimension_semantics<parallel>, #tpu.dimension_semantics<parallel>, #tpu.dimension_semantics<arbitrary>], iteration_bounds = array<i64: 2, 1, 1>, scalar_prefetch = 0 : i64, scratch_operands = 1 : i64, tpu.core_type = #tpu.core_type<tc>, window_params = [{transform_indices = @transform_0, window_bounds = array<i64: 2, 8, 384>}, {transform_indices = @transform_1, window_bounds = array<i64: 1, 128, 384>}, {transform_indices = @transform_2, window_bounds = array<i64: 1, 1, 384>}, {transform_indices = @transform_3, window_bounds = array<i64: 2, 8, 128>}]} {
    %c0_i32 = arith.constant 0 : i32
    %0 = arith.cmpi eq, %arg2, %c0_i32 : i32
    %1 = arith.extui %0 : i1 to i32
    %c0_i32_0 = arith.constant 0 : i32
    %2 = arith.cmpi ne, %1, %c0_i32_0 : i32
    scf.if %2 {
      %cst_33 = arith.constant 0.000000e+00 : f32
      %94 = vector.broadcast %cst_33 : f32 to vector<8x128xf32>
      %c0_34 = arith.constant 0 : index
      %c0_35 = arith.constant 0 : index
      %95 = vector.load %arg7[%c0_34, %c0_35] : memref<8x128xf32, #tpu.memory_space<vmem>>, vector<8x128xf32>
      tpu.vector_store %arg7[%c0_34, %c0_35], %94 {strides = array<i32>} : memref<8x128xf32, #tpu.memory_space<vmem>>, vector<8x128xf32>,
    } else {
    }
    %c0 = arith.constant 0 : index
    %c0_1 = arith.constant 0 : index
    %c0_2 = arith.constant 0 : index
    %3 = vector.load %arg4[%c0, %c0_1, %c0_2] : memref<1x128x384xbf16, #tpu.memory_space<vmem>>, vector<1x128x384xbf16>
    %4 = vector.shape_cast %3 : vector<1x128x384xbf16> to vector<128x384xbf16>
    %c0_3 = arith.constant 0 : index
    %c0_4 = arith.constant 0 : index
    %c0_5 = arith.constant 0 : index
    %5 = vector.load %arg5[%c0_3, %c0_4, %c0_5] : memref<1x1x384xf32, #tpu.memory_space<vmem>>, vector<1x1x384xf32>
    %6 = vector.shape_cast %5 : vector<1x1x384xf32> to vector<1x384xf32>
    %c0_i32_6 = arith.constant 0 : i32
    %7 = arith.cmpi eq, %arg0, %c0_i32_6 : i32
    %c0_i32_7 = arith.constant 0 : i32
    %c1_i32 = arith.constant 1 : i32
    %8 = arith.subi %c1_i32, %c0_i32_7 : i32
    %9 = arith.select %7, %c0_i32_7, %8 : i32
    %10 = arith.index_cast %9 : i32 to index
    %c0_8 = arith.constant 0 : index
    %c0_9 = arith.constant 0 : index
    %11 = vector.load %arg3[%10, %c0_8, %c0_9] : memref<2x8x384xbf16, #tpu.memory_space<vmem>>, vector<1x8x384xbf16>
    %12 = vector.shape_cast %11 : vector<1x8x384xbf16> to vector<8x384xbf16>
    %13 = arith.extf %12 : vector<8x384xbf16> to vector<8x384xf32>
    %c0_10 = arith.constant 0 : index
    %c0_11 = arith.constant 0 : index
    %14 = vector.load %arg7[%c0_10, %c0_11] : memref<8x128xf32, #tpu.memory_space<vmem>>, vector<8x128xf32>
    %15 = arith.truncf %14 : vector<8x128xf32> to vector<8x128xbf16>
    %cst = arith.constant dense<0.000000e+00> : vector<8x384xf32>
    %16 = tpu.matmul %15, %4, %cst {dimension_numbers = #tpu.dot_dimension_numbers<[1], [0], [0], [1], [0, 0, 1, 1], [], []>} : vector<8x128xbf16>, vector<128x384xbf16>, vector<8x384xf32> -> vector<8x384xf32>
    %17 = vector.broadcast %6 : vector<1x384xf32> to vector<8x384xf32>
    %18 = arith.addf %16, %17 : vector<8x384xf32>
    %19 = vector.extract_strided_slice %13 {offsets = [0, 0], sizes = [8, 128], strides = [1, 1]} : vector<8x384xf32> to vector<8x128xf32>
    %20 = vector.extract_strided_slice %18 {offsets = [0, 0], sizes = [8, 128], strides = [1, 1]} : vector<8x384xf32> to vector<8x128xf32>
    %21 = arith.addf %19, %20 : vector<8x128xf32>
    %22 = arith.negf %21 : vector<8x128xf32>
    %23 = math.exp %22 : vector<8x128xf32>
    %cst_12 = arith.constant 1.000000e+00 : f32
    %24 = vector.broadcast %cst_12 : f32 to vector<8x128xf32>
    %25 = arith.addf %24, %23 : vector<8x128xf32>
    %26 = arith.divf %24, %25 : vector<8x128xf32>
    %27 = vector.extract_strided_slice %13 {offsets = [0, 128], sizes = [8, 128], strides = [1, 1]} : vector<8x384xf32> to vector<8x128xf32>
    %28 = vector.extract_strided_slice %18 {offsets = [0, 128], sizes = [8, 128], strides = [1, 1]} : vector<8x384xf32> to vector<8x128xf32>
    %29 = arith.addf %27, %28 : vector<8x128xf32>
    %30 = arith.negf %29 : vector<8x128xf32>
    %31 = math.exp %30 : vector<8x128xf32>
    %cst_13 = arith.constant 1.000000e+00 : f32
    %32 = vector.broadcast %cst_13 : f32 to vector<8x128xf32>
    %33 = arith.addf %32, %31 : vector<8x128xf32>
    %34 = arith.divf %32, %33 : vector<8x128xf32>
    %35 = vector.extract_strided_slice %13 {offsets = [0, 256], sizes = [8, 128], strides = [1, 1]} : vector<8x384xf32> to vector<8x128xf32>
    %36 = vector.extract_strided_slice %18 {offsets = [0, 256], sizes = [8, 128], strides = [1, 1]} : vector<8x384xf32> to vector<8x128xf32>
    %37 = arith.mulf %26, %36 : vector<8x128xf32>
    %38 = arith.addf %35, %37 : vector<8x128xf32>
    %39 = math.tanh %38 : vector<8x128xf32>
    %cst_14 = arith.constant 1.000000e+00 : f32
    %40 = vector.broadcast %cst_14 : f32 to vector<8x128xf32>
    %41 = arith.subf %40, %34 : vector<8x128xf32>
    %42 = arith.mulf %41, %39 : vector<8x128xf32>
    %43 = arith.mulf %34, %14 : vector<8x128xf32>
    %44 = arith.addf %42, %43 : vector<8x128xf32>
    %c0_15 = arith.constant 0 : index
    %c0_16 = arith.constant 0 : index
    %45 = vector.load %arg7[%c0_15, %c0_16] : memref<8x128xf32, #tpu.memory_space<vmem>>, vector<8x128xf32>
    tpu.vector_store %arg7[%c0_15, %c0_16], %44 {strides = array<i32>} : memref<8x128xf32, #tpu.memory_space<vmem>>, vector<8x128xf32>,
    %46 = arith.truncf %44 : vector<8x128xf32> to vector<8x128xbf16>
    %47 = arith.index_cast %9 : i32 to index
    %c0_17 = arith.constant 0 : index
    %c0_18 = arith.constant 0 : index
    %48 = vector.load %arg6[%47, %c0_17, %c0_18] : memref<2x8x128xbf16, #tpu.memory_space<vmem>>, vector<1x8x128xbf16>
    %49 = vector.shape_cast %48 : vector<1x8x128xbf16> to vector<8x128xbf16>
    %50 = vector.shape_cast %46 : vector<8x128xbf16> to vector<1x8x128xbf16>
    tpu.vector_store %arg6[%47, %c0_17, %c0_18], %50 {strides = array<i32>} : memref<2x8x128xbf16, #tpu.memory_space<vmem>>, vector<1x8x128xbf16>,
    %c1_i32_19 = arith.constant 1 : i32
    %c1_i32_20 = arith.constant 1 : i32
    %51 = arith.subi %c1_i32_20, %c1_i32_19 : i32
    %52 = arith.select %7, %c1_i32_19, %51 : i32
    %53 = arith.index_cast %52 : i32 to index
    %c0_21 = arith.constant 0 : index
    %c0_22 = arith.constant 0 : index
    %54 = vector.load %arg3[%53, %c0_21, %c0_22] : memref<2x8x384xbf16, #tpu.memory_space<vmem>>, vector<1x8x384xbf16>
    %55 = vector.shape_cast %54 : vector<1x8x384xbf16> to vector<8x384xbf16>
    %56 = arith.extf %55 : vector<8x384xbf16> to vector<8x384xf32>
    %c0_23 = arith.constant 0 : index
    %c0_24 = arith.constant 0 : index
    %57 = vector.load %arg7[%c0_23, %c0_24] : memref<8x128xf32, #tpu.memory_space<vmem>>, vector<8x128xf32>
    %58 = arith.truncf %57 : vector<8x128xf32> to vector<8x128xbf16>
    %cst_25 = arith.constant dense<0.000000e+00> : vector<8x384xf32>
    %59 = tpu.matmul %58, %4, %cst_25 {dimension_numbers = #tpu.dot_dimension_numbers<[1], [0], [0], [1], [0, 0, 1, 1], [], []>} : vector<8x128xbf16>, vector<128x384xbf16>, vector<8x384xf32> -> vector<8x384xf32>
    %60 = vector.broadcast %6 : vector<1x384xf32> to vector<8x384xf32>
    %61 = arith.addf %59, %60 : vector<8x384xf32>
    %62 = vector.extract_strided_slice %56 {offsets = [0, 0], sizes = [8, 128], strides = [1, 1]} : vector<8x384xf32> to vector<8x128xf32>
    %63 = vector.extract_strided_slice %61 {offsets = [0, 0], sizes = [8, 128], strides = [1, 1]} : vector<8x384xf32> to vector<8x128xf32>
    %64 = arith.addf %62, %63 : vector<8x128xf32>
    %65 = arith.negf %64 : vector<8x128xf32>
    %66 = math.exp %65 : vector<8x128xf32>
    %cst_26 = arith.constant 1.000000e+00 : f32
    %67 = vector.broadcast %cst_26 : f32 to vector<8x128xf32>
    %68 = arith.addf %67, %66 : vector<8x128xf32>
    %69 = arith.divf %67, %68 : vector<8x128xf32>
    %70 = vector.extract_strided_slice %56 {offsets = [0, 128], sizes = [8, 128], strides = [1, 1]} : vector<8x384xf32> to vector<8x128xf32>
    %71 = vector.extract_strided_slice %61 {offsets = [0, 128], sizes = [8, 128], strides = [1, 1]} : vector<8x384xf32> to vector<8x128xf32>
    %72 = arith.addf %70, %71 : vector<8x128xf32>
    %73 = arith.negf %72 : vector<8x128xf32>
    %74 = math.exp %73 : vector<8x128xf32>
    %cst_27 = arith.constant 1.000000e+00 : f32
    %75 = vector.broadcast %cst_27 : f32 to vector<8x128xf32>
    %76 = arith.addf %75, %74 : vector<8x128xf32>
    %77 = arith.divf %75, %76 : vector<8x128xf32>
    %78 = vector.extract_strided_slice %56 {offsets = [0, 256], sizes = [8, 128], strides = [1, 1]} : vector<8x384xf32> to vector<8x128xf32>
    %79 = vector.extract_strided_slice %61 {offsets = [0, 256], sizes = [8, 128], strides = [1, 1]} : vector<8x384xf32> to vector<8x128xf32>
    %80 = arith.mulf %69, %79 : vector<8x128xf32>
    %81 = arith.addf %78, %80 : vector<8x128xf32>
    %82 = math.tanh %81 : vector<8x128xf32>
    %cst_28 = arith.constant 1.000000e+00 : f32
    %83 = vector.broadcast %cst_28 : f32 to vector<8x128xf32>
    %84 = arith.subf %83, %77 : vector<8x128xf32>
    %85 = arith.mulf %84, %82 : vector<8x128xf32>
    %86 = arith.mulf %77, %57 : vector<8x128xf32>
    %87 = arith.addf %85, %86 : vector<8x128xf32>
    %c0_29 = arith.constant 0 : index
    %c0_30 = arith.constant 0 : index
    %88 = vector.load %arg7[%c0_29, %c0_30] : memref<8x128xf32, #tpu.memory_space<vmem>>, vector<8x128xf32>
    tpu.vector_store %arg7[%c0_29, %c0_30], %87 {strides = array<i32>} : memref<8x128xf32, #tpu.memory_space<vmem>>, vector<8x128xf32>,
    %89 = arith.truncf %87 : vector<8x128xf32> to vector<8x128xbf16>
    %90 = arith.index_cast %52 : i32 to index
    %c0_31 = arith.constant 0 : index
    %c0_32 = arith.constant 0 : index
    %91 = vector.load %arg6[%90, %c0_31, %c0_32] : memref<2x8x128xbf16, #tpu.memory_space<vmem>>, vector<1x8x128xbf16>
    %92 = vector.shape_cast %91 : vector<1x8x128xbf16> to vector<8x128xbf16>
    %93 = vector.shape_cast %89 : vector<8x128xbf16> to vector<1x8x128xbf16>
    tpu.vector_store %arg6[%90, %c0_31, %c0_32], %93 {strides = array<i32>} : memref<2x8x128xbf16, #tpu.memory_space<vmem>>, vector<1x8x128xbf16>,
    %c2_i32 = arith.constant 2 : i32
    return
  }
  func.func @transform_0(%arg0: i32, %arg1: i32, %arg2: i32) -> (i32, i32, i32) {
    %c0_i32 = arith.constant 0 : i32
    %0 = arith.cmpi eq, %arg0, %c0_i32 : i32
    %c0_i32_0 = arith.constant 0 : i32
    %1 = arith.subi %c0_i32_0, %arg2 : i32
    %2 = arith.select %0, %arg2, %1 : i32
    %c0_i32_1 = arith.constant 0 : i32
    return %2, %arg1, %arg0 : i32, i32, i32
  }
  func.func @transform_1(%arg0: i32, %arg1: i32, %arg2: i32) -> (i32, i32, i32) {
    %c0_i32 = arith.constant 0 : i32
    %c0_i32_0 = arith.constant 0 : i32
    %c0_i32_1 = arith.constant 0 : i32
    return %arg0, %c0_i32, %c0_i32_0 : i32, i32, i32
  }
  func.func @transform_2(%arg0: i32, %arg1: i32, %arg2: i32) -> (i32, i32, i32) {
    %c0_i32 = arith.constant 0 : i32
    %c0_i32_0 = arith.constant 0 : i32
    %c0_i32_1 = arith.constant 0 : i32
    return %arg0, %c0_i32, %c0_i32_0 : i32, i32, i32
  }
  func.func @transform_3(%arg0: i32, %arg1: i32, %arg2: i32) -> (i32, i32, i32) {
    %c0_i32 = arith.constant 0 : i32
    %0 = arith.cmpi eq, %arg0, %c0_i32 : i32
    %c0_i32_0 = arith.constant 0 : i32
    %1 = arith.subi %c0_i32_0, %arg2 : i32
    %2 = arith.select %0, %arg2, %1 : i32
    %c0_i32_1 = arith.constant 0 : i32
    return %2, %arg1, %arg0 : i32, i32, i32
  }
}

</mosaic_0001>

<bundles_post_ra>
// kernel: capsule_main_forward.4
= control target key start
LH: loop header
LB: loop body
LE: loop exit
PB: predicated region body
PF: predicated region fallthrough
CT: control target
= control target key end

     0   :  { %s1160_s12 = smov 0   ;;  %s1162_s13 = smov 0   ;;  %s1321_s0 = inlined_call_operand.vmem [shape: bf16[2,8,768], index: 0, kind: input, shape index: {}]   ;;  %s1322_s1 = inlined_call_operand.vmem [shape: bf16[2,128,384], index: 1, kind: input, shape index: {}]   ;;  %s1323_s2 = inlined_call_operand.vmem [shape: f32[2,1,384], index: 2, kind: input, shape index: {}]   ;;  %s1324_s3 = inlined_call_operand.vmem [shape: bf16[2,8,256], index: 3, kind: output, shape index: {}]  }
   0x1   :  { %s1164_s14 = smov 0   ;;  %s1166_s15 = smov 0  }
   0x2   :  { %s1168_s16 = smov 0  }
   0x3 LB: > { %s32_s17 = sadd.s32 1, %s1130_s15  ;;  %s887_s18 = sadd.s32 4294967295, %s1134_s16   ;;  %s1134_s16 = sphi %s1168_s16, %s13_s16   ;;  %s1130_s15 = sphi %s1166_s15, %s1329_s15   ;;  %s1126_s14 = sphi %s1164_s14, %s1328_s14   ;;  %s1122_s13 = sphi %s1162_s13, %s1327_s13   ;;  %s1118_s12 = sphi %s1160_s12, %s1326_s12  }
   0x4   : > { %p34_p0 = scmp.ge.s32.totalorder %s32_s17, 2  ;;  %p56_p1 = scmp.ne.s32.totalorder %s1122_s13, %s1118_s12 }
   0x5   : > { %p57_p2 = scmp.eq.s32.totalorder %s1134_s16, 0  ;;  %p148_p4 = scmp.eq.s32.totalorder %s887_s18, 1 }
   0x6   : > { %s1331_s17 = smov (%p34_p0, %s32_s17), 0  ;;  %s49_s20 = sadd.s32 1, %s1122_s13 }
   0x7   : > { %p58_p3 = por %p57_p2, %p56_p1  ;;  %s45_s19 = ssub.s32 %s1130_s15, %s1331_s17 }
   0x8   : > { %p47_p5 = scmp.eq.s32.totalorder %s45_s19, 0  ;;  %p1195_p6 = por %p148_p4, %p56_p1 }
   0x9   : > { %p890_p7 = scmp.ge.s32.totalorder %s1134_s16, 2 }
   0xa   : > { %s1200_s22 = scalar_select %p47_p5, %s1122_s13, %s49_s20  }
   0xb   : > { %170 = sbr.rel (%p890_p7) target bundleno = 25 (0x19), region = 16 }
  0x12   : > { %173 = sbr.rel (!%p58_p3) target bundleno = 25 (0x19), region = 20  ;;  %s175_s23 = sand.u32 (%p58_p3), 1, %s1122_s13  }
  0x13   : > { %s935_s24 = smul.u32 (%p58_p3), 12, %s1130_s15 }
  0x14   : > { %s996_s25 = smul.u32 (%p58_p3), 24, %s175_s23 }
  0x15   : > { %s188_s28 = scalar_lea.vmem (%p58_p3), %s1321_s0, %s935_s24 }
  0x16   : > { %v203_v0 = vld [vmem:[%s188_s28] sm:$0xff] (%p58_p3)  ;;  %v205_v1 = vld [vmem:[%s188_s28 + $0x18] sm:$0xff] (%p58_p3)  ;;  %v892_v2 = vld [vmem:[%s188_s28 + $0x8] sm:$0xf] (%p58_p3)  ;;  %s177_s29 = scalar_lea.vmem (%p58_p3), [#allocation3], %s996_s25 }
  0x17   : > { %204 = vst [vmem:[%s177_s29] sm:$0xff] (%p58_p3), %v203_v0  ;;  %206 = vst [vmem:[%s177_s29 + $0xc] sm:$0xff] (%p58_p3), %v205_v1  ;;  %v894_v3 = vld [vmem:[%s188_s28 + $0x20] sm:$0xf] (%p58_p3) }
  0x18   : > { %893 = vst [vmem:[%s177_s29 + $0x8] sm:$0xf] (%p58_p3), %v892_v2  ;;  %895 = vst [vmem:[%s177_s29 + $0x14] sm:$0xf] (%p58_p3), %v894_v3 }
  0x19 PF: > { %p896_p8 = scmp.ge.s32.totalorder %s1134_s16, 1  ;;  %p237_p9 = scmp.lt.s32.totalorder %s1134_s16, 3 }
  0x1b   : > { %p238_p10 = pnand %p896_p8, %p237_p9 }
  0x1c   : > { %p280_p11 = scmp.lt.s32.totalorder (!%p238_p10), %s1126_s14, 1  ;;  %v1136_v4 = vmov (!%p238_p10), 0.0   ;;  %v1137_v5 = vmov (!%p238_p10), 0   ;;  %vm1138_vm0 = vmmov (!%p238_p10), 0   ;;  %v1139_v29 = vmov (!%p238_p10), 0.0|0.0   ;;  %p333_p12 = scmp.ne.s32.totalorder (!%p238_p10), %s1126_s14, 0 }
  0x1d   : > { %241 = sbr.rel (%p238_p10) target bundleno = 609 (0x261), region = 54  ;;  %956 = vmatprep.subr.bf16.mxu1 (!%p238_p10), %v1136_v4  ;;  %521 = vmatprep.mubr.bf16.mxu0 (!%p238_p10), %v1137_v5  ;;  %s244_s8 = sand.u32 (!%p238_p10), 1, %s1118_s12   ;;  %v346_v31 = vlaneseq (!%p238_p10) }
  0x1e   : > { %972 = vmatprep.mubr.msk.bf16.mxu1 (!%p238_p10), %vm1138_vm0, %v1136_v4  ;;  %s1270_s10 = smul.u32 (!%p238_p10), 24, %s244_s8  ;;  %s897_s26 = sshll.u32 (!%p238_p10), %s244_s8, 3 }
  0x1f   : > { %v347_v32 = vshrl.u32 (!%p238_p10), %v346_v31, 7  ;;  %s1287_s28 = scalar_lea.vmem (!%p238_p10), [#allocation4], %s897_s26  ;;  %p332_p13 = scmp.eq.s32.totalorder (!%p238_p10), %s1126_s14, 0 }
  0x20   : > { %s246_s24 = scalar_lea.vmem (!%p238_p10), [#allocation3], %s1270_s10 }
  0x21   : > { %v348_v33 = vsub.s32 (!%p238_p10), 0, %v347_v32  ;;  %v352_v35 = vsub.s32 (!%p238_p10), 1, %v347_v32  ;;  %v356_v57 = vsub.s32 (!%p238_p10), 2, %v347_v32 }
  0x24   : > { %s1213_s30 = scalar_select %p280_p11, %s1126_s14, 1 }
  0x25   : > { %s1266_s9 = scalar_select %p333_p12, 1, 0 }
  0x26   : > { %s998_s4 = smul.u32 192, %s1213_s30 }
  0x27   : > { %s999_s11 = smul.u32 3, %s1213_s30  ;;  %s926_s27 = sshll.u32 %s1266_s9, 2 }
  0x28   : > { %s1221_s7 = scalar_lea.vmem %s1322_s1, %s998_s4  ;;  %s936_s18 = smul.u32 12, %s1266_s9 }
  0x29   : > { %v1044_v6 = vld [vmem:[%s1221_s7 + $0x4] ss:$12 sps:$4 sm:$0xff]   ;;  %v1046_v7 = vld [vmem:[%s1221_s7] ss:$12 sps:$4 sm:$0xff]   ;;  %v1047_v8 = vld [vmem:[%s1221_s7 + $0x1c] ss:$12 sps:$4 sm:$0xff]   ;;  %s288_s23 = scalar_lea.vmem %s1323_s2, %s999_s11  ;;  %s594_s29 = scalar_lea.vmem %s1287_s28, %s926_s27 [#allocation4] }
  0x2a   : > { %489 = vmatprep.subr.bf16.mxu0 %v1044_v6  ;;  %v1049_v9 = vld [vmem:[%s1221_s7 + $0x18] ss:$12 sps:$4 sm:$0xff]   ;;  %v1050_v10 = vld [vmem:[%s1221_s7 + $0x34] ss:$12 sps:$4 sm:$0xff]   ;;  %v1052_v11 = vld [vmem:[%s1221_s7 + $0x30] ss:$12 sps:$4 sm:$0xff]   ;;  %s1280_s25 = scalar_lea.vmem %s246_s24, %s936_s18 [#allocation3] }
  0x2b   : > { %490 = vmatpush1.bf16.msra.mxu0 %v1046_v7  ;;  %v1053_v12 = vld [vmem:[%s1221_s7 + $0x4c] ss:$12 sps:$4 sm:$0xff]   ;;  %v1065_v13 = vld [vmem:[%s1221_s7 + $0x8] ss:$12 sps:$4 sm:$0xff]   ;;  %v1056_v15 = vld [vmem:[%s1221_s7 + $0x64] ss:$12 sps:$4 sm:$0xff]  }
  0x2c   : > { %491 = vmatprep.subr.bf16.mxu0 %v1047_v8  ;;  %v1055_v14 = vld [vmem:[%s1221_s7 + $0x48] ss:$12 sps:$4 sm:$0xff]   ;;  %957 = vmatpush3.bf16.msra.mxu1 %v1065_v13  ;;  %v1069_v16 = vld [vmem:[%s1221_s7 + $0x20] ss:$12 sps:$4 sm:$0xff]   ;;  %v1070_v19 = vld [vmem:[%s1221_s7 + $0x38] ss:$12 sps:$4 sm:$0xff]  }
  0x2d   : > { %958 = vmatprep.subr.bf16.mxu1 %v1136_v4  ;;  %v1058_v17 = vld [vmem:[%s1221_s7 + $0x60] ss:$12 sps:$4 sm:$0xff]   ;;  %v1059_v18 = vld [vmem:[%s1221_s7 + $0x7c] ss:$12 sps:$4 sm:$0xff]   ;;  %v1061_v20 = vld [vmem:[%s1221_s7 + $0x78] ss:$12 sps:$4 sm:$0xff]  }
  0x2e   : > { %v1062_v21 = vld [vmem:[%s1221_s7 + $0x94] ss:$12 sps:$4 sm:$0xff]   ;;  %v1071_v22 = vld [vmem:[%s1221_s7 + $0x50] ss:$12 sps:$4 sm:$0xff]   ;;  %v1066_v24 = vld [vmem:[%s1221_s7 + $0xac] ss:$12 sps:$4 sm:$0xff]  }
  0x2f   : > { %492 = vmatpush1.bf16.msra.mxu0 %v1049_v9  ;;  %v1064_v23 = vld [vmem:[%s1221_s7 + $0x90] ss:$12 sps:$4 sm:$0xff]   ;;  %v1072_v25 = vld [vmem:[%s1221_s7 + $0x68] ss:$12 sps:$4 sm:$0xff]   ;;  %v1073_v27 = vld [vmem:[%s1221_s7 + $0x80] ss:$12 sps:$4 sm:$0xff]  }
  0x30   : > { %493 = vmatprep.subr.bf16.mxu0 %v1050_v10  ;;  %959 = vmatpush3.bf16.msra.mxu1 %v1069_v16  ;;  %v1068_v26 = vld [vmem:[%s1221_s7 + $0xa8] ss:$12 sps:$4 sm:$0xff]   ;;  %v1074_v28 = vld [vmem:[%s1221_s7 + $0x98] ss:$12 sps:$4 sm:$0xff]   ;;  %v1075_v30 = vld [vmem:[%s1221_s7 + $0xb0] ss:$12 sps:$4 sm:$0xff]  }
  0x31   : > { %960 = vmatprep.subr.bf16.mxu1 %v1136_v4  ;;  %v331_v34 = vld [vmem:[%s288_s23] sm:$0x7]  ;;  %v339_v60 = vld [vmem:[%s1280_s25 + $0x8] sm:$0xf]  ;;  %s1291_s30 = scalar_select %p332_p13, 1, 0 }
  0x32   : > { %v338_v36 = vld [vmem:[%s1280_s25] sm:$0xff]  ;;  %v349_v37 = vrot.slane %v331_v34, %v348_v33  ;;  %v353_v38 = vrot.slane %v331_v34, %v352_v35  ;;  %v357_v58 = vrot.slane %v331_v34, %v356_v57  ;;  %v342_v63 = vunpack.c.l.bf16 %v339_v60  ;;  %s932_s7 = sshll.u32 (%p1195_p6), %s1126_s14, 2 }
  0x33   : > { %494 = vmatpush1.bf16.msra.mxu0 %v1052_v11  ;;  %v340_v39 = vunpack.c.l.bf16 %v338_v36  ;;  %v341_v43 = vunpack.c.h.bf16 %v338_v36  ;;  %s937_s12 = smul.u32 12, %s1291_s30  ;;  %s930_s5 = sshll.u32 %s1291_s30, 2 }
  0x34   : > { %495 = vmatprep.subr.bf16.mxu0 %v1053_v12  ;;  %961 = vmatpush3.bf16.msra.mxu1 %v1070_v19  ;;  %s712_s6 = scalar_lea.vmem %s1287_s28, %s930_s5 [#allocation4]  ;;  %s730_s10 = scalar_lea.vmem (%p1195_p6), %s1324_s3, %s932_s7 }
  0x35   : > { %962 = vmatprep.subr.bf16.mxu1 %v1136_v4  ;;  %s599_s4 = scalar_lea.vmem %s246_s24, %s937_s12 [#allocation3] }
  0x37   : > { %496 = vmatpush1.bf16.msra.mxu0 %v1055_v14 }
  0x38   : > { %497 = vmatprep.subr.bf16.mxu0 %v1056_v15  ;;  %963 = vmatpush3.bf16.msra.mxu1 %v1071_v22 }
  0x39   : > { %964 = vmatprep.subr.bf16.mxu1 %v1136_v4 }
  0x3b   : > { %498 = vmatpush1.bf16.msra.mxu0 %v1058_v17 }
  0x3c   : > { %499 = vmatprep.subr.bf16.mxu0 %v1059_v18  ;;  %965 = vmatpush3.bf16.msra.mxu1 %v1072_v25 }
  0x3d   : > { %966 = vmatprep.subr.bf16.mxu1 %v1136_v4 }
  0x3f   : > { %500 = vmatpush1.bf16.msra.mxu0 %v1061_v20 }
  0x40   : > { %501 = vmatprep.subr.bf16.mxu0 %v1062_v21  ;;  %967 = vmatpush3.bf16.msra.mxu1 %v1073_v27 }
  0x41   : > { %968 = vmatprep.subr.bf16.mxu1 %v1136_v4 }
  0x43   : > { %502 = vmatpush1.bf16.msra.mxu0 %v1064_v23 }
  0x44   : > { %503 = vmatprep.subr.bf16.mxu0 %v1066_v24  ;;  %969 = vmatpush3.bf16.msra.mxu1 %v1074_v28 }
  0x45   : > { %970 = vmatprep.subr.bf16.mxu1 %v1136_v4 }
  0x47   : > { %504 = vmatpush1.bf16.msra.mxu0 %v1068_v26 }
  0x48   : > { %607 = vmatprep.subr.bf16.mxu0 %v1044_v6  ;;  %971 = vmatpush3.bf16.msra.mxu1 %v1075_v30 }
  0x49   : > { %976 = vmatprep.subr.bf16.mxu1 %v1136_v4 }
  0x4a   : > { %522 = vmatmul.mubr.bf16.vlgmr.msra.gmra.mrb[0].mxu0 %v1139_v29 }
  0x4b   : > { %608 = vmatpush1.bf16.msra.mxu0 %v1046_v7  ;;  %639 = vmatprep.mubr.bf16.mxu0 %v1137_v5 }
  0x4c   : > { %609 = vmatprep.subr.bf16.mxu0 %v1047_v8  ;;  %973 = vmatmul.mubr.bf16.vlgmr.msra.gmra.mrb[0].mxu1 %v1139_v29 }
  0x4d   : > { %977 = vmatpush3.bf16.msra.mxu1 %v1065_v13  ;;  %992 = vmatprep.mubr.msk.bf16.mxu1 %vm1138_vm0, %v1136_v4 }
  0x4e   : > { %978 = vmatprep.subr.bf16.mxu1 %v1136_v4 }
  0x4f   : > { %610 = vmatpush1.bf16.msra.mxu0 %v1049_v9 }
  0x50   : > { %611 = vmatprep.subr.bf16.mxu0 %v1050_v10  ;;  %v600_v10 = vld [vmem:[%s599_s4] sm:$0xff] }
  0x51   : > { %979 = vmatpush3.bf16.msra.mxu1 %v1069_v16 }
  0x52   : > { %980 = vmatprep.subr.bf16.mxu1 %v1136_v4 }
  0x53   : > { %612 = vmatpush1.bf16.msra.mxu0 %v1052_v11  ;;  %v602_v11 = vunpack.c.l.bf16 %v600_v10 }
  0x54   : > { %613 = vmatprep.subr.bf16.mxu0 %v1053_v12 }
  0x55   : > { %981 = vmatpush3.bf16.msra.mxu1 %v1070_v19 }
  0x56   : > { %982 = vmatprep.subr.bf16.mxu1 %v1136_v4 }
  0x57   : > { %614 = vmatpush1.bf16.msra.mxu0 %v1055_v14 }
  0x58   : > { %615 = vmatprep.subr.bf16.mxu0 %v1056_v15 }
  0x59   : > { %983 = vmatpush3.bf16.msra.mxu1 %v1071_v22 }
  0x5a   : > { %984 = vmatprep.subr.bf16.mxu1 %v1136_v4 }
  0x5b   : > { %616 = vmatpush1.bf16.msra.mxu0 %v1058_v17  ;;  %v603_v17 = vunpack.c.h.bf16 %v600_v10 }
  0x5c   : > { %617 = vmatprep.subr.bf16.mxu0 %v1059_v18 }
  0x5d   : > { %985 = vmatpush3.bf16.msra.mxu1 %v1072_v25 }
  0x5e   : > { %986 = vmatprep.subr.bf16.mxu1 %v1136_v4 }
  0x5f   : > { %618 = vmatpush1.bf16.msra.mxu0 %v1061_v20 }
  0x60   : > { %619 = vmatprep.subr.bf16.mxu0 %v1062_v21 }
  0x61   : > { %987 = vmatpush3.bf16.msra.mxu1 %v1073_v27 }
  0x62   : > { %988 = vmatprep.subr.bf16.mxu1 %v1136_v4 }
  0x63   : > { %620 = vmatpush1.bf16.msra.mxu0 %v1064_v23 }
  0x64   : > { %621 = vmatprep.subr.bf16.mxu0 %v1066_v24 }
  0x65   : > { %989 = vmatpush3.bf16.msra.mxu1 %v1074_v28 }
  0x66   : > { %990 = vmatprep.subr.bf16.mxu1 %v1136_v4 }
  0x67   : > { %622 = vmatpush1.bf16.msra.mxu0 %v1068_v26 }
  0x69   : > { %991 = vmatpush3.bf16.msra.mxu1 %v1075_v30  ;;  %v601_v30 = vld [vmem:[%s599_s4 + $0x8] sm:$0xf] }
  0x6a   : > { %v604_v32 = vunpack.c.l.bf16 %v601_v30 }
 0x11d   : > { %v523_v40 = vpop.f32.mrb[0].mxu0 }
 0x11e   : > { %v524_v41 = vadd.f32 %v523_v40, %v349_v37  ;;  %v525_v42 = vpop.f32.mrb[1].mxu0 }
 0x11f   : > { %v526_v44 = vadd.f32 %v525_v42, %v353_v38  ;;  %v527_v45 = vpop.f32.mrb[2].mxu0  ;;  %v564_v50 = vpop.f32.mrb[0].mxu1 }
 0x120   : > { %v570_v46 = vadd.f32 %v524_v41, %v340_v39  ;;  %v528_v47 = vpop.f32.mrb[3].mxu0  ;;  %v974_v52 = vpop.f32.mrb[1].mxu1  ;;  %v565_v62 = vadd.f32 %v564_v50, %v357_v58 }
 0x121   : > { %v577_v49 = vadd.f32 %v526_v44, %v341_v43  ;;  %v567_v53 = vpop.f32.mrb[2].mxu1 }
 0x122   : > { %v924_v48 = vmul.f32 -1.442695, %v570_v46  ;;  %v975_v54 = vpop.f32.mrb[3].mxu1 }
 0x123   : > { %v925_v51 = vmul.f32 -1.442695, %v577_v49 }
 0x124   : > { %1076 = vpow2.f32 %v924_v48 }
 0x125   : > { %1078 = vpow2.f32 %v925_v51 }
 0x12e   : > { %v1077_v55 = vpop.eup %1076 }
 0x12f   : > { %v574_v56 = vadd.f32 1.0, %v1077_v55  ;;  %v1079_v59 = vpop.eup %1078 }
 0x130   : > { %v581_v61 = vadd.f32 1.0, %v1079_v59 }
 0x131   : > { %1080 = vrcp.f32 %v574_v56 }
 0x132   : > { %1082 = vrcp.f32 %v581_v61 }
 0x13b   : > { %v1081_v0 = vpop.eup %1080 }
 0x13c   : > { %v584_v1 = vmul.f32 %v1081_v0, %v565_v62  ;;  %v1083_v3 = vpop.eup %1082 }
 0x13d   : > { %v587_v4 = vsub.f32 1.0, %v1083_v3  ;;  %v589_v7 = vmul.f32 0.0, %v1083_v3 }
 0x13e   : > { %v585_v2 = vadd.f32 %v584_v1, %v342_v63 }
 0x140   : > { %1084 = vtanh.f32 %v585_v2 }
 0x14a   : > { %v1085_v5 = vpop.eup %1084 }
 0x14b   : > { %v588_v6 = vmul.f32 %v1085_v5, %v587_v4 }
 0x14d   : > { %v590_v8 = vadd.f32 %v589_v7, %v588_v6 }
 0x14f   : > { %v592_v9 = vpack.c.bf16 %v590_v8, %v590_v8 }
 0x151   : > { %595 = vst [vmem:[%s594_s29] sm:$0xf] %v592_v9  ;;  %640 = vmatmul.mubr.bf16.vlgmr.msra.gmra.mrb[4].mxu0 %v592_v9  ;;  %993 = vmatmul.mubr.bf16.vlgmr.msra.gmra.mrb[4].mxu1 %v592_v9 }
 0x224   : > { %v641_v12 = vpop.f32.mrb[4].mxu0  ;;  %v682_v13 = vpop.f32.mrb[4].mxu1 }
 0x225   : > { %v642_v14 = vadd.f32 %v641_v12, %v349_v37  ;;  %v643_v15 = vpop.f32.mrb[5].mxu0  ;;  %v994_v16 = vpop.f32.mrb[5].mxu1  ;;  %v683_v33 = vadd.f32 %v682_v13, %v357_v58 }
 0x226   : > { %v644_v18 = vadd.f32 %v643_v15, %v353_v38  ;;  %v645_v19 = vpop.f32.mrb[6].mxu0  ;;  %v685_v20 = vpop.f32.mrb[6].mxu1 }
 0x227   : > { %v688_v21 = vadd.f32 %v642_v14, %v602_v11  ;;  %v646_v22 = vpop.f32.mrb[7].mxu0  ;;  %v995_v23 = vpop.f32.mrb[7].mxu1 }
 0x228   : > { %v695_v25 = vadd.f32 %v644_v18, %v603_v17 }
 0x229   : > { %v928_v24 = vmul.f32 -1.442695, %v688_v21 }
 0x22a   : > { %v929_v26 = vmul.f32 -1.442695, %v695_v25 }
 0x22b   : > { %1086 = vpow2.f32 %v928_v24 }
 0x22c   : > { %1088 = vpow2.f32 %v929_v26 }
 0x235   : > { %v1087_v27 = vpop.eup %1086 }
 0x236   : > { %v692_v28 = vadd.f32 1.0, %v1087_v27  ;;  %v1089_v29 = vpop.eup %1088 }
 0x237   : > { %v699_v31 = vadd.f32 1.0, %v1089_v29 }
 0x238   : > { %1090 = vrcp.f32 %v692_v28 }
 0x239   : > { %1092 = vrcp.f32 %v699_v31 }
 0x242   : > { %v1091_v34 = vpop.eup %1090 }
 0x243   : > { %v702_v35 = vmul.f32 %v1091_v34, %v683_v33  ;;  %v1093_v37 = vpop.eup %1092 }
 0x244   : > { %v705_v38 = vsub.f32 1.0, %v1093_v37  ;;  %v707_v41 = vmul.f32 %v1093_v37, %v590_v8 }
 0x245   : > { %v703_v36 = vadd.f32 %v702_v35, %v604_v32 }
 0x247   : > { %1094 = vtanh.f32 %v703_v36 }
 0x251   : > { %v1095_v39 = vpop.eup %1094 }
 0x252   : > { %v706_v40 = vmul.f32 %v1095_v39, %v705_v38  ;;  %720 = sbr.rel (!%p1195_p6) target bundleno = 609 (0x261), region = 66 }
 0x254   : > { %v708_v42 = vadd.f32 %v707_v41, %v706_v40 }
 0x256   : > { %v710_v43 = vpack.c.bf16 %v708_v42, %v708_v42 }
 0x258   : > { %713 = vst [vmem:[%s712_s6] sm:$0xf] %v710_v43 }
 0x25f   : > { %v746_v44 = vld [vmem:[%s1287_s28] sm:$0xf]  ;;  %v748_v45 = vld [vmem:[%s1287_s28 + $0x4] sm:$0xf] }
 0x260   : > { %747 = vst [vmem:[%s730_s10] sm:$0xf] %v746_v44  ;;  %749 = vst [vmem:[%s730_s10 + $0x8] sm:$0xf] %v748_v45 }
 0x261 PF: > { %s13_s16 = sadd.s32 1, %s1134_s16   ;;  %s1326_s12 = smov %s1122_s13 }
 0x262   : > { %p10_p0 = scmp.ge.s32.totalorder %s13_s16, 4   ;;  %s1327_s13 = smov %s1200_s22 }
 0x263   : > { %s1328_s14 = smov %s1130_s15  ;;  %s1329_s15 = smov %s1331_s17 }
 0x264   :  { %12 = sbr.rel (!%p10_p0) target bundleno = 3 (0x3), region = 154 }

// kernel: capsule_main_forward.3
= control target key start
LH: loop header
LB: loop body
LE: loop exit
PB: predicated region body
PF: predicated region fallthrough
CT: control target
= control target key end

     0   :  { %v1639_v1 = vmov 0   ;;  %s2135_s1 = inlined_call_operand.vmem [shape: bf16[384,768], index: 1, kind: input, shape index: {}]   ;;  %s2136_s0 = inlined_call_operand.vmem [shape: bf16[16,384], index: 0, kind: input, shape index: {}]   ;;  %s2137_s2 = inlined_call_operand.vmem [shape: f32[1,768], index: 2, kind: input, shape index: {}]   ;;  %s2138_s3 = inlined_call_operand.vmem [shape: bf16[16,768], index: 3, kind: output, shape index: {}]  }
   0x1   :  { %v1419_v0 = vld [vmem:[%s2135_s1 + $0x4] ss:$24 sps:$4 sm:$0xff]   ;;  %1006 = vmatprep.mubr.bf16.mxu0 %v1639_v1  ;;  %v1423_v3 = vld [vmem:[%s2135_s1] ss:$24 sps:$4 sm:$0xff]   ;;  %v1425_v5 = vld [vmem:[%s2135_s1 + $0x34] ss:$24 sps:$4 sm:$0xff]  }
   0x2   :  { %v1421_v2 = vld [vmem:[%s2135_s1 + $0x304] ss:$24 sps:$4 sm:$0xff]   ;;  %931 = vmatprep.subr.bf16.mxu1 %v1419_v0  ;;  %v1424_v4 = vld [vmem:[%s2135_s1 + $0x300] ss:$24 sps:$4 sm:$0xff]   ;;  %v1427_v6 = vld [vmem:[%s2135_s1 + $0x334] ss:$24 sps:$4 sm:$0xff]  }
   0x3   :  { %974 = vmatprep.subr.bf16.mxu0 %v1421_v2  ;;  %932 = vmatpush1.bf16.msra.mxu1 %v1423_v3  ;;  %v1429_v7 = vld [vmem:[%s2135_s1 + $0x30] ss:$24 sps:$4 sm:$0xff]   ;;  %v1431_v9 = vld [vmem:[%s2135_s1 + $0x64] ss:$24 sps:$4 sm:$0xff]   ;;  %v1435_v11 = vld [vmem:[%s2135_s1 + $0x60] ss:$24 sps:$4 sm:$0xff]  }
   0x4   :  { %975 = vmatpush1.bf16.msra.mxu0 %v1424_v4  ;;  %933 = vmatprep.subr.bf16.mxu1 %v1425_v5  ;;  %v1430_v8 = vld [vmem:[%s2135_s1 + $0x330] ss:$24 sps:$4 sm:$0xff]   ;;  %v1433_v10 = vld [vmem:[%s2135_s1 + $0x364] ss:$24 sps:$4 sm:$0xff]   ;;  %v1436_v12 = vld [vmem:[%s2135_s1 + $0x360] ss:$24 sps:$4 sm:$0xff]  }
   0x5   :  { %976 = vmatprep.subr.bf16.mxu0 %v1427_v6  ;;  %v1437_v13 = vld [vmem:[%s2135_s1 + $0x94] ss:$24 sps:$4 sm:$0xff]   ;;  %v1441_v15 = vld [vmem:[%s2135_s1 + $0x90] ss:$24 sps:$4 sm:$0xff]   ;;  %v1443_v17 = vld [vmem:[%s2135_s1 + $0xc4] ss:$24 sps:$4 sm:$0xff]  }
   0x6   :  { %v1439_v14 = vld [vmem:[%s2135_s1 + $0x394] ss:$24 sps:$4 sm:$0xff]   ;;  %v1442_v16 = vld [vmem:[%s2135_s1 + $0x390] ss:$24 sps:$4 sm:$0xff]   ;;  %v1445_v18 = vld [vmem:[%s2135_s1 + $0x3c4] ss:$24 sps:$4 sm:$0xff]  }
   0x7   :  { %934 = vmatpush1.bf16.msra.mxu1 %v1429_v7  ;;  %v1447_v19 = vld [vmem:[%s2135_s1 + $0xc0] ss:$24 sps:$4 sm:$0xff]   ;;  %v1449_v21 = vld [vmem:[%s2135_s1 + $0xf4] ss:$24 sps:$4 sm:$0xff]   ;;  %v1453_v23 = vld [vmem:[%s2135_s1 + $0xf0] ss:$24 sps:$4 sm:$0xff]  }
   0x8   :  { %977 = vmatpush1.bf16.msra.mxu0 %v1430_v8  ;;  %935 = vmatprep.subr.bf16.mxu1 %v1431_v9  ;;  %v1448_v20 = vld [vmem:[%s2135_s1 + $0x3c0] ss:$24 sps:$4 sm:$0xff]   ;;  %v1451_v22 = vld [vmem:[%s2135_s1 + $0x3f4] ss:$24 sps:$4 sm:$0xff]   ;;  %v1454_v24 = vld [vmem:[%s2135_s1 + $0x3f0] ss:$24 sps:$4 sm:$0xff]  }
   0x9   :  { %978 = vmatprep.subr.bf16.mxu0 %v1433_v10  ;;  %v1455_v25 = vld [vmem:[%s2135_s1 + $0x124] ss:$24 sps:$4 sm:$0xff]   ;;  %v1459_v27 = vld [vmem:[%s2135_s1 + $0x120] ss:$24 sps:$4 sm:$0xff]   ;;  %v1461_v29 = vld [vmem:[%s2135_s1 + $0x154] ss:$24 sps:$4 sm:$0xff]  }
   0xa   :  { %v1457_v26 = vld [vmem:[%s2135_s1 + $0x424] ss:$24 sps:$4 sm:$0xff]   ;;  %v1460_v28 = vld [vmem:[%s2135_s1 + $0x420] ss:$24 sps:$4 sm:$0xff]   ;;  %v1463_v30 = vld [vmem:[%s2135_s1 + $0x454] ss:$24 sps:$4 sm:$0xff]  }
   0xb   :  { %936 = vmatpush1.bf16.msra.mxu1 %v1435_v11  ;;  %v1465_v31 = vld [vmem:[%s2135_s1 + $0x150] ss:$24 sps:$4 sm:$0xff]   ;;  %v1467_v33 = vld [vmem:[%s2135_s1 + $0x184] ss:$24 sps:$4 sm:$0xff]   ;;  %v1471_v34 = vld [vmem:[%s2135_s1 + $0x14] ss:$24 sps:$4 sm:$0xff]  }
   0xc   :  { %979 = vmatpush1.bf16.msra.mxu0 %v1436_v12  ;;  %937 = vmatprep.subr.bf16.mxu1 %v1437_v13  ;;  %v1466_v32 = vld [vmem:[%s2135_s1 + $0x450] ss:$24 sps:$4 sm:$0xff]   ;;  %v1472_v37 = vld [vmem:[%s2135_s1 + $0x180] ss:$24 sps:$4 sm:$0xff]   ;;  %v1474_v38 = vld [vmem:[%s2135_s1 + $0x1b4] ss:$24 sps:$4 sm:$0xff]  }
   0xd   :  { %980 = vmatprep.subr.bf16.mxu0 %v1439_v14  ;;  %v1766_v35 = vld [vmem:[%s2136_s0 + $0x8] ss:$12 sps:$4 sm:$0xff]   ;;  %v1478_v39 = vld [vmem:[%s2135_s1 + $0x44] ss:$24 sps:$4 sm:$0xff]   ;;  %v1476_v40 = vld [vmem:[%s2135_s1 + $0x40] ss:$24 sps:$4 sm:$0xff]  }
   0xe   :  { %v1469_v36 = vld [vmem:[%s2135_s1 + $0x10] ss:$24 sps:$4 sm:$0xff]   ;;  %v1480_v42 = vld [vmem:[%s2135_s1 + $0x1e4] ss:$24 sps:$4 sm:$0xff]   ;;  %v1484_v43 = vld [vmem:[%s2135_s1 + $0x74] ss:$24 sps:$4 sm:$0xff]  }
   0xf   :  { %938 = vmatpush1.bf16.msra.mxu1 %v1441_v15  ;;  %v1479_v41 = vld [vmem:[%s2135_s1 + $0x1b0] ss:$24 sps:$4 sm:$0xff]   ;;  %v1485_v45 = vld [vmem:[%s2135_s1 + $0x1e0] ss:$24 sps:$4 sm:$0xff]   ;;  %v1486_v46 = vld [vmem:[%s2135_s1 + $0x214] ss:$24 sps:$4 sm:$0xff]  }
  0x10   :  { %981 = vmatpush1.bf16.msra.mxu0 %v1442_v16  ;;  %939 = vmatprep.subr.bf16.mxu1 %v1443_v17  ;;  %v1482_v44 = vld [vmem:[%s2135_s1 + $0x70] ss:$24 sps:$4 sm:$0xff]   ;;  %v1490_v47 = vld [vmem:[%s2135_s1 + $0xa4] ss:$24 sps:$4 sm:$0xff]   ;;  %v1488_v48 = vld [vmem:[%s2135_s1 + $0xa0] ss:$24 sps:$4 sm:$0xff]  }
  0x11   :  { %982 = vmatprep.subr.bf16.mxu0 %v1445_v18  ;;  %v1491_v49 = vld [vmem:[%s2135_s1 + $0x210] ss:$24 sps:$4 sm:$0xff]   ;;  %v1492_v50 = vld [vmem:[%s2135_s1 + $0x244] ss:$24 sps:$4 sm:$0xff]   ;;  %v1496_v52 = vld [vmem:[%s2135_s1 + $0xd4] ss:$24 sps:$4 sm:$0xff]  }
  0x12   :  { %v1516_v51 = vld [vmem:[%s2136_s0 + $0x4] ss:$12 sps:$4 sm:$0xff]   ;;  %v1497_v54 = vld [vmem:[%s2135_s1 + $0x240] ss:$24 sps:$4 sm:$0xff]   ;;  %v1498_v55 = vld [vmem:[%s2135_s1 + $0x274] ss:$24 sps:$4 sm:$0xff]  }
  0x13   :  { %940 = vmatpush1.bf16.msra.mxu1 %v1447_v19  ;;  %963 = vmatprep.mubr.bf16.mxu1 %v1516_v51  ;;  %v1494_v53 = vld [vmem:[%s2135_s1 + $0xd0] ss:$24 sps:$4 sm:$0xff]   ;;  %v1502_v56 = vld [vmem:[%s2135_s1 + $0x104] ss:$24 sps:$4 sm:$0xff]   ;;  %v1500_v57 = vld [vmem:[%s2135_s1 + $0x100] ss:$24 sps:$4 sm:$0xff]  }
  0x14   :  { %983 = vmatpush1.bf16.msra.mxu0 %v1448_v20  ;;  %941 = vmatprep.subr.bf16.mxu1 %v1449_v21  ;;  %v1503_v58 = vld [vmem:[%s2135_s1 + $0x270] ss:$24 sps:$4 sm:$0xff]   ;;  %v1504_v59 = vld [vmem:[%s2135_s1 + $0x2a4] ss:$24 sps:$4 sm:$0xff]   ;;  %v1508_v60 = vld [vmem:[%s2135_s1 + $0x134] ss:$24 sps:$4 sm:$0xff]  }
  0x15   :  { %984 = vmatprep.subr.bf16.mxu0 %v1451_v22  ;;  %v1506_v61 = vld [vmem:[%s2135_s1 + $0x130] ss:$24 sps:$4 sm:$0xff]   ;;  %v1509_v62 = vld [vmem:[%s2135_s1 + $0x2a0] ss:$24 sps:$4 sm:$0xff]   ;;  %v1510_v63 = vld [vmem:[%s2135_s1 + $0x2d4] ss:$24 sps:$4 sm:$0xff]  }
  0x16   :  { %v1514_v0 = vld [vmem:[%s2135_s1 + $0x164] ss:$24 sps:$4 sm:$0xff]   ;;  %v1512_v2 = vld [vmem:[%s2135_s1 + $0x160] ss:$24 sps:$4 sm:$0xff]   ;;  %v1515_v3 = vld [vmem:[%s2135_s1 + $0x2d0] ss:$24 sps:$4 sm:$0xff]  }
  0x17   :  { %942 = vmatpush1.bf16.msra.mxu1 %v1453_v23  ;;  %v1521_v4 = vld [vmem:[%s2135_s1 + $0xc] ss:$24 sps:$4 sm:$0xff]   ;;  %v1519_v7 = vld [vmem:[%s2135_s1 + $0x8] ss:$24 sps:$4 sm:$0xff]   ;;  %v1527_v9 = vld [vmem:[%s2135_s1 + $0x3c] ss:$24 sps:$4 sm:$0xff]  }
  0x18   :  { %985 = vmatpush1.bf16.msra.mxu0 %v1454_v24  ;;  %943 = vmatprep.subr.bf16.mxu1 %v1455_v25  ;;  %v1524_v5 = vld [vmem:[%s2135_s1 + $0x194] ss:$24 sps:$4 sm:$0xff]   ;;  %v1522_v8 = vld [vmem:[%s2135_s1 + $0x190] ss:$24 sps:$4 sm:$0xff]   ;;  %v1530_v10 = vld [vmem:[%s2135_s1 + $0x1c4] ss:$24 sps:$4 sm:$0xff]  }
  0x19   :  { %986 = vmatprep.subr.bf16.mxu0 %v1457_v26  ;;  %v1871_v6 = vld [vmem:[%s2136_s0] ss:$12 sps:$4 sm:$0xff]   ;;  %v1525_v11 = vld [vmem:[%s2135_s1 + $0x38] ss:$24 sps:$4 sm:$0xff]   ;;  %v1539_v17 = vld [vmem:[%s2135_s1 + $0x9c] ss:$24 sps:$4 sm:$0xff]  }
  0x1a   :  { %v1528_v12 = vld [vmem:[%s2135_s1 + $0x1c0] ss:$24 sps:$4 sm:$0xff]   ;;  %v1533_v13 = vld [vmem:[%s2135_s1 + $0x6c] ss:$24 sps:$4 sm:$0xff]   ;;  %v1534_v16 = vld [vmem:[%s2135_s1 + $0x1f0] ss:$24 sps:$4 sm:$0xff]  }
  0x1b   :  { %944 = vmatpush1.bf16.msra.mxu1 %v1459_v27  ;;  %v1536_v14 = vld [vmem:[%s2135_s1 + $0x1f4] ss:$24 sps:$4 sm:$0xff]   ;;  %v1531_v15 = vld [vmem:[%s2135_s1 + $0x68] ss:$24 sps:$4 sm:$0xff]   ;;  %v1542_v18 = vld [vmem:[%s2135_s1 + $0x224] ss:$24 sps:$4 sm:$0xff]  }
  0x1c   :  { %987 = vmatpush1.bf16.msra.mxu0 %v1460_v28  ;;  %945 = vmatprep.subr.bf16.mxu1 %v1461_v29  ;;  %v1537_v19 = vld [vmem:[%s2135_s1 + $0x98] ss:$24 sps:$4 sm:$0xff]   ;;  %v1545_v21 = vld [vmem:[%s2135_s1 + $0xcc] ss:$24 sps:$4 sm:$0xff]   ;;  %v1543_v23 = vld [vmem:[%s2135_s1 + $0xc8] ss:$24 sps:$4 sm:$0xff]  }
  0x1d   :  { %988 = vmatprep.subr.bf16.mxu0 %v1463_v30  ;;  %v1540_v20 = vld [vmem:[%s2135_s1 + $0x220] ss:$24 sps:$4 sm:$0xff]   ;;  %v1548_v22 = vld [vmem:[%s2135_s1 + $0x254] ss:$24 sps:$4 sm:$0xff]   ;;  %v1546_v24 = vld [vmem:[%s2135_s1 + $0x250] ss:$24 sps:$4 sm:$0xff]  }
  0x1e   :  { %v1551_v25 = vld [vmem:[%s2135_s1 + $0xfc] ss:$24 sps:$4 sm:$0xff]   ;;  %v1549_v27 = vld [vmem:[%s2135_s1 + $0xf8] ss:$24 sps:$4 sm:$0xff]   ;;  %v1557_v29 = vld [vmem:[%s2135_s1 + $0x12c] ss:$24 sps:$4 sm:$0xff]  }
  0x1f   :  { %946 = vmatpush1.bf16.msra.mxu1 %v1465_v31  ;;  %v1554_v26 = vld [vmem:[%s2135_s1 + $0x284] ss:$24 sps:$4 sm:$0xff]   ;;  %v1552_v28 = vld [vmem:[%s2135_s1 + $0x280] ss:$24 sps:$4 sm:$0xff]   ;;  %v1560_v30 = vld [vmem:[%s2135_s1 + $0x2b4] ss:$24 sps:$4 sm:$0xff]  }
  0x20   :  { %989 = vmatpush1.bf16.msra.mxu0 %v1466_v32  ;;  %947 = vmatprep.subr.bf16.mxu1 %v1467_v33  ;;  %v1555_v31 = vld [vmem:[%s2135_s1 + $0x128] ss:$24 sps:$4 sm:$0xff]   ;;  %v1563_v33 = vld [vmem:[%s2135_s1 + $0x15c] ss:$24 sps:$4 sm:$0xff]  }
  0x21   :  { %1103 = vmatprep.subr.bf16.mxu0 %v1471_v34  ;;  %v1558_v32 = vld [vmem:[%s2135_s1 + $0x2b0] ss:$24 sps:$4 sm:$0xff]   ;;  %v1566_v34 = vld [vmem:[%s2135_s1 + $0x2e4] ss:$24 sps:$4 sm:$0xff]  }
  0x23   :  { %1007 = vmatmul.mubr.bf16.vlgmr.msra.gmra.mrb[0].mxu0 %v1766_v35  ;;  %948 = vmatpush1.bf16.msra.mxu1 %v1472_v37  ;;  %v1564_v37 = vld [vmem:[%s2135_s1 + $0x2e0] ss:$24 sps:$4 sm:$0xff]  }
  0x24   :  { %1104 = vmatpush1.bf16.msra.mxu0 %v1469_v36  ;;  %949 = vmatprep.subr.bf16.mxu1 %v1474_v38  ;;  %v1561_v36 = vld [vmem:[%s2135_s1 + $0x158] ss:$24 sps:$4 sm:$0xff]   ;;  %v1569_v38 = vld [vmem:[%s2135_s1 + $0x18c] ss:$24 sps:$4 sm:$0xff]  }
  0x25   :  { %1105 = vmatprep.subr.bf16.mxu0 %v1478_v39  ;;  %1135 = vmatprep.mubr.bf16.mxu0 %v1516_v51  ;;  %v1572_v39 = vld [vmem:[%s2135_s1 + $0x314] ss:$24 sps:$4 sm:$0xff]  }
  0x27   :  { %950 = vmatpush1.bf16.msra.mxu1 %v1479_v41  ;;  %v1570_v41 = vld [vmem:[%s2135_s1 + $0x310] ss:$24 sps:$4 sm:$0xff]  }
  0x28   :  { %1106 = vmatpush1.bf16.msra.mxu0 %v1476_v40  ;;  %951 = vmatprep.subr.bf16.mxu1 %v1480_v42  ;;  %v1567_v40 = vld [vmem:[%s2135_s1 + $0x188] ss:$24 sps:$4 sm:$0xff]   ;;  %v1575_v42 = vld [vmem:[%s2135_s1 + $0x1bc] ss:$24 sps:$4 sm:$0xff]  }
  0x29   :  { %1107 = vmatprep.subr.bf16.mxu0 %v1484_v43  ;;  %v1578_v43 = vld [vmem:[%s2135_s1 + $0x344] ss:$24 sps:$4 sm:$0xff]  }
  0x2b   :  { %952 = vmatpush1.bf16.msra.mxu1 %v1485_v45  ;;  %v1576_v45 = vld [vmem:[%s2135_s1 + $0x340] ss:$24 sps:$4 sm:$0xff]  }
  0x2c   :  { %1108 = vmatpush1.bf16.msra.mxu0 %v1482_v44  ;;  %953 = vmatprep.subr.bf16.mxu1 %v1486_v46  ;;  %v1573_v44 = vld [vmem:[%s2135_s1 + $0x1b8] ss:$24 sps:$4 sm:$0xff]   ;;  %v1581_v46 = vld [vmem:[%s2135_s1 + $0x1ec] ss:$24 sps:$4 sm:$0xff]  }
  0x2d   :  { %1109 = vmatprep.subr.bf16.mxu0 %v1490_v47  ;;  %v1584_v47 = vld [vmem:[%s2135_s1 + $0x374] ss:$24 sps:$4 sm:$0xff]  }
  0x2f   :  { %954 = vmatpush1.bf16.msra.mxu1 %v1491_v49  ;;  %v1582_v49 = vld [vmem:[%s2135_s1 + $0x370] ss:$24 sps:$4 sm:$0xff]  }
  0x30   :  { %1110 = vmatpush1.bf16.msra.mxu0 %v1488_v48  ;;  %955 = vmatprep.subr.bf16.mxu1 %v1492_v50  ;;  %v1579_v48 = vld [vmem:[%s2135_s1 + $0x1e8] ss:$24 sps:$4 sm:$0xff]   ;;  %v1587_v50 = vld [vmem:[%s2135_s1 + $0x21c] ss:$24 sps:$4 sm:$0xff]  }
  0x31   :  { %1111 = vmatprep.subr.bf16.mxu0 %v1496_v52  ;;  %v1585_v52 = vld [vmem:[%s2135_s1 + $0x218] ss:$24 sps:$4 sm:$0xff]  }
  0x33   :  { %956 = vmatpush1.bf16.msra.mxu1 %v1497_v54  ;;  %v1593_v54 = vld [vmem:[%s2135_s1 + $0x24c] ss:$24 sps:$4 sm:$0xff]  }
  0x34   :  { %1112 = vmatpush1.bf16.msra.mxu0 %v1494_v53  ;;  %957 = vmatprep.subr.bf16.mxu1 %v1498_v55  ;;  %v1588_v53 = vld [vmem:[%s2135_s1 + $0x3a0] ss:$24 sps:$4 sm:$0xff]   ;;  %v1596_v55 = vld [vmem:[%s2135_s1 + $0x3d4] ss:$24 sps:$4 sm:$0xff]  }
  0x35   :  { %1113 = vmatprep.subr.bf16.mxu0 %v1502_v56  ;;  %v1591_v56 = vld [vmem:[%s2135_s1 + $0x248] ss:$24 sps:$4 sm:$0xff]  }
  0x37   :  { %958 = vmatpush1.bf16.msra.mxu1 %v1503_v58  ;;  %v1599_v58 = vld [vmem:[%s2135_s1 + $0x27c] ss:$24 sps:$4 sm:$0xff]  }
  0x38   :  { %1114 = vmatpush1.bf16.msra.mxu0 %v1500_v57  ;;  %959 = vmatprep.subr.bf16.mxu1 %v1504_v59  ;;  %v1594_v57 = vld [vmem:[%s2135_s1 + $0x3d0] ss:$24 sps:$4 sm:$0xff]   ;;  %v1602_v59 = vld [vmem:[%s2135_s1 + $0x404] ss:$24 sps:$4 sm:$0xff]  }
  0x39   :  { %1115 = vmatprep.subr.bf16.mxu0 %v1508_v60  ;;  %v1597_v60 = vld [vmem:[%s2135_s1 + $0x278] ss:$24 sps:$4 sm:$0xff]  }
  0x3b   :  { %960 = vmatpush1.bf16.msra.mxu1 %v1509_v62  ;;  %v1605_v62 = vld [vmem:[%s2135_s1 + $0x2ac] ss:$24 sps:$4 sm:$0xff]  }
  0x3c   :  { %1116 = vmatpush1.bf16.msra.mxu0 %v1506_v61  ;;  %961 = vmatprep.subr.bf16.mxu1 %v1510_v63  ;;  %v1600_v61 = vld [vmem:[%s2135_s1 + $0x400] ss:$24 sps:$4 sm:$0xff]   ;;  %v1608_v63 = vld [vmem:[%s2135_s1 + $0x434] ss:$24 sps:$4 sm:$0xff]  }
  0x3d   :  { %1117 = vmatprep.subr.bf16.mxu0 %v1514_v0  ;;  %v1603_v0 = vld [vmem:[%s2135_s1 + $0x2a8] ss:$24 sps:$4 sm:$0xff]  }
  0x3f   :  { %962 = vmatpush1.bf16.msra.mxu1 %v1515_v3  ;;  %v1611_v3 = vld [vmem:[%s2135_s1 + $0x2dc] ss:$24 sps:$4 sm:$0xff]  }
  0x40   :  { %1118 = vmatpush1.bf16.msra.mxu0 %v1512_v2  ;;  %1017 = vmatprep.subr.bf16.mxu1 %v1521_v4  ;;  %v1606_v2 = vld [vmem:[%s2135_s1 + $0x430] ss:$24 sps:$4 sm:$0xff]   ;;  %v1614_v4 = vld [vmem:[%s2135_s1 + $0x464] ss:$24 sps:$4 sm:$0xff]  }
  0x41   :  { %1119 = vmatprep.subr.bf16.mxu0 %v1524_v5  ;;  %v1609_v5 = vld [vmem:[%s2135_s1 + $0x2d8] ss:$24 sps:$4 sm:$0xff]  }
  0x42   :  { %964 = vmatmul.mubr.bf16.vlgmr.msra.gmra.mrb[0].mxu1 %v1871_v6 }
  0x43   :  { %1018 = vmatpush1.bf16.msra.mxu1 %v1519_v7  ;;  %1049 = vmatprep.mubr.bf16.mxu1 %v1516_v51  ;;  %v1590_v51 = vld [vmem:[%s2135_s1 + $0x3a4] ss:$24 sps:$4 sm:$0xff]   ;;  %v1612_v7 = vld [vmem:[%s2135_s1 + $0x460] ss:$24 sps:$4 sm:$0xff]  }
  0x44   :  { %1120 = vmatpush1.bf16.msra.mxu0 %v1522_v8  ;;  %1019 = vmatprep.subr.bf16.mxu1 %v1527_v9  ;;  %v1617_v8 = vld [vmem:[%s2135_s1 + $0x30c] ss:$24 sps:$4 sm:$0xff]   ;;  %v1615_v9 = vld [vmem:[%s2135_s1 + $0x308] ss:$24 sps:$4 sm:$0xff]  }
  0x45   :  { %1121 = vmatprep.subr.bf16.mxu0 %v1530_v10  ;;  %v1620_v10 = vld [vmem:[%s2135_s1 + $0x33c] ss:$24 sps:$4 sm:$0xff]  }
  0x47   :  { %1020 = vmatpush1.bf16.msra.mxu1 %v1525_v11  ;;  %v1618_v11 = vld [vmem:[%s2135_s1 + $0x338] ss:$24 sps:$4 sm:$0xff]  }
  0x48   :  { %1122 = vmatpush1.bf16.msra.mxu0 %v1528_v12  ;;  %1021 = vmatprep.subr.bf16.mxu1 %v1533_v13  ;;  %v1623_v12 = vld [vmem:[%s2135_s1 + $0x36c] ss:$24 sps:$4 sm:$0xff]   ;;  %v1621_v13 = vld [vmem:[%s2135_s1 + $0x368] ss:$24 sps:$4 sm:$0xff]  }
  0x49   :  { %1123 = vmatprep.subr.bf16.mxu0 %v1536_v14  ;;  %v1629_v14 = vld [vmem:[%s2135_s1 + $0x3cc] ss:$24 sps:$4 sm:$0xff]  }
  0x4b   :  { %1022 = vmatpush1.bf16.msra.mxu1 %v1531_v15  ;;  %v1627_v15 = vld [vmem:[%s2135_s1 + $0x3c8] ss:$24 sps:$4 sm:$0xff]  }
  0x4c   :  { %1124 = vmatpush1.bf16.msra.mxu0 %v1534_v16  ;;  %1023 = vmatprep.subr.bf16.mxu1 %v1539_v17  ;;  %v1632_v16 = vld [vmem:[%s2135_s1 + $0x3fc] ss:$24 sps:$4 sm:$0xff]   ;;  %v1630_v17 = vld [vmem:[%s2135_s1 + $0x3f8] ss:$24 sps:$4 sm:$0xff]  }
  0x4d   :  { %1125 = vmatprep.subr.bf16.mxu0 %v1542_v18  ;;  %v1635_v18 = vld [vmem:[%s2135_s1 + $0x42c] ss:$24 sps:$4 sm:$0xff]  }
  0x4f   :  { %1024 = vmatpush1.bf16.msra.mxu1 %v1537_v19  ;;  %v1633_v19 = vld [vmem:[%s2135_s1 + $0x428] ss:$24 sps:$4 sm:$0xff]  }
  0x50   :  { %1126 = vmatpush1.bf16.msra.mxu0 %v1540_v20  ;;  %1025 = vmatprep.subr.bf16.mxu1 %v1545_v21  ;;  %v1638_v20 = vld [vmem:[%s2135_s1 + $0x45c] ss:$24 sps:$4 sm:$0xff]   ;;  %v1636_v21 = vld [vmem:[%s2135_s1 + $0x458] ss:$24 sps:$4 sm:$0xff]  }
  0x51   :  { %1127 = vmatprep.subr.bf16.mxu0 %v1548_v22 }
  0x53   :  { %1026 = vmatpush1.bf16.msra.mxu1 %v1543_v23 }
  0x54   :  { %1128 = vmatpush1.bf16.msra.mxu0 %v1546_v24  ;;  %1027 = vmatprep.subr.bf16.mxu1 %v1551_v25 }
  0x55   :  { %1129 = vmatprep.subr.bf16.mxu0 %v1554_v26  ;;  %v165_v26 = vlaneseq }
  0x57   :  { %1028 = vmatpush1.bf16.msra.mxu1 %v1549_v27  ;;  %v166_v27 = vshrl.u32 %v165_v26, 7 }
  0x58   :  { %1130 = vmatpush1.bf16.msra.mxu0 %v1552_v28  ;;  %1029 = vmatprep.subr.bf16.mxu1 %v1557_v29  ;;  %v163_v29 = vld [vmem:[%s2137_s2] sm:$0x3f] }
  0x59   :  { %1131 = vmatprep.subr.bf16.mxu0 %v1560_v30  ;;  %v167_v28 = vsub.s32 0, %v166_v27  ;;  %v171_v30 = vsub.s32 1, %v166_v27 }
  0x5b   :  { %1030 = vmatpush1.bf16.msra.mxu1 %v1555_v31  ;;  %v168_v31 = vrot.slane %v163_v29, %v167_v28 }
  0x5c   :  { %1132 = vmatpush1.bf16.msra.mxu0 %v1558_v32  ;;  %1031 = vmatprep.subr.bf16.mxu1 %v1563_v33  ;;  %v172_v32 = vrot.slane %v163_v29, %v171_v30 }
  0x5d   :  { %1133 = vmatprep.subr.bf16.mxu0 %v1566_v34 }
  0x5f   :  { %1032 = vmatpush1.bf16.msra.mxu1 %v1561_v36 }
  0x60   :  { %1134 = vmatpush1.bf16.msra.mxu0 %v1564_v37  ;;  %1033 = vmatprep.subr.bf16.mxu1 %v1569_v38 }
  0x61   :  { %1146 = vmatprep.subr.bf16.mxu0 %v1572_v39 }
  0x63   :  { %1136 = vmatmul.mubr.bf16.vlgmr.msra.gmra.mrb[4].mxu0 %v1871_v6  ;;  %1034 = vmatpush1.bf16.msra.mxu1 %v1567_v40 }
  0x64   :  { %1147 = vmatpush1.bf16.msra.mxu0 %v1570_v41  ;;  %1035 = vmatprep.subr.bf16.mxu1 %v1575_v42 }
  0x65   :  { %1148 = vmatprep.subr.bf16.mxu0 %v1578_v43  ;;  %1178 = vmatprep.mubr.bf16.mxu0 %v1639_v1 }
  0x67   :  { %1036 = vmatpush1.bf16.msra.mxu1 %v1573_v44 }
  0x68   :  { %1149 = vmatpush1.bf16.msra.mxu0 %v1576_v45  ;;  %1037 = vmatprep.subr.bf16.mxu1 %v1581_v46 }
  0x69   :  { %1150 = vmatprep.subr.bf16.mxu0 %v1584_v47  ;;  %v183_v47 = vsub.s32 4, %v166_v27 }
  0x6b   :  { %1038 = vmatpush1.bf16.msra.mxu1 %v1579_v48  ;;  %v187_v48 = vsub.s32 5, %v166_v27 }
  0x6c   :  { %1151 = vmatpush1.bf16.msra.mxu0 %v1582_v49  ;;  %1039 = vmatprep.subr.bf16.mxu1 %v1587_v50  ;;  %v184_v49 = vrot.slane %v163_v29, %v183_v47 }
  0x6d   :  { %1152 = vmatprep.subr.bf16.mxu0 %v1590_v51  ;;  %v188_v50 = vrot.slane %v163_v29, %v187_v48 }
  0x6f   :  { %1040 = vmatpush1.bf16.msra.mxu1 %v1585_v52 }
  0x70   :  { %1153 = vmatpush1.bf16.msra.mxu0 %v1588_v53  ;;  %1041 = vmatprep.subr.bf16.mxu1 %v1593_v54 }
  0x71   :  { %1154 = vmatprep.subr.bf16.mxu0 %v1596_v55 }
  0x73   :  { %1042 = vmatpush1.bf16.msra.mxu1 %v1591_v56 }
  0x74   :  { %1155 = vmatpush1.bf16.msra.mxu0 %v1594_v57  ;;  %1043 = vmatprep.subr.bf16.mxu1 %v1599_v58 }
  0x75   :  { %1156 = vmatprep.subr.bf16.mxu0 %v1602_v59 }
  0x77   :  { %1044 = vmatpush1.bf16.msra.mxu1 %v1597_v60 }
  0x78   :  { %1157 = vmatpush1.bf16.msra.mxu0 %v1600_v61  ;;  %1045 = vmatprep.subr.bf16.mxu1 %v1605_v62  ;;  %v175_v61 = vsub.s32 2, %v166_v27  ;;  %v179_v62 = vsub.s32 3, %v166_v27 }
  0x79   :  { %1158 = vmatprep.subr.bf16.mxu0 %v1608_v63 }
  0x7a   :  { %v176_v63 = vrot.slane %v163_v29, %v175_v61 }
  0x7b   :  { %1046 = vmatpush1.bf16.msra.mxu1 %v1603_v0  ;;  %v180_v0 = vrot.slane %v163_v29, %v179_v62 }
  0x7c   :  { %1159 = vmatpush1.bf16.msra.mxu0 %v1606_v2  ;;  %1047 = vmatprep.subr.bf16.mxu1 %v1611_v3 }
  0x7d   :  { %1160 = vmatprep.subr.bf16.mxu0 %v1614_v4 }
  0x7f   :  { %1048 = vmatpush1.bf16.msra.mxu1 %v1609_v5 }
  0x80   :  { %1161 = vmatpush1.bf16.msra.mxu0 %v1612_v7  ;;  %1060 = vmatprep.subr.bf16.mxu1 %v1617_v8 }
  0x82   :  { %1050 = vmatmul.mubr.bf16.vlgmr.msra.gmra.mrb[4].mxu1 %v1871_v6  ;;  %v1626_v6 = vld [vmem:[%s2135_s1 + $0x39c] ss:$24 sps:$4 sm:$0xff]  }
  0x83   :  { %1179 = vmatmul.mubr.bf16.vlgmr.msra.gmra.mrb[4].mxu0 %v1766_v35  ;;  %1061 = vmatpush1.bf16.msra.mxu1 %v1615_v9 }
  0x84   :  { %1092 = vmatprep.mubr.bf16.mxu1 %v1639_v1  ;;  %1062 = vmatprep.subr.bf16.mxu1 %v1620_v10  ;;  %v1624_v1 = vld [vmem:[%s2135_s1 + $0x398] ss:$24 sps:$4 sm:$0xff]  }
  0x87   :  { %1063 = vmatpush1.bf16.msra.mxu1 %v1618_v11 }
  0x88   :  { %1064 = vmatprep.subr.bf16.mxu1 %v1623_v12 }
  0x8b   :  { %1065 = vmatpush1.bf16.msra.mxu1 %v1621_v13 }
  0x8c   :  { %1066 = vmatprep.subr.bf16.mxu1 %v1626_v6 }
  0x8f   :  { %1067 = vmatpush1.bf16.msra.mxu1 %v1624_v1 }
  0x90   :  { %1068 = vmatprep.subr.bf16.mxu1 %v1629_v14 }
  0x93   :  { %1069 = vmatpush1.bf16.msra.mxu1 %v1627_v15 }
  0x94   :  { %1070 = vmatprep.subr.bf16.mxu1 %v1632_v16 }
  0x97   :  { %1071 = vmatpush1.bf16.msra.mxu1 %v1630_v17 }
  0x98   :  { %1072 = vmatprep.subr.bf16.mxu1 %v1635_v18 }
  0x9b   :  { %1073 = vmatpush1.bf16.msra.mxu1 %v1633_v19 }
  0x9c   :  { %1074 = vmatprep.subr.bf16.mxu1 %v1638_v20 }
  0x9f   :  { %1075 = vmatpush1.bf16.msra.mxu1 %v1636_v21 }
  0xa2   :  { %1093 = vmatmul.mubr.bf16.vlgmr.msra.gmra.mrb[4].mxu1 %v1766_v35 }
  0xf6   :  { %v1008_v22 = vpop.f32.mrb[0].mxu0 }
  0xf7   :  { %v1010_v23 = vpop.f32.mrb[1].mxu0 }
  0xf8   :  { %v1012_v24 = vpop.f32.mrb[2].mxu0 }
  0xf9   :  { %v1014_v25 = vpop.f32.mrb[3].mxu0 }
 0x115   :  { %v965_v33 = vpop.f32.mrb[0].mxu1 }
 0x116   :  { %v966_v34 = vadd.f32 %v965_v33, %v168_v31  ;;  %v967_v36 = vpop.f32.mrb[1].mxu1 }
 0x117   :  { %v968_v37 = vadd.f32 %v967_v36, %v172_v32  ;;  %v969_v38 = vpop.f32.mrb[2].mxu1 }
 0x118   :  { %v1009_v35 = vadd.f32 %v1008_v22, %v966_v34  ;;  %v970_v39 = vadd.f32 %v969_v38, %v168_v31  ;;  %v971_v40 = vpop.f32.mrb[3].mxu1 }
 0x119   :  { %v1011_v41 = vadd.f32 %v1010_v23, %v968_v37  ;;  %v972_v42 = vadd.f32 %v971_v40, %v172_v32 }
 0x11a   :  { %v1013_v43 = vadd.f32 %v1012_v24, %v970_v39 }
 0x11b   :  { %v1388_v44 = vpack.c.bf16 %v1011_v41, %v1009_v35  ;;  %v1015_v45 = vadd.f32 %v1014_v25, %v972_v42 }
 0x11d   :  { %1225 = vst [vmem:[%s2138_s3] sm:$0xff] %v1388_v44  ;;  %v1391_v46 = vpack.c.bf16 %v1015_v45, %v1013_v43 }
 0x11f   :  { %1228 = vst [vmem:[%s2138_s3 + $0x18] sm:$0xff] %v1391_v46 }
 0x156   :  { %v1180_v51 = vpop.f32.mrb[4].mxu0 }
 0x157   :  { %v1406_v52 = vadd.f32 %v1180_v51, %v184_v49  ;;  %v1182_v53 = vpop.f32.mrb[5].mxu0 }
 0x158   :  { %v1407_v54 = vadd.f32 %v1182_v53, %v188_v50  ;;  %v1184_v55 = vpop.f32.mrb[6].mxu0 }
 0x159   :  { %v1408_v56 = vadd.f32 %v1184_v55, %v184_v49  ;;  %v1186_v57 = vpop.f32.mrb[7].mxu0 }
 0x15a   :  { %v1390_v58 = vpack.c.bf16 %v1407_v54, %v1406_v52  ;;  %v1409_v59 = vadd.f32 %v1186_v57, %v188_v50 }
 0x15c   :  { %1227 = vst [vmem:[%s2138_s3 + $0x10] sm:$0xff] %v1390_v58  ;;  %v1393_v60 = vpack.c.bf16 %v1409_v59, %v1408_v56 }
 0x15e   :  { %1230 = vst [vmem:[%s2138_s3 + $0x28] sm:$0xff] %v1393_v60 }
 0x175   :  { %v1094_v2 = vpop.f32.mrb[4].mxu1 }
 0x176   :  { %v1402_v3 = vadd.f32 %v1094_v2, %v176_v63  ;;  %v1096_v4 = vpop.f32.mrb[5].mxu1 }
 0x177   :  { %v1403_v5 = vadd.f32 %v1096_v4, %v180_v0  ;;  %v1098_v7 = vpop.f32.mrb[6].mxu1 }
 0x178   :  { %v1404_v8 = vadd.f32 %v1098_v7, %v176_v63  ;;  %v1100_v9 = vpop.f32.mrb[7].mxu1 }
 0x179   :  { %v1389_v10 = vpack.c.bf16 %v1403_v5, %v1402_v3  ;;  %v1405_v11 = vadd.f32 %v1100_v9, %v180_v0 }
 0x17b   :  { %1226 = vst [vmem:[%s2138_s3 + $0x8] sm:$0xff] %v1389_v10  ;;  %v1392_v12 = vpack.c.bf16 %v1405_v11, %v1404_v8 }
 0x17d   :  { %1229 = vst [vmem:[%s2138_s3 + $0x20] sm:$0xff] %v1392_v12 }

// kernel: capsule_main_forward.5
= control target key start
LH: loop header
LB: loop body
LE: loop exit
PB: predicated region body
PF: predicated region fallthrough
CT: control target
= control target key end

     0   :  { %vm4752_vm0 = vcmask 80896   ;;  %v3732_v1 = vmov 0.0   ;;  %s4745_s0 = inlined_call_operand.vmem [shape: bf16[16,256], index: 0, kind: input, shape index: {}]   ;;  %s4746_s1 = inlined_call_operand.vmem [shape: bf16[256,160], index: 1, kind: input, shape index: {}]   ;;  %s4747_s2 = inlined_call_operand.vmem [shape: f32[160,30], index: 2, kind: input, shape index: {}]   ;;  %s4748_s3 = inlined_call_operand.vmem [shape: f32[1,30], index: 3, kind: input, shape index: {}]   ;;  %s4749_s4 = inlined_call_operand.hbm [shape: f32[2,30], index: 4, kind: output, shape index: {}]  }
   0x1   :  { %v3609_v0 = vld [vmem:[%s4746_s1 + $0x4] ss:$8 sps:$4 sm:$0xff]   ;;  %v438_v2 = vsel %vm4752_vm0, 1.0, %v3732_v1  ;;  %v3611_v3 = vld [vmem:[%s4746_s1] ss:$8 sps:$4 sm:$0xff]   ;;  %602 = vmatprep.mubr.f32.mxu1 %v3732_v1 }
   0x2   :  { %439 = vadd.xlane.f32.xlu0 %v438_v2  ;;  %222 = vmatprep.subr.bf16.mxu0 %v3609_v0  ;;  %v3612_v4 = vld [vmem:[%s4746_s1 + $0x14] ss:$8 sps:$4 sm:$0xff]   ;;  %v3614_v5 = vld [vmem:[%s4746_s1 + $0x10] ss:$8 sps:$4 sm:$0xff]   ;;  %v3615_v6 = vld [vmem:[%s4746_s1 + $0x24] ss:$8 sps:$4 sm:$0xff]  }
   0x3   :  { %223 = vmatpush1.bf16.msra.mxu0 %v3611_v3  ;;  %v3617_v7 = vld [vmem:[%s4746_s1 + $0x20] ss:$8 sps:$4 sm:$0xff]   ;;  %v3618_v8 = vld [vmem:[%s4746_s1 + $0x34] ss:$8 sps:$4 sm:$0xff]   ;;  %v3620_v9 = vld [vmem:[%s4746_s1 + $0x30] ss:$8 sps:$4 sm:$0xff]  }
   0x4   :  { %224 = vmatprep.subr.bf16.mxu0 %v3612_v4  ;;  %v3621_v10 = vld [vmem:[%s4746_s1 + $0x44] ss:$8 sps:$4 sm:$0xff]   ;;  %v3623_v11 = vld [vmem:[%s4746_s1 + $0x40] ss:$8 sps:$4 sm:$0xff]   ;;  %v3624_v12 = vld [vmem:[%s4746_s1 + $0x54] ss:$8 sps:$4 sm:$0xff]  }
   0x5   :  { %v3626_v13 = vld [vmem:[%s4746_s1 + $0x50] ss:$8 sps:$4 sm:$0xff]   ;;  %v3627_v14 = vld [vmem:[%s4746_s1 + $0x64] ss:$8 sps:$4 sm:$0xff]   ;;  %v3629_v16 = vld [vmem:[%s4746_s1 + $0x60] ss:$8 sps:$4 sm:$0xff]  }
   0x6   :  { %v3659_v15 = vld [vmem:[%s4745_s0 + $0x4] ss:$8 sps:$4 sm:$0xff]   ;;  %v3630_v17 = vld [vmem:[%s4746_s1 + $0x74] ss:$8 sps:$4 sm:$0xff]   ;;  %v3632_v18 = vld [vmem:[%s4746_s1 + $0x70] ss:$8 sps:$4 sm:$0xff]  }
   0x7   :  { %225 = vmatpush1.bf16.msra.mxu0 %v3614_v5  ;;  %254 = vmatprep.mubr.bf16.mxu0 %v3659_v15  ;;  %v3633_v19 = vld [vmem:[%s4746_s1 + $0x84] ss:$8 sps:$4 sm:$0xff]  }
   0x8   :  { %226 = vmatprep.subr.bf16.mxu0 %v3615_v6 }
   0xb   :  { %227 = vmatpush1.bf16.msra.mxu0 %v3617_v7 }
   0xc   :  { %228 = vmatprep.subr.bf16.mxu0 %v3618_v8 }
   0xf   :  { %229 = vmatpush1.bf16.msra.mxu0 %v3620_v9 }
  0x10   :  { %230 = vmatprep.subr.bf16.mxu0 %v3621_v10 }
  0x13   :  { %231 = vmatpush1.bf16.msra.mxu0 %v3623_v11 }
  0x14   :  { %232 = vmatprep.subr.bf16.mxu0 %v3624_v12 }
  0x17   :  { %233 = vmatpush1.bf16.msra.mxu0 %v3626_v13 }
  0x18   :  { %234 = vmatprep.subr.bf16.mxu0 %v3627_v14 }
  0x1b   :  { %235 = vmatpush1.bf16.msra.mxu0 %v3629_v16 }
  0x1c   :  { %236 = vmatprep.subr.bf16.mxu0 %v3630_v17 }
  0x1d   :  { %9 = vsyncpa [#allocation3], 0  ;;  %v3635_v20 = vld [vmem:[%s4746_s1 + $0x80] ss:$8 sps:$4 sm:$0xff]   ;;  %v265_v21 = vlaneseq  ;;  %v3636_v22 = vld [vmem:[%s4746_s1 + $0x94] ss:$8 sps:$4 sm:$0xff]  }
  0x1e   :  { %v3638_v23 = vld [vmem:[%s4746_s1 + $0x90] ss:$8 sps:$4 sm:$0xff]   ;;  %v3639_v25 = vld [vmem:[%s4746_s1 + $0xa4] ss:$8 sps:$4 sm:$0xff]   ;;  %v3641_v26 = vld [vmem:[%s4746_s1 + $0xa0] ss:$8 sps:$4 sm:$0xff]  }
  0x1f   :  { %237 = vmatpush1.bf16.msra.mxu0 %v3632_v18  ;;  %v3828_v24 = vshrl.u32 %v265_v21, 7  ;;  %v3642_v28 = vld [vmem:[%s4746_s1 + $0xb4] ss:$8 sps:$4 sm:$0xff]   ;;  %v3644_v29 = vld [vmem:[%s4746_s1 + $0xb0] ss:$8 sps:$4 sm:$0xff]   ;;  %v3845_v30 = vand.u32 127, %v265_v21 }
  0x20   :  { %238 = vmatprep.subr.bf16.mxu0 %v3633_v19  ;;  %v3645_v32 = vld [vmem:[%s4746_s1 + $0xc4] ss:$8 sps:$4 sm:$0xff]   ;;  %v3647_v34 = vld [vmem:[%s4746_s1 + $0xc0] ss:$8 sps:$4 sm:$0xff]   ;;  %v3648_v38 = vld [vmem:[%s4746_s1 + $0xd4] ss:$8 sps:$4 sm:$0xff]  }
  0x21   :  { %v3837_v27 = vadd.s32 8, %v3828_v24  ;;  %v3852_v33 = vadd.s32 1, %v3828_v24  ;;  %v267_v35 = vadd.s32 128, %v3845_v30  ;;  %v271_v39 = vmul.u32 16, %v3828_v24  ;;  %v3650_v41 = vld [vmem:[%s4746_s1 + $0xd0] ss:$8 sps:$4 sm:$0xff]  }
  0x22   :  { %v3651_v43 = vld [vmem:[%s4746_s1 + $0xe4] ss:$8 sps:$4 sm:$0xff]   ;;  %v3653_v48 = vld [vmem:[%s4746_s1 + $0xe0] ss:$8 sps:$4 sm:$0xff]   ;;  %v3654_v49 = vld [vmem:[%s4746_s1 + $0xf4] ss:$8 sps:$4 sm:$0xff]  }
  0x23   :  { %239 = vmatpush1.bf16.msra.mxu0 %v3635_v20  ;;  %v278_v31 = vadd.s32 1, %v3837_v27  ;;  %v272_v36 = vmul.u32 16, %v3837_v27  ;;  %v279_v40 = vmul.u32 16, %v3852_v33  ;;  %vm3874_vm3 = vcmp.ge.s32.totalorder %v267_v35, %v271_v39  ;;  %v3656_v52 = vld [vmem:[%s4746_s1 + $0xf0] ss:$8 sps:$4 sm:$0xff]   ;;  %v2770_v56 = vld [vmem:[%s4747_s2 + $0x8] sm:$0xff] }
  0x24   :  { %240 = vmatprep.subr.bf16.mxu0 %v3636_v22  ;;  %vm4750_vm10 = vcmask 1041408   ;;  %vm3910_vm11 = vcmp.ge.s32.totalorder %v3845_v30, %v271_v39  ;;  %v3733_v54 = vmov 1.0   ;;  %v3657_v57 = vld [vmem:[%s4745_s0] ss:$8 sps:$4 sm:$0xff]   ;;  %v4779_v59 = vmov 0 }
  0x25   :  { %v280_v37 = vmul.u32 16, %v278_v31  ;;  %vm3867_vm1 = vcmp.ge.s32.totalorder %v267_v35, %v272_v36  ;;  %vm3878_vm4 = vcmp.lt.s32.totalorder %v267_v35, %v279_v40  ;;  %vm3883_vm5 = vcmp.ge.s32.totalorder %v3845_v30, %v272_v36  ;;  %v2777_v45 = vld [vmem:[%s4747_s2 + $0x40] sm:$0xff]  ;;  %v2778_v47 = vld [vmem:[%s4747_s2 + $0x48] sm:$0xff] }
  0x26   :  { %vm286_vm8 = vmand %vm3874_vm3, %vm3878_vm4  ;;  %vm281_vm12 = vcmp.lt.s32.totalorder %v3845_v30, %v279_v40  ;;  %v3964_v3 = vadd.s32 1, %v3845_v30  ;;  %v3967_v4 = vmul.u32 16, %v3845_v30  ;;  %v418_v9 = vmul.u32 8, %v3828_v24 }
  0x27   :  { %241 = vmatpush1.bf16.msra.mxu0 %v3638_v23  ;;  %vm284_vm2 = vcmp.lt.s32.totalorder %v267_v35, %v280_v37  ;;  %vm3888_vm6 = vcmp.lt.s32.totalorder %v3845_v30, %v280_v37  ;;  %vm3922_vm13 = vmpackc.low %vm4750_vm10, %vm286_vm8  ;;  %v420_v10 = vmul.u32 8, %v3852_v33  ;;  %v297_v13 = vadd.s32 16, %v3828_v24 }
  0x28   :  { %242 = vmatprep.subr.bf16.mxu0 %v3639_v25  ;;  %vm288_vm7 = vmand %vm3867_vm1, %vm284_vm2  ;;  %v3970_v5 = vmul.u32 16, %v3964_v3  ;;  %vm316_vm1 = vcmp.ge.s32.totalorder %v3828_v24, %v3967_v4  ;;  %vm317_vm3 = vcmp.ge.s32.totalorder %v3837_v27, %v3967_v4  ;;  %v298_v18 = vadd.s32 24, %v3828_v24 }
  0x29   :  { %vm287_vm9 = vmand %vm3883_vm5, %vm3888_vm6  ;;  %v2928_v50 = vsel %vm288_vm7, 1.0, %v3732_v1  ;;  %vm3987_vm5 = vcmp.ge.s32.totalorder %v3845_v30, %v418_v9  ;;  %vm3992_vm6 = vcmp.lt.s32.totalorder %v3845_v30, %v420_v10  ;;  %v299_v22 = vadd.s32 32, %v3828_v24 }
  0x2a   :  { %v2927_v53 = vsel %vm287_vm9, 1.0, %v3732_v1  ;;  %v3919_v55 = vpack.c.bf16 %v2928_v50, %v3733_v54  ;;  %vm285_vm14 = vmand %vm3910_vm11, %vm281_vm12  ;;  %vm338_vm2 = vcmp.lt.s32.totalorder %v3828_v24, %v3970_v5  ;;  %vm339_vm4 = vcmp.lt.s32.totalorder %v3837_v27, %v3970_v5  ;;  %v2779_v50 = vld [vmem:[%s4747_s2 + $0x50] sm:$0xff] }
  0x2b   :  { %243 = vmatpush1.bf16.msra.mxu0 %v3641_v26  ;;  %v3931_v58 = vpack.c.bf16 %v2927_v53, %v3733_v54  ;;  %vm3937_vm15 = vmpackc.low %vm4750_vm10, %vm285_vm14  ;;  %vm318_vm11 = vcmp.ge.s32.totalorder %v297_v13, %v3967_v4  ;;  %vm340_vm12 = vcmp.lt.s32.totalorder %v297_v13, %v3970_v5  ;;  %vm319_vm14 = vcmp.ge.s32.totalorder %v298_v18, %v3967_v4  ;;  %v2780_v53 = vld [vmem:[%s4747_s2 + $0x58] sm:$0xff] }
  0x2c   :  { %244 = vmatprep.subr.bf16.mxu0 %v3642_v28  ;;  %v4780_v59 = vsel %vm3937_vm15, 4294967295, %v4779_v59  ;;  %vm358_vm7 = vmand %vm316_vm1, %vm338_vm2  ;;  %vm341_vm10 = vcmp.lt.s32.totalorder %v298_v18, %v3970_v5  ;;  %v4785_v23 = vmov 0  ;;  %v300_v25 = vadd.s32 40, %v3828_v24 }
  0x2d   :  { %vm359_vm8 = vmand %vm317_vm3, %vm339_vm4  ;;  %vm4751_vm2 = vcmask 130048   ;;  %v301_v28 = vadd.s32 48, %v3828_v24  ;;  %v302_v31 = vadd.s32 56, %v3828_v24  ;;  %v4787_v33 = vmov 0 }
  0x2e   :  { %vm422_vm9 = vmand %vm3987_vm5, %vm3992_vm6  ;;  %vm320_vm5 = vcmp.ge.s32.totalorder %v299_v22, %v3967_v4  ;;  %vm342_vm6 = vcmp.lt.s32.totalorder %v299_v22, %v3970_v5  ;;  %v304_v35 = vadd.s32 72, %v3828_v24  ;;  %v4789_v36 = vmov 0 }
  0x2f   :  { %245 = vmatpush1.bf16.msra.mxu0 %v3644_v29  ;;  %vm4007_vm1 = vmpackc.low %vm359_vm8, %vm358_vm7  ;;  %v4013_v26 = vsel %vm422_vm9, 1.0, %v3732_v1  ;;  %v3734_v29 = vmov 0.0|0.0   ;;  %vm321_vm7 = vcmp.ge.s32.totalorder %v300_v25, %v3967_v4  ;;  %vm343_vm8 = vcmp.lt.s32.totalorder %v300_v25, %v3970_v5 }
  0x30   :  { %246 = vmatprep.subr.bf16.mxu0 %v3645_v32  ;;  %v4786_v23 = vsel %vm4007_vm1, 4294967295, %v4785_v23  ;;  %vm360_vm3 = vmand %vm318_vm11, %vm340_vm12  ;;  %v3735_v32 = vmov 1.0|1.0   ;;  %vm344_vm11 = vcmp.lt.s32.totalorder %v301_v28, %v3970_v5  ;;  %v305_v37 = vadd.s32 80, %v3828_v24 }
  0x31   :  { %vm361_vm4 = vmand %vm319_vm14, %vm341_vm10  ;;  %vm322_vm10 = vcmp.ge.s32.totalorder %v301_v28, %v3967_v4  ;;  %vm323_vm14 = vcmp.ge.s32.totalorder %v302_v31, %v3967_v4  ;;  %v306_v39 = vadd.s32 88, %v3828_v24  ;;  %v307_v40 = vadd.s32 96, %v3828_v24 }
  0x32   :  { %vm4027_vm9 = vmpackc.low %vm361_vm4, %vm360_vm3  ;;  %v310_v44 = vadd.s32 120, %v3828_v24  ;;  %v311_v46 = vadd.s32 128, %v3828_v24  ;;  %v313_v51 = vadd.s32 144, %v3828_v24  ;;  %v428_v9 = vmul.u32 8, %v3964_v3 }
  0x33   :  { %247 = vmatpush1.bf16.msra.mxu0 %v3647_v34  ;;  %v4788_v33 = vsel %vm4027_vm9, 4294967295, %v4787_v33  ;;  %vm362_vm12 = vmand %vm320_vm5, %vm342_vm6  ;;  %v303_v34 = vadd.s32 64, %v3828_v24 }
  0x34   :  { %248 = vmatprep.subr.bf16.mxu0 %v3648_v38  ;;  %vm364_vm3 = vmand %vm322_vm10, %vm344_vm11  ;;  %v4791_v38 = vmov 0  ;;  %vm326_vm11 = vcmp.ge.s32.totalorder %v305_v37, %v3967_v4 }
  0x35   :  { %vm324_vm5 = vcmp.ge.s32.totalorder %v303_v34, %v3967_v4  ;;  %vm346_vm6 = vcmp.lt.s32.totalorder %v303_v34, %v3970_v5 }
  0x37   :  { %249 = vmatpush1.bf16.msra.mxu0 %v3650_v41  ;;  %v308_v41 = vadd.s32 104, %v3828_v24 }
  0x38   :  { %250 = vmatprep.subr.bf16.mxu0 %v3651_v43  ;;  %v309_v43 = vadd.s32 112, %v3828_v24 }
  0x3b   :  { %251 = vmatpush1.bf16.msra.mxu0 %v3653_v48  ;;  %v312_v48 = vadd.s32 136, %v3828_v24 }
  0x3c   :  { %252 = vmatprep.subr.bf16.mxu0 %v3654_v49  ;;  %v3587_v49 = vpack.c.bf16 %v2778_v47, %v2777_v45 }
  0x3f   :  { %253 = vmatpush1.bf16.msra.mxu0 %v3656_v52  ;;  %v314_v52 = vadd.s32 152, %v3828_v24 }
  0x40   :  { %3226 = vmatprep.subr.msk.bf16.mxu0 %vm3922_vm13, %v3919_v55 }
  0x42   :  { %255 = vmatmul.mubr.bf16.vlgmr.msra.gmra.mrb[0].mxu0 %v3657_v57 }
  0x43   :  { %3229 = vmatpush1.bf16.msk.msra.mxu0 %vm3937_vm15, %v3931_v58  ;;  %517 = vmatprep.mubr.f32.mxu0 %v3732_v1 }
  0x44   :  { %3302 = vmatprep.subr.msk.bf16.mxu0 %vm3922_vm13, %v3919_v55 }
  0x8f   :  { %v440_v60 = vpop.xlane.xlu0 %439 }
  0x90   :  { %3660 = vrcp.f32 %v440_v60 }
  0x9a   :  { %v3661_v61 = vpop.eup %3660 }
  0x9b   :  { %2956 = vmatmul.mubr.msk.f32.vlgmr.msra.gmra.mrb[4].mxu0 %vm4752_vm0, %v3661_v61 }
  0x9c   :  { %523 = vmatprep.mubr.f32.mxu0 %v3732_v1  ;;  %3305 = vmatpush1.bf16.msk.msra.mxu0 %vm3937_vm15, %v3931_v58 }
  0x9f   :  { %2957 = vmatmul.mubr.msk.f32.gmra.mrb[6].mxu0 %vm4752_vm0, %v3661_v61  ;;  %vm363_vm0 = vmand %vm321_vm7, %vm343_vm8  ;;  %vm325_vm7 = vcmp.ge.s32.totalorder %v304_v35, %v3967_v4  ;;  %vm347_vm8 = vcmp.lt.s32.totalorder %v304_v35, %v3970_v5 }
  0xa0   :  { %1029 = vmatprep.mubr.f32.mxu0 %v3732_v1 }
 0x115   :  { %v3955_v62 = vpop.f32.mrb[0].mxu0 }
 0x116   :  { %v3957_v63 = vpop.f32.mrb[1].mxu0 }
 0x117   :  { %v3959_v0 = vpop.f32.mrb[2].mxu0 }
 0x118   :  { %v3961_v2 = vpop.f32.mrb[3].mxu0 }
 0x16e   :  { %v519_v6 = vpop.f32.mrb[4].mxu0 }
 0x16f   :  { %v530_v7 = vmul.f32 %v519_v6, %v3955_v62  ;;  %v521_v8 = vpop.f32.mrb[5].mxu0 }
 0x170   :  { %v531_v11 = vmul.f32 %v521_v8, %v3957_v63  ;;  %v425_v8 = vmul.u32 8, %v3845_v30 }
 0x172   :  { %v525_v12 = vpop.f32.mrb[6].mxu0 }
 0x173   :  { %v532_v14 = vmul.f32 %v525_v12, %v3959_v0  ;;  %v527_v15 = vpop.f32.mrb[7].mxu0 }
 0x174   :  { %v533_v19 = vmul.f32 %v527_v15, %v3961_v2 }
 0x175   :  { %v3232_v20 = vpack.c.bf16 %v532_v14, %v530_v7 }
 0x176   :  { %v3230_v21 = vpack.c.bf16 %v533_v19, %v531_v11 }
 0x178   :  { %3231 = vmatprep.subr.bf16.mxu1 %v3230_v21 }
 0x179   :  { %3233 = vmatpush1.bf16.msra.mxu1 %v3232_v20 }
 0x17a   :  { %3234 = vmatprep.subr.bf16.mxu1 %v3734_v29 }
 0x17c   :  { %2958 = vmatmul.mubr.msk.f32.vlgmr.msra.gmra.mrb[0].mxu1 %vm4751_vm2, %v4013_v26  ;;  %vm345_vm2 = vcmp.lt.s32.totalorder %v302_v31, %v3970_v5 }
 0x17d   :  { %3236 = vmatpush1.bf16.msk.msra.mxu1 %vm4007_vm1, %v3735_v32  ;;  %vm365_vm4 = vmand %vm323_vm14, %vm345_vm2  ;;  %vm327_vm14 = vcmp.ge.s32.totalorder %v306_v39, %v3967_v4 }
 0x17e   :  { %3237 = vmatprep.subr.bf16.mxu1 %v3734_v29  ;;  %vm4042_vm1 = vmpackc.low %vm363_vm0, %vm362_vm12  ;;  %vm348_vm12 = vcmp.lt.s32.totalorder %v305_v37, %v3970_v5 }
 0x17f   :  { %v4790_v36 = vsel %vm4042_vm1, 4294967295, %v4789_v36  ;;  %vm4051_vm10 = vmpackc.low %vm365_vm4, %vm364_vm3  ;;  %vm349_vm3 = vcmp.lt.s32.totalorder %v306_v39, %v3970_v5 }
 0x180   :  { %v4792_v38 = vsel %vm4051_vm10, 4294967295, %v4791_v38  ;;  %vm366_vm0 = vmand %vm324_vm5, %vm346_vm6  ;;  %vm328_vm5 = vcmp.ge.s32.totalorder %v307_v40, %v3967_v4  ;;  %vm350_vm6 = vcmp.lt.s32.totalorder %v307_v40, %v3970_v5 }
 0x181   :  { %3239 = vmatpush1.bf16.msk.msra.mxu1 %vm4027_vm9, %v3735_v32  ;;  %vm367_vm2 = vmand %vm325_vm7, %vm347_vm8  ;;  %vm329_vm8 = vcmp.ge.s32.totalorder %v308_v41, %v3967_v4 }
 0x182   :  { %3240 = vmatprep.subr.bf16.mxu1 %v3734_v29  ;;  %vm4069_vm4 = vmpackc.low %vm367_vm2, %vm366_vm0 }
 0x183   :  { %vm368_vm7 = vmand %vm326_vm11, %vm348_vm12  ;;  %vm330_vm11 = vcmp.ge.s32.totalorder %v309_v43, %v3967_v4  ;;  %vm352_vm12 = vcmp.lt.s32.totalorder %v309_v43, %v3970_v5 }
 0x184   :  { %vm369_vm9 = vmand %vm327_vm14, %vm349_vm3  ;;  %vm331_vm14 = vcmp.ge.s32.totalorder %v310_v44, %v3967_v4  ;;  %vm353_vm3 = vcmp.lt.s32.totalorder %v310_v44, %v3970_v5 }
 0x185   :  { %3242 = vmatpush1.bf16.msk.msra.mxu1 %vm4042_vm1, %v3735_v32  ;;  %vm351_vm1 = vcmp.lt.s32.totalorder %v308_v41, %v3970_v5  ;;  %vm370_vm0 = vmand %vm328_vm5, %vm350_vm6  ;;  %vm332_vm6 = vcmp.ge.s32.totalorder %v311_v46, %v3967_v4 }
 0x186   :  { %3243 = vmatprep.subr.bf16.mxu1 %v3734_v29  ;;  %vm371_vm2 = vmand %vm329_vm8, %vm351_vm1  ;;  %vm333_vm8 = vcmp.ge.s32.totalorder %v312_v48, %v3967_v4 }
 0x187   :  { %vm4093_vm5 = vmpackc.low %vm371_vm2, %vm370_vm0  ;;  %vm355_vm0 = vcmp.lt.s32.totalorder %v312_v48, %v3970_v5 }
 0x188   :  { %vm372_vm1 = vmand %vm330_vm11, %vm352_vm12 }
 0x189   :  { %3245 = vmatpush1.bf16.msk.msra.mxu1 %vm4051_vm10, %v3735_v32  ;;  %vm4084_vm10 = vmpackc.low %vm369_vm9, %vm368_vm7  ;;  %vm354_vm7 = vcmp.lt.s32.totalorder %v311_v46, %v3970_v5 }
 0x18a   :  { %3246 = vmatprep.subr.bf16.mxu1 %v3734_v29  ;;  %vm373_vm9 = vmand %vm331_vm14, %vm353_vm3  ;;  %vm334_vm3 = vcmp.ge.s32.totalorder %v313_v51, %v3967_v4 }
 0x18b   :  { %vm4109_vm2 = vmpackc.low %vm373_vm9, %vm372_vm1  ;;  %vm335_vm1 = vcmp.ge.s32.totalorder %v314_v52, %v3967_v4  ;;  %vm356_vm9 = vcmp.lt.s32.totalorder %v313_v51, %v3970_v5 }
 0x18c   :  { %vm374_vm11 = vmand %vm332_vm6, %vm354_vm7  ;;  %vm357_vm6 = vcmp.lt.s32.totalorder %v314_v52, %v3970_v5 }
 0x18d   :  { %3248 = vmatpush1.bf16.msk.msra.mxu1 %vm4069_vm4, %v3735_v32  ;;  %vm375_vm12 = vmand %vm333_vm8, %vm355_vm0 }
 0x18e   :  { %3249 = vmatprep.subr.bf16.mxu1 %v3734_v29  ;;  %vm4118_vm14 = vmpackc.low %vm375_vm12, %vm374_vm11  ;;  %vm4761_vm11 = vcmask 261120   ;;  %vm4805_vm12 = vcmask 80896  }
 0x18f   :  { %vm376_vm7 = vmand %vm334_vm3, %vm356_vm9  ;;  %vm426_vm3 = vcmp.ge.s32.totalorder %v3828_v24, %v425_v8 }
 0x190   :  { %vm377_vm8 = vmand %vm335_vm1, %vm357_vm6  ;;  %vm429_vm1 = vcmp.lt.s32.totalorder %v3828_v24, %v428_v9  ;;  %vm427_vm6 = vcmp.ge.s32.totalorder %v3837_v27, %v425_v8 }
 0x191   :  { %3251 = vmatpush1.bf16.msk.msra.mxu1 %vm4084_vm10, %v3735_v32  ;;  %vm4132_vm0 = vmpackc.low %vm377_vm8, %vm376_vm7  ;;  %vm430_vm7 = vcmp.lt.s32.totalorder %v3837_v27, %v428_v9  ;;  %vm4764_vm8 = vcmask 15360  }
 0x192   :  { %3252 = vmatprep.subr.bf16.mxu1 %v3734_v29  ;;  %vm431_vm9 = vmand %vm426_vm3, %vm429_vm1  ;;  %vm4808_vm3 = vnez %v4786_v23  ;;  %vm4810_vm1 = vnez %v4790_v36  ;;  %v2771_v23 = vld [vmem:[%s4747_s2 + $0x10] sm:$0xff] }
 0x193   :  { %v4156_v14 = vsel %vm431_vm9, 1.0, %v3732_v1  ;;  %vm4812_vm9 = vcmask 261120   ;;  %v2775_v36 = vld [vmem:[%s4747_s2 + $0x30] sm:$0xff] }
 0x195   :  { %3254 = vmatpush1.bf16.msk.msra.mxu1 %vm4093_vm5, %v3735_v32 }
 0x196   :  { %3255 = vmatprep.subr.bf16.mxu1 %v3734_v29 }
 0x199   :  { %3257 = vmatpush1.bf16.msk.msra.mxu1 %vm4109_vm2, %v3735_v32 }
 0x19a   :  { %3258 = vmatprep.subr.bf16.mxu1 %v3734_v29 }
 0x19d   :  { %3260 = vmatpush1.bf16.msk.msra.mxu1 %vm4118_vm14, %v3735_v32 }
 0x19e   :  { %3261 = vmatprep.subr.bf16.mxu1 %v3734_v29 }
 0x1a1   :  { %3263 = vmatpush1.bf16.msk.msra.mxu1 %vm4132_vm0, %v3735_v32 }
 0x1a2   :  { %3266 = vmatprep.subr.msk.bf16.mxu1 %vm3922_vm13, %v3919_v55 }
 0x24f   :  { %v604_v54 = vpop.f32.mrb[0].mxu1 }
 0x250   :  { %v606_v57 = vpop.f32.mrb[1].mxu1  ;;  %v609_v61 = vmul.f32 %v604_v54, %v604_v54 }
 0x251   :  { %v610_v60 = vmul.f32 %v606_v57, %v606_v57 }
 0x253   :  { %2979 = vmatprep.mubr.msk.f32.mxu1 %vm4761_vm11, %v610_v60  ;;  %vm432_vm11 = vmand %vm427_vm6, %vm430_vm7  ;;  %vm4813_vm6 = vnez %v4780_v59  ;;  %v2772_v59 = vld [vmem:[%s4747_s2 + $0x18] sm:$0xff] }
 0x254   :  { %680 = vmatmul.mubr.f32.vlgmr.msra.gmra.mrb[2].mxu1 %v609_v61  ;;  %v4165_v24 = vsel %vm432_vm11, 1.0, %v3732_v1  ;;  %vm4811_vm11 = vnez %v4792_v38  ;;  %vm4814_vm7 = vmmov %vm4812_vm9  ;;  %v2776_v38 = vld [vmem:[%s4747_s2 + $0x38] sm:$0xff] }
 0x255   :  { %3269 = vmatpush1.bf16.msk.msra.mxu1 %vm3937_vm15, %v3931_v58  ;;  %753 = vmatprep.mubr.f32.mxu1 %v3732_v1  ;;  %v3584_v42 = vpack.c.bf16 %v2776_v38, %v2775_v36 }
 0x327   :  { %v681_v4 = vpop.f32.mrb[2].mxu1 }
 0x328   :  { %v682_v5 = vadd.f32 1e-07, %v681_v4  ;;  %v683_v6 = vpop.f32.mrb[3].mxu1 }
 0x32a   :  { %3662 = vrsqrt.f32 %v682_v5 }
 0x334   :  { %v3663_v7 = vpop.eup %3662 }
 0x335   :  { %2984 = vmatmul.mubr.msk.f32.vlgmr.msra.gmra.mrb[4].mxu1 %vm4805_vm12, %v3663_v7  ;;  %vm4806_vm12 = vcmask 1041408  }
 0x336   :  { %839 = vmatprep.mubr.f32.mxu1 %v3732_v1  ;;  %vm4807_vm15 = vmmov %vm4806_vm12 }
 0x408   :  { %v755_v10 = vpop.f32.mrb[4].mxu1 }
 0x409   :  { %v760_v11 = vmul.f32 %v755_v10, %v604_v54  ;;  %v757_v12 = vpop.f32.mrb[5].mxu1 }
 0x40a   :  { %v761_v13 = vmul.f32 %v757_v12, %v606_v57 }
 0x40c   :  { %2985 = vmatprep.subr.msk.mxu1 %vm4806_vm12, %v761_v13  ;;  %vm4815_vm12 = vcmask 80896  }
 0x40d   :  { %2986 = vmatpush1.msk.msra.mxu1 %vm4807_vm15, %v760_v11  ;;  %vm4809_vm15 = vnez %v4788_v33 }
 0x40e   :  { %2987 = vmatmul.mubr.msk.f32.vlgmr.msra.gmra.mrb[6].mxu1 %vm4764_vm8, %v4156_v14  ;;  %3270 = vmatprep.subr.bf16.mxu1 %v3734_v29 }
 0x40f   :  { %845 = vmatprep.mubr.f32.mxu1 %v3732_v1  ;;  %3272 = vmatpush1.bf16.msk.msra.mxu1 %vm4808_vm3, %v3735_v32 }
 0x410   :  { %3273 = vmatprep.subr.bf16.mxu1 %v3734_v29 }
 0x412   :  { %2988 = vmatmul.mubr.msk.f32.gmra.mrb[8].mxu1 %vm4764_vm8, %v4165_v24 }
 0x413   :  { %3275 = vmatpush1.bf16.msk.msra.mxu1 %vm4809_vm15, %v3735_v32 }
 0x414   :  { %3276 = vmatprep.subr.bf16.mxu1 %v3734_v29 }
 0x417   :  { %3278 = vmatpush1.bf16.msk.msra.mxu1 %vm4810_vm1, %v3735_v32 }
 0x418   :  { %3279 = vmatprep.subr.bf16.mxu1 %v3734_v29 }
 0x41b   :  { %3281 = vmatpush1.bf16.msk.msra.mxu1 %vm4811_vm11, %v3735_v32 }
 0x41c   :  { %3282 = vmatprep.subr.bf16.mxu1 %v3734_v29 }
 0x41f   :  { %3284 = vmatpush1.bf16.msk.msra.mxu1 %vm4069_vm4, %v3735_v32 }
 0x420   :  { %3285 = vmatprep.subr.bf16.mxu1 %v3734_v29 }
 0x423   :  { %3287 = vmatpush1.bf16.msk.msra.mxu1 %vm4084_vm10, %v3735_v32 }
 0x424   :  { %3288 = vmatprep.subr.bf16.mxu1 %v3734_v29 }
 0x427   :  { %3290 = vmatpush1.bf16.msk.msra.mxu1 %vm4093_vm5, %v3735_v32 }
 0x428   :  { %3291 = vmatprep.subr.bf16.mxu1 %v3734_v29 }
 0x42b   :  { %3293 = vmatpush1.bf16.msk.msra.mxu1 %vm4109_vm2, %v3735_v32 }
 0x42c   :  { %3294 = vmatprep.subr.bf16.mxu1 %v3734_v29 }
 0x42f   :  { %3296 = vmatpush1.bf16.msk.msra.mxu1 %vm4118_vm14, %v3735_v32 }
 0x430   :  { %3297 = vmatprep.subr.bf16.mxu1 %v3734_v29 }
 0x433   :  { %3299 = vmatpush1.bf16.msk.msra.mxu1 %vm4132_vm0, %v3735_v32 }
 0x434   :  { %3342 = vmatprep.subr.msk.bf16.mxu1 %vm3922_vm13, %v3919_v55 }
 0x4e1   :  { %v841_v27 = vpop.f32.mrb[6].mxu1 }
 0x4e2   :  { %v852_v30 = vmul.f32 %v841_v27, %v3955_v62  ;;  %v843_v3 = vpop.f32.mrb[7].mxu1 }
 0x4e3   :  { %v853_v15 = vmul.f32 %v843_v3, %v3957_v63 }
 0x4e5   :  { %v847_v16 = vpop.f32.mrb[8].mxu1  ;;  %3009 = vmatprep.mubr.msk.f32.mxu1 %vm4812_vm9, %v853_v15  ;;  %vm4816_vm9 = vmmov %vm4815_vm12 }
 0x4e6   :  { %v854_v17 = vmul.f32 %v847_v16, %v3959_v0  ;;  %v849_v18 = vpop.f32.mrb[9].mxu1  ;;  %927 = vmatmul.mubr.f32.vlgmr.msra.gmra.mrb[10].mxu1 %v852_v30 }
 0x4e7   :  { %v855_v19 = vmul.f32 %v849_v18, %v3961_v2  ;;  %3345 = vmatpush1.bf16.msk.msra.mxu1 %vm4813_vm6, %v3931_v58 }
 0x4e9   :  { %3010 = vmatprep.mubr.msk.f32.mxu1 %vm4814_vm7, %v855_v19  ;;  %vm4817_vm7 = vmmov %vm4816_vm9 }
 0x4ea   :  { %932 = vmatmul.mubr.f32.gmra.mrb[12].mxu1 %v854_v17  ;;  %vm4820_vm8 = vmmov %vm4817_vm7 }
 0x4eb   :  { %1260 = vmatprep.mubr.f32.mxu1 %v3732_v1 }
 0x5b9   :  { %v928_v20 = vpop.f32.mrb[10].mxu1 }
 0x5ba   :  { %v930_v21 = vpop.f32.mrb[11].mxu1  ;;  %v937_v22 = vsel %vm4815_vm12, %v928_v20, -inf  ;;  %vm4818_vm12 = vmmov %vm4817_vm7 }
 0x5bb   :  { %938 = vmax.xlane.f32.xlu0 %v937_v22 }
 0x5bd   :  { %v933_v25 = vpop.f32.mrb[12].mxu1 }
 0x5be   :  { %v935_v28 = vpop.f32.mrb[13].mxu1  ;;  %v940_v31 = vsel %vm4816_vm9, %v933_v25, -inf  ;;  %vm4819_vm9 = vmmov %vm4817_vm7 }
 0x5bf   :  { %941 = vmax.xlane.f32.xlu1 %v940_v31 }
 0x648   :  { %v939_v34 = vpop.xlane.xlu0 %938 }
 0x649   :  { %v943_v35 = vsub.f32 %v928_v20, %v939_v34 }
 0x64b   :  { %v945_v37 = vmul.f32 1.442695, %v943_v35 }
 0x64c   :  { %v942_v39 = vpop.xlane.xlu1 %941 }
 0x64d   :  { %3664 = vpow2.f32 %v945_v37  ;;  %v944_v40 = vsub.f32 %v933_v25, %v942_v39 }
 0x64f   :  { %v947_v41 = vmul.f32 1.442695, %v944_v40 }
 0x651   :  { %3666 = vpow2.f32 %v947_v41 }
 0x657   :  { %v3665_v43 = vpop.eup %3664 }
 0x658   :  { %v949_v44 = vsel %vm4817_vm7, %v3665_v43, 0.0  ;;  %vm4822_vm7 = vcmask 261120  }
 0x659   :  { %950 = vadd.xlane.f32.xlu1 %v949_v44 }
 0x65b   :  { %v3667_v46 = vpop.eup %3666 }
 0x65c   :  { %v952_v48 = vsel %vm4818_vm12, %v3667_v46, 0.0  ;;  %vm4823_vm12 = vmmov %vm4819_vm9 }
 0x65d   :  { %953 = vadd.xlane.f32.xlu0 %v952_v48 }
 0x6e6   :  { %v951_v51 = vpop.xlane.xlu1 %950 }
 0x6e7   :  { %3668 = vrcp.f32 %v951_v51 }
 0x6ea   :  { %v954_v52 = vpop.xlane.xlu0 %953 }
 0x6eb   :  { %3670 = vrcp.f32 %v954_v52 }
 0x6f1   :  { %v3669_v54 = vpop.eup %3668 }
 0x6f2   :  { %v956_v57 = vmul.f32 %v3669_v54, %v3665_v43 }
 0x6f4   :  { %3015 = vmatmul.mubr.msk.f32.vlgmr.msra.gmra.mrb[8].mxu0 %vm4819_vm9, %v956_v57  ;;  %vm4824_vm9 = vcmask 1041408  }
 0x6f5   :  { %v3671_v60 = vpop.eup %3670  ;;  %1035 = vmatprep.mubr.f32.mxu0 %v3732_v1 }
 0x6f6   :  { %v958_v61 = vmul.f32 %v3671_v60, %v3667_v46 }
 0x6f8   :  { %3016 = vmatmul.mubr.msk.f32.gmra.mrb[10].mxu0 %vm4820_vm8, %v958_v61  ;;  %vm4821_vm8 = vcmask 130048  }
 0x6f9   :  { %1110 = vmatprep.mubr.f32.mxu0 %v3732_v1 }
 0x7c7   :  { %v1031_v4 = vpop.f32.mrb[8].mxu0 }
 0x7c8   :  { %v1042_v5 = vmul.f32 %v1031_v4, %v3955_v62  ;;  %v1033_v6 = vpop.f32.mrb[9].mxu0 }
 0x7c9   :  { %v1043_v7 = vmul.f32 %v1033_v6, %v3957_v63 }
 0x7cb   :  { %v1037_v8 = vpop.f32.mrb[10].mxu0 }
 0x7cc   :  { %v1044_v9 = vmul.f32 %v1037_v8, %v3959_v0  ;;  %v1039_v10 = vpop.f32.mrb[11].mxu0 }
 0x7cd   :  { %v1045_v11 = vmul.f32 %v1039_v10, %v3961_v2 }
 0x7ce   :  { %v3308_v12 = vpack.c.bf16 %v1044_v9, %v1042_v5 }
 0x7cf   :  { %v3306_v13 = vpack.c.bf16 %v1045_v11, %v1043_v7 }
 0x7d1   :  { %3307 = vmatprep.subr.bf16.mxu0 %v3306_v13 }
 0x7d2   :  { %3309 = vmatpush1.bf16.msra.mxu0 %v3308_v12 }
 0x7d3   :  { %3310 = vmatprep.subr.bf16.mxu0 %v3734_v29 }
 0x7d5   :  { %3017 = vmatmul.mubr.msk.f32.vlgmr.msra.gmra.mrb[12].mxu0 %vm4821_vm8, %v4013_v26  ;;  %vm4825_vm8 = vmmov %vm4824_vm9 }
 0x7d6   :  { %3312 = vmatpush1.bf16.msk.msra.mxu0 %vm4808_vm3, %v3735_v32 }
 0x7d7   :  { %3313 = vmatprep.subr.bf16.mxu0 %v3734_v29 }
 0x7da   :  { %3315 = vmatpush1.bf16.msk.msra.mxu0 %vm4809_vm15, %v3735_v32 }
 0x7db   :  { %3316 = vmatprep.subr.bf16.mxu0 %v3734_v29 }
 0x7de   :  { %3318 = vmatpush1.bf16.msk.msra.mxu0 %vm4810_vm1, %v3735_v32 }
 0x7df   :  { %3319 = vmatprep.subr.bf16.mxu0 %v3734_v29 }
 0x7e2   :  { %3321 = vmatpush1.bf16.msk.msra.mxu0 %vm4811_vm11, %v3735_v32 }
 0x7e3   :  { %3322 = vmatprep.subr.bf16.mxu0 %v3734_v29 }
 0x7e6   :  { %3324 = vmatpush1.bf16.msk.msra.mxu0 %vm4069_vm4, %v3735_v32 }
 0x7e7   :  { %3325 = vmatprep.subr.bf16.mxu0 %v3734_v29 }
 0x7ea   :  { %3327 = vmatpush1.bf16.msk.msra.mxu0 %vm4084_vm10, %v3735_v32 }
 0x7eb   :  { %3328 = vmatprep.subr.bf16.mxu0 %v3734_v29 }
 0x7ee   :  { %3330 = vmatpush1.bf16.msk.msra.mxu0 %vm4093_vm5, %v3735_v32 }
 0x7ef   :  { %3331 = vmatprep.subr.bf16.mxu0 %v3734_v29 }
 0x7f2   :  { %3333 = vmatpush1.bf16.msk.msra.mxu0 %vm4109_vm2, %v3735_v32 }
 0x7f3   :  { %3334 = vmatprep.subr.bf16.mxu0 %v3734_v29 }
 0x7f6   :  { %3336 = vmatpush1.bf16.msk.msra.mxu0 %vm4118_vm14, %v3735_v32 }
 0x7f7   :  { %3337 = vmatprep.subr.bf16.mxu0 %v3734_v29 }
 0x7fa   :  { %3339 = vmatpush1.bf16.msk.msra.mxu0 %vm4132_vm0, %v3735_v32 }
 0x7fb   :  { %3378 = vmatprep.subr.msk.bf16.mxu0 %vm3922_vm13, %v3919_v55 }
 0x8a8   :  { %v1112_v27 = vpop.f32.mrb[12].mxu0 }
 0x8a9   :  { %v1114_v30 = vpop.f32.mrb[13].mxu0  ;;  %v1117_v15 = vmul.f32 %v1112_v27, %v1112_v27 }
 0x8aa   :  { %v1118_v3 = vmul.f32 %v1114_v30, %v1114_v30 }
 0x8ac   :  { %3038 = vmatprep.mubr.msk.f32.mxu0 %vm4822_vm7, %v1118_v3  ;;  %vm4826_vm7 = vcmask 15360  }
 0x8ad   :  { %1187 = vmatmul.mubr.f32.vlgmr.msra.gmra.mrb[14].mxu0 %v1117_v15 }
 0x8ae   :  { %3381 = vmatpush1.bf16.msk.msra.mxu0 %vm4813_vm6, %v3931_v58  ;;  %1529 = vmatprep.mubr.f32.mxu0 %v3732_v1 }
 0x980   :  { %v1188_v16 = vpop.f32.mrb[14].mxu0 }
 0x981   :  { %v1189_v17 = vadd.f32 1e-07, %v1188_v16  ;;  %v1190_v18 = vpop.f32.mrb[15].mxu0 }
 0x983   :  { %3672 = vrsqrt.f32 %v1189_v17 }
 0x98d   :  { %v3673_v19 = vpop.eup %3672 }
 0x98e   :  { %3043 = vmatmul.mubr.msk.f32.vlgmr.msra.gmra.mrb[14].mxu1 %vm4823_vm12, %v3673_v19  ;;  %vm4827_vm12 = vmmov %vm4826_vm7 }
 0x98f   :  { %1339 = vmatprep.mubr.f32.mxu1 %v3732_v1 }
 0xa61   :  { %v1262_v20 = vpop.f32.mrb[14].mxu1 }
 0xa62   :  { %v1267_v21 = vmul.f32 %v1262_v20, %v1112_v27  ;;  %v1264_v22 = vpop.f32.mrb[15].mxu1 }
 0xa63   :  { %v1268_v25 = vmul.f32 %v1264_v22, %v1114_v30 }
 0xa65   :  { %3044 = vmatprep.subr.msk.mxu1 %vm4824_vm9, %v1268_v25  ;;  %vm4828_vm9 = vcmask 261120  }
 0xa66   :  { %3045 = vmatpush1.msk.msra.mxu1 %vm4825_vm8, %v1267_v21  ;;  %vm4829_vm8 = vmmov %vm4828_vm9 }
 0xa67   :  { %3046 = vmatmul.mubr.msk.f32.vlgmr.msra.gmra.mrb[16].mxu1 %vm4826_vm7, %v4156_v14  ;;  %3346 = vmatprep.subr.bf16.mxu1 %v3734_v29  ;;  %vm4830_vm7 = vcmask 80896  }
 0xa68   :  { %1345 = vmatprep.mubr.f32.mxu1 %v3732_v1  ;;  %3348 = vmatpush1.bf16.msk.msra.mxu1 %vm4808_vm3, %v3735_v32 }
 0xa69   :  { %3349 = vmatprep.subr.bf16.mxu1 %v3734_v29 }
 0xa6b   :  { %3047 = vmatmul.mubr.msk.f32.gmra.mrb[18].mxu1 %vm4827_vm12, %v4165_v24  ;;  %vm4831_vm12 = vmmov %vm4830_vm7 }
 0xa6c   :  { %3351 = vmatpush1.bf16.msk.msra.mxu1 %vm4809_vm15, %v3735_v32 }
 0xa6d   :  { %3352 = vmatprep.subr.bf16.mxu1 %v3734_v29 }
 0xa70   :  { %3354 = vmatpush1.bf16.msk.msra.mxu1 %vm4810_vm1, %v3735_v32 }
 0xa71   :  { %3355 = vmatprep.subr.bf16.mxu1 %v3734_v29 }
 0xa74   :  { %3357 = vmatpush1.bf16.msk.msra.mxu1 %vm4811_vm11, %v3735_v32 }
 0xa75   :  { %3358 = vmatprep.subr.bf16.mxu1 %v3734_v29 }
 0xa78   :  { %3360 = vmatpush1.bf16.msk.msra.mxu1 %vm4069_vm4, %v3735_v32 }
 0xa79   :  { %3361 = vmatprep.subr.bf16.mxu1 %v3734_v29 }
 0xa7c   :  { %3363 = vmatpush1.bf16.msk.msra.mxu1 %vm4084_vm10, %v3735_v32 }
 0xa7d   :  { %3364 = vmatprep.subr.bf16.mxu1 %v3734_v29 }
 0xa80   :  { %3366 = vmatpush1.bf16.msk.msra.mxu1 %vm4093_vm5, %v3735_v32 }
 0xa81   :  { %3367 = vmatprep.subr.bf16.mxu1 %v3734_v29 }
 0xa84   :  { %3369 = vmatpush1.bf16.msk.msra.mxu1 %vm4109_vm2, %v3735_v32 }
 0xa85   :  { %3370 = vmatprep.subr.bf16.mxu1 %v3734_v29 }
 0xa88   :  { %3372 = vmatpush1.bf16.msk.msra.mxu1 %vm4118_vm14, %v3735_v32 }
 0xa89   :  { %3373 = vmatprep.subr.bf16.mxu1 %v3734_v29 }
 0xa8c   :  { %3375 = vmatpush1.bf16.msk.msra.mxu1 %vm4132_vm0, %v3735_v32 }
 0xa8d   :  { %3418 = vmatprep.subr.msk.bf16.mxu1 %vm3922_vm13, %v3919_v55 }
 0xb3a   :  { %v1341_v28 = vpop.f32.mrb[16].mxu1 }
 0xb3b   :  { %v1352_v31 = vmul.f32 %v1341_v28, %v3955_v62  ;;  %v1343_v34 = vpop.f32.mrb[17].mxu1 }
 0xb3c   :  { %v1353_v35 = vmul.f32 %v1343_v34, %v3957_v63 }
 0xb3e   :  { %v1347_v37 = vpop.f32.mrb[18].mxu1  ;;  %3068 = vmatprep.mubr.msk.f32.mxu1 %vm4828_vm9, %v1353_v35  ;;  %vm4832_vm9 = vmmov %vm4830_vm7 }
 0xb3f   :  { %v1354_v39 = vmul.f32 %v1347_v37, %v3959_v0  ;;  %v1349_v40 = vpop.f32.mrb[19].mxu1  ;;  %1427 = vmatmul.mubr.f32.vlgmr.msra.gmra.mrb[20].mxu1 %v1352_v31 }
 0xb40   :  { %v1355_v41 = vmul.f32 %v1349_v40, %v3961_v2  ;;  %3421 = vmatpush1.bf16.msk.msra.mxu1 %vm4813_vm6, %v3931_v58 }
 0xb42   :  { %3069 = vmatprep.mubr.msk.f32.mxu1 %vm4829_vm8, %v1355_v41  ;;  %vm4833_vm8 = vmmov %vm4830_vm7 }
 0xb43   :  { %1432 = vmatmul.mubr.f32.gmra.mrb[22].mxu1 %v1354_v39 }
 0xb44   :  { %1760 = vmatprep.mubr.f32.mxu1 %v3732_v1 }
 0xc12   :  { %v1428_v43 = vpop.f32.mrb[20].mxu1 }
 0xc13   :  { %v1430_v44 = vpop.f32.mrb[21].mxu1  ;;  %v1437_v46 = vsel %vm4830_vm7, %v1428_v43, -inf }
 0xc14   :  { %1438 = vmax.xlane.f32.xlu1 %v1437_v46 }
 0xc16   :  { %v1433_v48 = vpop.f32.mrb[22].mxu1 }
 0xc17   :  { %v1435_v51 = vpop.f32.mrb[23].mxu1  ;;  %v1440_v52 = vsel %vm4831_vm12, %v1433_v48, -inf  ;;  %vm4834_vm12 = vmmov %vm4830_vm7 }
 0xc18   :  { %1441 = vmax.xlane.f32.xlu0 %v1440_v52 }
 0xca1   :  { %v1439_v54 = vpop.xlane.xlu1 %1438 }
 0xca2   :  { %v1443_v57 = vsub.f32 %v1428_v43, %v1439_v54 }
 0xca4   :  { %v1445_v60 = vmul.f32 1.442695, %v1443_v57 }
 0xca5   :  { %v1442_v61 = vpop.xlane.xlu0 %1441 }
 0xca6   :  { %3674 = vpow2.f32 %v1445_v60  ;;  %v1444_v4 = vsub.f32 %v1433_v48, %v1442_v61 }
 0xca8   :  { %v1447_v5 = vmul.f32 1.442695, %v1444_v4 }
 0xcaa   :  { %3676 = vpow2.f32 %v1447_v5 }
 0xcb0   :  { %v3675_v6 = vpop.eup %3674 }
 0xcb1   :  { %v1449_v7 = vsel %vm4832_vm9, %v3675_v6, 0.0  ;;  %vm4835_vm9 = vcmask 130048  }
 0xcb2   :  { %1450 = vadd.xlane.f32.xlu1 %v1449_v7 }
 0xcb4   :  { %v3677_v8 = vpop.eup %3676 }
 0xcb5   :  { %v1452_v9 = vsel %vm4833_vm8, %v3677_v8, 0.0  ;;  %vm4836_vm8 = vcmask 261120  }
 0xcb6   :  { %1453 = vadd.xlane.f32.xlu0 %v1452_v9 }
 0xd3f   :  { %v1451_v10 = vpop.xlane.xlu1 %1450 }
 0xd40   :  { %3678 = vrcp.f32 %v1451_v10 }
 0xd43   :  { %v1454_v11 = vpop.xlane.xlu0 %1453 }
 0xd44   :  { %3680 = vrcp.f32 %v1454_v11 }
 0xd4a   :  { %v3679_v12 = vpop.eup %3678 }
 0xd4b   :  { %v1456_v13 = vmul.f32 %v3679_v12, %v3675_v6 }
 0xd4d   :  { %3074 = vmatmul.mubr.msk.f32.vlgmr.msra.gmra.mrb[16].mxu0 %vm4830_vm7, %v1456_v13 }
 0xd4e   :  { %v3681_v27 = vpop.eup %3680  ;;  %1535 = vmatprep.mubr.f32.mxu0 %v3732_v1 }
 0xd4f   :  { %v1458_v30 = vmul.f32 %v3681_v27, %v3677_v8 }
 0xd51   :  { %3075 = vmatmul.mubr.msk.f32.gmra.mrb[18].mxu0 %vm4834_vm12, %v1458_v30  ;;  %vm4837_vm12 = vcmask 1041408  }
 0xd52   :  { %1610 = vmatprep.mubr.f32.mxu0 %v3732_v1 }
 0xe20   :  { %v1531_v3 = vpop.f32.mrb[16].mxu0 }
 0xe21   :  { %v1542_v15 = vmul.f32 %v1531_v3, %v3955_v62  ;;  %v1533_v16 = vpop.f32.mrb[17].mxu0 }
 0xe22   :  { %v1543_v17 = vmul.f32 %v1533_v16, %v3957_v63 }
 0xe24   :  { %v1537_v18 = vpop.f32.mrb[18].mxu0 }
 0xe25   :  { %v1544_v19 = vmul.f32 %v1537_v18, %v3959_v0  ;;  %v1539_v20 = vpop.f32.mrb[19].mxu0 }
 0xe26   :  { %v1545_v21 = vmul.f32 %v1539_v20, %v3961_v2 }
 0xe27   :  { %v3384_v22 = vpack.c.bf16 %v1544_v19, %v1542_v15 }
 0xe28   :  { %v3382_v25 = vpack.c.bf16 %v1545_v21, %v1543_v17 }
 0xe2a   :  { %3383 = vmatprep.subr.bf16.mxu0 %v3382_v25 }
 0xe2b   :  { %3385 = vmatpush1.bf16.msra.mxu0 %v3384_v22 }
 0xe2c   :  { %3386 = vmatprep.subr.bf16.mxu0 %v3734_v29 }
 0xe2e   :  { %3076 = vmatmul.mubr.msk.f32.vlgmr.msra.gmra.mrb[20].mxu0 %vm4835_vm9, %v4013_v26  ;;  %vm4838_vm9 = vmmov %vm4837_vm12 }
 0xe2f   :  { %3388 = vmatpush1.bf16.msk.msra.mxu0 %vm4808_vm3, %v3735_v32 }
 0xe30   :  { %3389 = vmatprep.subr.bf16.mxu0 %v3734_v29 }
 0xe33   :  { %3391 = vmatpush1.bf16.msk.msra.mxu0 %vm4809_vm15, %v3735_v32 }
 0xe34   :  { %3392 = vmatprep.subr.bf16.mxu0 %v3734_v29 }
 0xe37   :  { %3394 = vmatpush1.bf16.msk.msra.mxu0 %vm4810_vm1, %v3735_v32 }
 0xe38   :  { %3395 = vmatprep.subr.bf16.mxu0 %v3734_v29 }
 0xe3b   :  { %3397 = vmatpush1.bf16.msk.msra.mxu0 %vm4811_vm11, %v3735_v32 }
 0xe3c   :  { %3398 = vmatprep.subr.bf16.mxu0 %v3734_v29 }
 0xe3f   :  { %3400 = vmatpush1.bf16.msk.msra.mxu0 %vm4069_vm4, %v3735_v32 }
 0xe40   :  { %3401 = vmatprep.subr.bf16.mxu0 %v3734_v29 }
 0xe43   :  { %3403 = vmatpush1.bf16.msk.msra.mxu0 %vm4084_vm10, %v3735_v32 }
 0xe44   :  { %3404 = vmatprep.subr.bf16.mxu0 %v3734_v29 }
 0xe47   :  { %3406 = vmatpush1.bf16.msk.msra.mxu0 %vm4093_vm5, %v3735_v32 }
 0xe48   :  { %3407 = vmatprep.subr.bf16.mxu0 %v3734_v29 }
 0xe4b   :  { %3409 = vmatpush1.bf16.msk.msra.mxu0 %vm4109_vm2, %v3735_v32 }
 0xe4c   :  { %3410 = vmatprep.subr.bf16.mxu0 %v3734_v29 }
 0xe4f   :  { %3412 = vmatpush1.bf16.msk.msra.mxu0 %vm4118_vm14, %v3735_v32 }
 0xe50   :  { %3413 = vmatprep.subr.bf16.mxu0 %v3734_v29 }
 0xe53   :  { %3415 = vmatpush1.bf16.msk.msra.mxu0 %vm4132_vm0, %v3735_v32 }
 0xe54   :  { %3454 = vmatprep.subr.msk.bf16.mxu0 %vm3922_vm13, %v3919_v55 }
 0xf01   :  { %v1612_v28 = vpop.f32.mrb[20].mxu0 }
 0xf02   :  { %v1614_v31 = vpop.f32.mrb[21].mxu0  ;;  %v1617_v35 = vmul.f32 %v1612_v28, %v1612_v28 }
 0xf03   :  { %v1618_v34 = vmul.f32 %v1614_v31, %v1614_v31 }
 0xf05   :  { %3097 = vmatprep.mubr.msk.f32.mxu0 %vm4836_vm8, %v1618_v34  ;;  %vm4839_vm8 = vcmask 15360  }
 0xf06   :  { %1687 = vmatmul.mubr.f32.vlgmr.msra.gmra.mrb[22].mxu0 %v1617_v35 }
 0xf07   :  { %3457 = vmatpush1.bf16.msk.msra.mxu0 %vm4813_vm6, %v3931_v58  ;;  %2029 = vmatprep.mubr.f32.mxu0 %v3732_v1 }
 0xfd9   :  { %v1688_v37 = vpop.f32.mrb[22].mxu0 }
 0xfda   :  { %v1689_v39 = vadd.f32 1e-07, %v1688_v37  ;;  %v1690_v40 = vpop.f32.mrb[23].mxu0 }
 0xfdc   :  { %3682 = vrsqrt.f32 %v1689_v39 }
 0xfe6   :  { %v3683_v41 = vpop.eup %3682 }
 0xfe7   :  { %3102 = vmatmul.mubr.msk.f32.vlgmr.msra.gmra.mrb[24].mxu1 %vm4830_vm7, %v3683_v41  ;;  %vm4840_vm7 = vmmov %vm4839_vm8 }
 0xfe8   :  { %1839 = vmatprep.mubr.f32.mxu1 %v3732_v1 }
0x10ba   :  { %v1762_v43 = vpop.f32.mrb[24].mxu1 }
0x10bb   :  { %v1767_v44 = vmul.f32 %v1762_v43, %v1612_v28  ;;  %v1764_v46 = vpop.f32.mrb[25].mxu1 }
0x10bc   :  { %v1768_v48 = vmul.f32 %v1764_v46, %v1614_v31 }
0x10be   :  { %3103 = vmatprep.subr.msk.mxu1 %vm4837_vm12, %v1768_v48  ;;  %vm4841_vm12 = vcmask 261120  }
0x10bf   :  { %3104 = vmatpush1.msk.msra.mxu1 %vm4838_vm9, %v1767_v44  ;;  %vm4842_vm9 = vmmov %vm4841_vm12 }
0x10c0   :  { %3105 = vmatmul.mubr.msk.f32.vlgmr.msra.gmra.mrb[26].mxu1 %vm4839_vm8, %v4156_v14  ;;  %3422 = vmatprep.subr.bf16.mxu1 %v3734_v29  ;;  %vm4843_vm8 = vcmask 80896  }
0x10c1   :  { %1845 = vmatprep.mubr.f32.mxu1 %v3732_v1  ;;  %3424 = vmatpush1.bf16.msk.msra.mxu1 %vm4808_vm3, %v3735_v32 }
0x10c2   :  { %3425 = vmatprep.subr.bf16.mxu1 %v3734_v29 }
0x10c4   :  { %3106 = vmatmul.mubr.msk.f32.gmra.mrb[28].mxu1 %vm4840_vm7, %v4165_v24  ;;  %vm4844_vm7 = vmmov %vm4843_vm8 }
0x10c5   :  { %3427 = vmatpush1.bf16.msk.msra.mxu1 %vm4809_vm15, %v3735_v32 }
0x10c6   :  { %3428 = vmatprep.subr.bf16.mxu1 %v3734_v29 }
0x10c9   :  { %3430 = vmatpush1.bf16.msk.msra.mxu1 %vm4810_vm1, %v3735_v32 }
0x10ca   :  { %3431 = vmatprep.subr.bf16.mxu1 %v3734_v29 }
0x10cd   :  { %3433 = vmatpush1.bf16.msk.msra.mxu1 %vm4811_vm11, %v3735_v32 }
0x10ce   :  { %3434 = vmatprep.subr.bf16.mxu1 %v3734_v29 }
0x10d1   :  { %3436 = vmatpush1.bf16.msk.msra.mxu1 %vm4069_vm4, %v3735_v32 }
0x10d2   :  { %3437 = vmatprep.subr.bf16.mxu1 %v3734_v29 }
0x10d5   :  { %3439 = vmatpush1.bf16.msk.msra.mxu1 %vm4084_vm10, %v3735_v32 }
0x10d6   :  { %3440 = vmatprep.subr.bf16.mxu1 %v3734_v29 }
0x10d9   :  { %3442 = vmatpush1.bf16.msk.msra.mxu1 %vm4093_vm5, %v3735_v32 }
0x10da   :  { %3443 = vmatprep.subr.bf16.mxu1 %v3734_v29 }
0x10dd   :  { %3445 = vmatpush1.bf16.msk.msra.mxu1 %vm4109_vm2, %v3735_v32 }
0x10de   :  { %3446 = vmatprep.subr.bf16.mxu1 %v3734_v29 }
0x10e1   :  { %3448 = vmatpush1.bf16.msk.msra.mxu1 %vm4118_vm14, %v3735_v32 }
0x10e2   :  { %3449 = vmatprep.subr.bf16.mxu1 %v3734_v29 }
0x10e5   :  { %3451 = vmatpush1.bf16.msk.msra.mxu1 %vm4132_vm0, %v3735_v32 }
0x10e6   :  { %3494 = vmatprep.subr.msk.bf16.mxu1 %vm3922_vm13, %v3919_v55 }
0x1193   :  { %v1841_v51 = vpop.f32.mrb[26].mxu1 }
0x1194   :  { %v1852_v52 = vmul.f32 %v1841_v51, %v3955_v62  ;;  %v1843_v54 = vpop.f32.mrb[27].mxu1 }
0x1195   :  { %v1853_v57 = vmul.f32 %v1843_v54, %v3957_v63 }
0x1197   :  { %v1847_v60 = vpop.f32.mrb[28].mxu1  ;;  %3127 = vmatprep.mubr.msk.f32.mxu1 %vm4841_vm12, %v1853_v57  ;;  %vm4845_vm12 = vmmov %vm4844_vm7 }
0x1198   :  { %v1854_v61 = vmul.f32 %v1847_v60, %v3959_v0  ;;  %v1849_v4 = vpop.f32.mrb[29].mxu1  ;;  %1927 = vmatmul.mubr.f32.vlgmr.msra.gmra.mrb[30].mxu1 %v1852_v52 }
0x1199   :  { %v1855_v5 = vmul.f32 %v1849_v4, %v3961_v2  ;;  %3497 = vmatpush1.bf16.msk.msra.mxu1 %vm4813_vm6, %v3931_v58 }
0x119b   :  { %3128 = vmatprep.mubr.msk.f32.mxu1 %vm4842_vm9, %v1855_v5  ;;  %vm4846_vm9 = vmmov %vm4844_vm7 }
0x119c   :  { %1932 = vmatmul.mubr.f32.gmra.mrb[32].mxu1 %v1854_v61 }
0x119d   :  { %2260 = vmatprep.mubr.f32.mxu1 %v3732_v1 }
0x126b   :  { %v1928_v6 = vpop.f32.mrb[30].mxu1 }
0x126c   :  { %v1930_v7 = vpop.f32.mrb[31].mxu1  ;;  %v1937_v8 = vsel %vm4843_vm8, %v1928_v6, -inf  ;;  %vm4847_vm8 = vmmov %vm4844_vm7 }
0x126d   :  { %1938 = vmax.xlane.f32.xlu1 %v1937_v8 }
0x126f   :  { %v1933_v9 = vpop.f32.mrb[32].mxu1 }
0x1270   :  { %v1935_v10 = vpop.f32.mrb[33].mxu1  ;;  %v1940_v11 = vsel %vm4844_vm7, %v1933_v9, -inf }
0x1271   :  { %1941 = vmax.xlane.f32.xlu0 %v1940_v11 }
0x12fa   :  { %v1939_v12 = vpop.xlane.xlu1 %1938 }
0x12fb   :  { %v1943_v13 = vsub.f32 %v1928_v6, %v1939_v12 }
0x12fd   :  { %v1945_v27 = vmul.f32 1.442695, %v1943_v13 }
0x12fe   :  { %v1942_v30 = vpop.xlane.xlu0 %1941 }
0x12ff   :  { %3684 = vpow2.f32 %v1945_v27  ;;  %v1944_v3 = vsub.f32 %v1933_v9, %v1942_v30 }
0x1301   :  { %v1947_v15 = vmul.f32 1.442695, %v1944_v3 }
0x1303   :  { %3686 = vpow2.f32 %v1947_v15 }
0x1309   :  { %v3685_v16 = vpop.eup %3684 }
0x130a   :  { %v1949_v17 = vsel %vm4845_vm12, %v3685_v16, 0.0  ;;  %vm4848_vm12 = vcmask 130048  }
0x130b   :  { %1950 = vadd.xlane.f32.xlu1 %v1949_v17 }
0x130d   :  { %v3687_v18 = vpop.eup %3686 }
0x130e   :  { %v1952_v19 = vsel %vm4846_vm9, %v3687_v18, 0.0  ;;  %vm4849_vm9 = vcmask 261120  }
0x130f   :  { %1953 = vadd.xlane.f32.xlu0 %v1952_v19 }
0x1398   :  { %v1951_v20 = vpop.xlane.xlu1 %1950 }
0x1399   :  { %3688 = vrcp.f32 %v1951_v20 }
0x139c   :  { %v1954_v21 = vpop.xlane.xlu0 %1953 }
0x139d   :  { %3690 = vrcp.f32 %v1954_v21 }
0x13a3   :  { %v3689_v22 = vpop.eup %3688 }
0x13a4   :  { %v1956_v25 = vmul.f32 %v3689_v22, %v3685_v16 }
0x13a6   :  { %3133 = vmatmul.mubr.msk.f32.vlgmr.msra.gmra.mrb[24].mxu0 %vm4847_vm8, %v1956_v25  ;;  %vm4850_vm8 = vmmov %vm4844_vm7 }
0x13a7   :  { %v3691_v28 = vpop.eup %3690  ;;  %2035 = vmatprep.mubr.f32.mxu0 %v3732_v1 }
0x13a8   :  { %v1958_v31 = vmul.f32 %v3691_v28, %v3687_v18 }
0x13aa   :  { %3134 = vmatmul.mubr.msk.f32.gmra.mrb[26].mxu0 %vm4844_vm7, %v1958_v31  ;;  %vm4851_vm7 = vcmask 1041408  }
0x13ab   :  { %2110 = vmatprep.mubr.f32.mxu0 %v3732_v1 }
0x1479   :  { %v2031_v34 = vpop.f32.mrb[24].mxu0 }
0x147a   :  { %v2042_v35 = vmul.f32 %v2031_v34, %v3955_v62  ;;  %v2033_v37 = vpop.f32.mrb[25].mxu0 }
0x147b   :  { %v2043_v39 = vmul.f32 %v2033_v37, %v3957_v63 }
0x147d   :  { %v2037_v40 = vpop.f32.mrb[26].mxu0 }
0x147e   :  { %v2044_v41 = vmul.f32 %v2037_v40, %v3959_v0  ;;  %v2039_v43 = vpop.f32.mrb[27].mxu0 }
0x147f   :  { %v2045_v44 = vmul.f32 %v2039_v43, %v3961_v2 }
0x1480   :  { %v3460_v46 = vpack.c.bf16 %v2044_v41, %v2042_v35 }
0x1481   :  { %v3458_v48 = vpack.c.bf16 %v2045_v44, %v2043_v39 }
0x1483   :  { %3459 = vmatprep.subr.bf16.mxu0 %v3458_v48 }
0x1484   :  { %3461 = vmatpush1.bf16.msra.mxu0 %v3460_v46 }
0x1485   :  { %3462 = vmatprep.subr.bf16.mxu0 %v3734_v29 }
0x1487   :  { %3135 = vmatmul.mubr.msk.f32.vlgmr.msra.gmra.mrb[28].mxu0 %vm4848_vm12, %v4013_v26  ;;  %vm4852_vm12 = vmmov %vm4851_vm7 }
0x1488   :  { %3464 = vmatpush1.bf16.msk.msra.mxu0 %vm4808_vm3, %v3735_v32 }
0x1489   :  { %3465 = vmatprep.subr.bf16.mxu0 %v3734_v29 }
0x148c   :  { %3467 = vmatpush1.bf16.msk.msra.mxu0 %vm4809_vm15, %v3735_v32 }
0x148d   :  { %3468 = vmatprep.subr.bf16.mxu0 %v3734_v29 }
0x1490   :  { %3470 = vmatpush1.bf16.msk.msra.mxu0 %vm4810_vm1, %v3735_v32 }
0x1491   :  { %3471 = vmatprep.subr.bf16.mxu0 %v3734_v29 }
0x1494   :  { %3473 = vmatpush1.bf16.msk.msra.mxu0 %vm4811_vm11, %v3735_v32 }
0x1495   :  { %3474 = vmatprep.subr.bf16.mxu0 %v3734_v29 }
0x1498   :  { %3476 = vmatpush1.bf16.msk.msra.mxu0 %vm4069_vm4, %v3735_v32 }
0x1499   :  { %3477 = vmatprep.subr.bf16.mxu0 %v3734_v29 }
0x149c   :  { %3479 = vmatpush1.bf16.msk.msra.mxu0 %vm4084_vm10, %v3735_v32 }
0x149d   :  { %3480 = vmatprep.subr.bf16.mxu0 %v3734_v29 }
0x14a0   :  { %3482 = vmatpush1.bf16.msk.msra.mxu0 %vm4093_vm5, %v3735_v32 }
0x14a1   :  { %3483 = vmatprep.subr.bf16.mxu0 %v3734_v29 }
0x14a4   :  { %3485 = vmatpush1.bf16.msk.msra.mxu0 %vm4109_vm2, %v3735_v32 }
0x14a5   :  { %3486 = vmatprep.subr.bf16.mxu0 %v3734_v29 }
0x14a8   :  { %3488 = vmatpush1.bf16.msk.msra.mxu0 %vm4118_vm14, %v3735_v32 }
0x14a9   :  { %3489 = vmatprep.subr.bf16.mxu0 %v3734_v29 }
0x14ac   :  { %3491 = vmatpush1.bf16.msk.msra.mxu0 %vm4132_vm0, %v3735_v32 }
0x14ad   :  { %3530 = vmatprep.subr.msk.bf16.mxu0 %vm3922_vm13, %v3919_v55 }
0x155a   :  { %v2112_v51 = vpop.f32.mrb[28].mxu0 }
0x155b   :  { %v2114_v52 = vpop.f32.mrb[29].mxu0  ;;  %v2117_v57 = vmul.f32 %v2112_v51, %v2112_v51 }
0x155c   :  { %v2118_v54 = vmul.f32 %v2114_v52, %v2114_v52 }
0x155e   :  { %3156 = vmatprep.mubr.msk.f32.mxu0 %vm4849_vm9, %v2118_v54  ;;  %vm4853_vm9 = vcmask 15360  }
0x155f   :  { %2187 = vmatmul.mubr.f32.vlgmr.msra.gmra.mrb[30].mxu0 %v2117_v57 }
0x1560   :  { %3533 = vmatpush1.bf16.msk.msra.mxu0 %vm4813_vm6, %v3931_v58  ;;  %2529 = vmatprep.mubr.f32.mxu0 %v3732_v1 }
0x1632   :  { %v2188_v60 = vpop.f32.mrb[30].mxu0 }
0x1633   :  { %v2189_v61 = vadd.f32 1e-07, %v2188_v60  ;;  %v2190_v4 = vpop.f32.mrb[31].mxu0 }
0x1635   :  { %3692 = vrsqrt.f32 %v2189_v61 }
0x163f   :  { %v3693_v5 = vpop.eup %3692 }
0x1640   :  { %3161 = vmatmul.mubr.msk.f32.vlgmr.msra.gmra.mrb[34].mxu1 %vm4850_vm8, %v3693_v5  ;;  %vm4854_vm8 = vmmov %vm4853_vm9 }
0x1641   :  { %2339 = vmatprep.mubr.f32.mxu1 %v3732_v1 }
0x1713   :  { %v2262_v6 = vpop.f32.mrb[34].mxu1 }
0x1714   :  { %v2267_v7 = vmul.f32 %v2262_v6, %v2112_v51  ;;  %v2264_v8 = vpop.f32.mrb[35].mxu1 }
0x1715   :  { %v2268_v9 = vmul.f32 %v2264_v8, %v2114_v52  ;;  %v3590_v8 = vpack.c.bf16 %v2780_v53, %v2779_v50 }
0x1717   :  { %3162 = vmatprep.subr.msk.mxu1 %vm4851_vm7, %v2268_v9  ;;  %vm4855_vm7 = vcmask 261120   ;;  %v2781_v9 = vld [vmem:[%s4747_s2 + $0x60] sm:$0xff] }
0x1718   :  { %3163 = vmatpush1.msk.msra.mxu1 %vm4852_vm12, %v2267_v7  ;;  %vm4856_vm12 = vmmov %vm4855_vm7 }
0x1719   :  { %3164 = vmatmul.mubr.msk.f32.vlgmr.msra.gmra.mrb[36].mxu1 %vm4853_vm9, %v4156_v14  ;;  %3498 = vmatprep.subr.bf16.mxu1 %v3734_v29  ;;  %vm4857_vm9 = vcmask 80896  }
0x171a   :  { %2345 = vmatprep.mubr.f32.mxu1 %v3732_v1  ;;  %3500 = vmatpush1.bf16.msk.msra.mxu1 %vm4808_vm3, %v3735_v32 }
0x171b   :  { %3501 = vmatprep.subr.bf16.mxu1 %v3734_v29 }
0x171d   :  { %3165 = vmatmul.mubr.msk.f32.gmra.mrb[38].mxu1 %vm4854_vm8, %v4165_v24  ;;  %vm4858_vm8 = vmmov %vm4857_vm9 }
0x171e   :  { %3503 = vmatpush1.bf16.msk.msra.mxu1 %vm4809_vm15, %v3735_v32 }
0x171f   :  { %3504 = vmatprep.subr.bf16.mxu1 %v3734_v29 }
0x1722   :  { %3506 = vmatpush1.bf16.msk.msra.mxu1 %vm4810_vm1, %v3735_v32 }
0x1723   :  { %3507 = vmatprep.subr.bf16.mxu1 %v3734_v29 }
0x1726   :  { %3509 = vmatpush1.bf16.msk.msra.mxu1 %vm4811_vm11, %v3735_v32 }
0x1727   :  { %3510 = vmatprep.subr.bf16.mxu1 %v3734_v29 }
0x172a   :  { %3512 = vmatpush1.bf16.msk.msra.mxu1 %vm4069_vm4, %v3735_v32 }
0x172b   :  { %3513 = vmatprep.subr.bf16.mxu1 %v3734_v29 }
0x172e   :  { %3515 = vmatpush1.bf16.msk.msra.mxu1 %vm4084_vm10, %v3735_v32 }
0x172f   :  { %3516 = vmatprep.subr.bf16.mxu1 %v3734_v29 }
0x1732   :  { %3518 = vmatpush1.bf16.msk.msra.mxu1 %vm4093_vm5, %v3735_v32 }
0x1733   :  { %3519 = vmatprep.subr.bf16.mxu1 %v3734_v29 }
0x1736   :  { %3521 = vmatpush1.bf16.msk.msra.mxu1 %vm4109_vm2, %v3735_v32 }
0x1737   :  { %3522 = vmatprep.subr.bf16.mxu1 %v3734_v29 }
0x173a   :  { %3524 = vmatpush1.bf16.msk.msra.mxu1 %vm4118_vm14, %v3735_v32 }
0x173b   :  { %3525 = vmatprep.subr.bf16.mxu1 %v3734_v29 }
0x173e   :  { %3527 = vmatpush1.bf16.msk.msra.mxu1 %vm4132_vm0, %v3735_v32 }
0x173f   :  { %3574 = vmatprep.subr.bf16.mxu1 %v3734_v29 }
0x17ec   :  { %v2341_v14 = vpop.f32.mrb[36].mxu1 }
0x17ed   :  { %v2352_v24 = vmul.f32 %v2341_v14, %v3955_v62  ;;  %v2343_v10 = vpop.f32.mrb[37].mxu1  ;;  %v2782_v14 = vld [vmem:[%s4747_s2 + $0x68] sm:$0xff] }
0x17ee   :  { %v2353_v11 = vmul.f32 %v2343_v10, %v3957_v63  ;;  %v2783_v10 = vld [vmem:[%s4747_s2 + $0x70] sm:$0xff] }
0x17f0   :  { %v2347_v12 = vpop.f32.mrb[38].mxu1  ;;  %3186 = vmatprep.mubr.msk.f32.mxu1 %vm4855_vm7, %v2353_v11  ;;  %vm4859_vm7 = vmmov %vm4858_vm8  ;;  %v2784_v11 = vld [vmem:[%s4747_s2 + $0x78] sm:$0xff] }
0x17f1   :  { %v2354_v13 = vmul.f32 %v2347_v12, %v3959_v0  ;;  %v2349_v27 = vpop.f32.mrb[39].mxu1  ;;  %2427 = vmatmul.mubr.f32.vlgmr.msra.gmra.mrb[40].mxu1 %v2352_v24  ;;  %v3593_v24 = vpack.c.bf16 %v2782_v14, %v2781_v9  ;;  %v3596_v12 = vpack.c.bf16 %v2784_v11, %v2783_v10 }
0x17f2   :  { %v2355_v30 = vmul.f32 %v2349_v27, %v3961_v2  ;;  %v2786_v27 = vld [vmem:[%s4747_s2 + $0x88] sm:$0xff] }
0x17f4   :  { %3187 = vmatprep.mubr.msk.f32.mxu1 %vm4856_vm12, %v2355_v30  ;;  %vm4860_vm12 = vmmov %vm4859_vm7 }
0x17f5   :  { %2432 = vmatmul.mubr.f32.gmra.mrb[42].mxu1 %v2354_v13  ;;  %v2785_v13 = vld [vmem:[%s4747_s2 + $0x80] sm:$0xff] }
0x17f6   :  { %v3599_v30 = vpack.c.bf16 %v2786_v27, %v2785_v13 }
0x18c4   :  { %v2428_v3 = vpop.f32.mrb[40].mxu1 }
0x18c5   :  { %v2430_v15 = vpop.f32.mrb[41].mxu1  ;;  %v2437_v16 = vsel %vm4857_vm9, %v2428_v3, -inf  ;;  %vm4861_vm9 = vmmov %vm4859_vm7 }
0x18c6   :  { %2438 = vmax.xlane.f32.xlu1 %v2437_v16 }
0x18c8   :  { %v2433_v17 = vpop.f32.mrb[42].mxu1 }
0x18c9   :  { %v2435_v18 = vpop.f32.mrb[43].mxu1  ;;  %v2440_v19 = vsel %vm4858_vm8, %v2433_v17, -inf  ;;  %vm4862_vm8 = vmmov %vm4859_vm7 }
0x18ca   :  { %2441 = vmax.xlane.f32.xlu0 %v2440_v19  ;;  %v2787_v18 = vld [vmem:[%s4747_s2 + $0x90] sm:$0xff]  ;;  %v2788_v19 = vld [vmem:[%s4747_s2 + $0x98] sm:$0xff] }
0x1953   :  { %v2439_v20 = vpop.xlane.xlu1 %2438 }
0x1954   :  { %v2443_v21 = vsub.f32 %v2428_v3, %v2439_v20  ;;  %v3602_v20 = vpack.c.bf16 %v2788_v19, %v2787_v18 }
0x1956   :  { %v2445_v22 = vmul.f32 1.442695, %v2443_v21 }
0x1957   :  { %v2442_v25 = vpop.xlane.xlu0 %2441 }
0x1958   :  { %3694 = vpow2.f32 %v2445_v22  ;;  %v2444_v28 = vsub.f32 %v2433_v17, %v2442_v25 }
0x195a   :  { %v2447_v31 = vmul.f32 1.442695, %v2444_v28  ;;  %v3221_v28 = vld [vmem:[%s4748_s3] ss:$0 sm:$0xff] }
0x195c   :  { %3696 = vpow2.f32 %v2447_v31 }
0x1962   :  { %v3695_v34 = vpop.eup %3694 }
0x1963   :  { %v2449_v35 = vsel %vm4859_vm7, %v3695_v34, 0.0  ;;  %vm4863_vm7 = vcmask 130048  }
0x1964   :  { %2450 = vadd.xlane.f32.xlu1 %v2449_v35 }
0x1966   :  { %v3697_v37 = vpop.eup %3696 }
0x1967   :  { %v2452_v39 = vsel %vm4860_vm12, %v3697_v37, 0.0 }
0x1968   :  { %2453 = vadd.xlane.f32.xlu0 %v2452_v39 }
0x19f1   :  { %v2451_v40 = vpop.xlane.xlu1 %2450 }
0x19f2   :  { %3698 = vrcp.f32 %v2451_v40 }
0x19f5   :  { %v2454_v41 = vpop.xlane.xlu0 %2453 }
0x19f6   :  { %3700 = vrcp.f32 %v2454_v41 }
0x19fc   :  { %v3699_v43 = vpop.eup %3698 }
0x19fd   :  { %v2456_v44 = vmul.f32 %v3699_v43, %v3695_v34 }
0x19ff   :  { %3192 = vmatmul.mubr.msk.f32.vlgmr.msra.gmra.mrb[32].mxu0 %vm4861_vm9, %v2456_v44 }
0x1a00   :  { %v3701_v46 = vpop.eup %3700  ;;  %2535 = vmatprep.mubr.f32.mxu0 %v3732_v1 }
0x1a01   :  { %v2458_v48 = vmul.f32 %v3701_v46, %v3697_v37 }
0x1a03   :  { %3193 = vmatmul.mubr.msk.f32.gmra.mrb[34].mxu0 %vm4862_vm8, %v2458_v48 }
0x1a04   :  { %2610 = vmatprep.mubr.f32.mxu0 %v3732_v1 }
0x1ad2   :  { %v2531_v51 = vpop.f32.mrb[32].mxu0 }
0x1ad3   :  { %v2542_v52 = vmul.f32 %v2531_v51, %v3955_v62  ;;  %v2533_v54 = vpop.f32.mrb[33].mxu0 }
0x1ad4   :  { %v2543_v57 = vmul.f32 %v2533_v54, %v3957_v63 }
0x1ad6   :  { %v2537_v60 = vpop.f32.mrb[34].mxu0 }
0x1ad7   :  { %v2544_v61 = vmul.f32 %v2537_v60, %v3959_v0  ;;  %v2539_v4 = vpop.f32.mrb[35].mxu0 }
0x1ad8   :  { %v2545_v5 = vmul.f32 %v2539_v4, %v3961_v2 }
0x1ad9   :  { %v3536_v6 = vpack.c.bf16 %v2544_v61, %v2542_v52 }
0x1ada   :  { %v3534_v7 = vpack.c.bf16 %v2545_v5, %v2543_v57 }
0x1adc   :  { %3535 = vmatprep.subr.bf16.mxu0 %v3534_v7 }
0x1add   :  { %3537 = vmatpush1.bf16.msra.mxu0 %v3536_v6 }
0x1ade   :  { %3538 = vmatprep.subr.bf16.mxu0 %v3734_v29 }
0x1ae0   :  { %3194 = vmatmul.mubr.msk.f32.vlgmr.msra.gmra.mrb[36].mxu0 %vm4863_vm7, %v4013_v26 }
0x1ae1   :  { %3540 = vmatpush1.bf16.msk.msra.mxu0 %vm4808_vm3, %v3735_v32 }
0x1ae2   :  { %3541 = vmatprep.subr.bf16.mxu0 %v3734_v29 }
0x1ae5   :  { %3543 = vmatpush1.bf16.msk.msra.mxu0 %vm4809_vm15, %v3735_v32 }
0x1ae6   :  { %3544 = vmatprep.subr.bf16.mxu0 %v3734_v29 }
0x1ae9   :  { %3546 = vmatpush1.bf16.msk.msra.mxu0 %vm4810_vm1, %v3735_v32 }
0x1aea   :  { %3547 = vmatprep.subr.bf16.mxu0 %v3734_v29 }
0x1aed   :  { %3549 = vmatpush1.bf16.msk.msra.mxu0 %vm4811_vm11, %v3735_v32 }
0x1aee   :  { %3550 = vmatprep.subr.bf16.mxu0 %v3734_v29 }
0x1af1   :  { %3552 = vmatpush1.bf16.msk.msra.mxu0 %vm4069_vm4, %v3735_v32 }
0x1af2   :  { %3553 = vmatprep.subr.bf16.mxu0 %v3734_v29 }
0x1af5   :  { %3555 = vmatpush1.bf16.msk.msra.mxu0 %vm4084_vm10, %v3735_v32  ;;  %vm4864_vm10 = vcmask 261120  }
0x1af6   :  { %3556 = vmatprep.subr.bf16.mxu0 %v3734_v29  ;;  %vm4866_vm4 = vmmov %vm4864_vm10 }
0x1af9   :  { %3558 = vmatpush1.bf16.msk.msra.mxu0 %vm4093_vm5, %v3735_v32  ;;  %vm2875_vm5 = vcmask 238592  }
0x1afa   :  { %3559 = vmatprep.subr.bf16.mxu0 %v3734_v29 }
0x1afd   :  { %3561 = vmatpush1.bf16.msk.msra.mxu0 %vm4109_vm2, %v3735_v32 }
0x1afe   :  { %3562 = vmatprep.subr.bf16.mxu0 %v3734_v29 }
0x1b01   :  { %3564 = vmatpush1.bf16.msk.msra.mxu0 %vm4118_vm14, %v3735_v32 }
0x1b02   :  { %3565 = vmatprep.subr.bf16.mxu0 %v3734_v29 }
0x1b05   :  { %3567 = vmatpush1.bf16.msk.msra.mxu0 %vm4132_vm0, %v3735_v32  ;;  %v2774_v32 = vld [vmem:[%s4747_s2 + $0x28] sm:$0xff] }
0x1b06   :  { %3570 = vmatprep.subr.msk.bf16.mxu0 %vm3922_vm13, %v3919_v55  ;;  %v2769_v55 = vld [vmem:[%s4747_s2] sm:$0xff]  ;;  %vm4865_vm13 = vmmov %vm4862_vm8 }
0x1b07   :  { %v3575_v26 = vpack.c.bf16 %v2770_v56, %v2769_v55 }
0x1b09   :  { %3576 = vmatpush1.bf16.msra.mxu1 %v3575_v26 }
0x1b0a   :  { %3577 = vmatprep.subr.bf16.mxu1 %v3734_v29 }
0x1bb3   :  { %v4644_v62 = vpop.f32.mrb[36].mxu0 }
0x1bb4   :  { %v4646_v63 = vpop.f32.mrb[37].mxu0  ;;  %v2617_v2 = vmul.f32 %v4644_v62, %v4644_v62 }
0x1bb5   :  { %v2618_v0 = vmul.f32 %v4646_v63, %v4646_v63 }
0x1bb7   :  { %3215 = vmatprep.mubr.msk.f32.mxu0 %vm4864_vm10, %v2618_v0 }
0x1bb8   :  { %2687 = vmatmul.mubr.f32.vlgmr.msra.gmra.mrb[38].mxu0 %v2617_v2 }
0x1bb9   :  { %3573 = vmatpush1.bf16.msk.msra.mxu0 %vm4813_vm6, %v3931_v58  ;;  %2760 = vmatprep.mubr.f32.mxu0 %v3732_v1  ;;  %v3578_v58 = vpack.c.bf16 %v2772_v59, %v2771_v23  ;;  %v2773_v1 = vld [vmem:[%s4747_s2 + $0x20] sm:$0xff]  ;;  %s3736_s2 = smov [#allocation2]  }
0x1bba   :  { %v3581_v33 = vpack.c.bf16 %v2774_v32, %v2773_v1  ;;  %s2883_s17 = sshll.u32 %s3736_s2, 4  ;;  %s2884_s17 = int_to_ptr.vmem [resolvable:$true] %s2883_s17 }
0x1bbb   :  { %3579 = vmatpush1.bf16.msra.mxu1 %v3578_v58  ;;  %s3708_s18 = scalar_lea.vmem %s2884_s17, 32  ;;  %p3713_p1 = scmp.lt.s32.totalorder %s2884_s17, %s2884_s17 }
0x1bbc   :  { %3580 = vmatprep.subr.bf16.mxu1 %v3734_v29  ;;  %p3709_p0 = scmp.ne.s32.totalorder %s2884_s17, %s3708_s18  ;;  %p3714_p2 = scmp.lt.s32.totalorder %s3708_s18, %s3708_s18 }
0x1bbe   :  { %p3715_p3 = por %p3714_p2, %p3713_p1 }
0x1bbf   :  { %3582 = vmatpush1.bf16.msra.mxu1 %v3581_v33 }
0x1bc0   :  { %3583 = vmatprep.subr.bf16.mxu1 %v3734_v29  ;;  %p3716_p4 = pnand %p3715_p3, %p3709_p0 }
0x1bc3   :  { %3585 = vmatpush1.bf16.msra.mxu1 %v3584_v42 }
0x1bc4   :  { %3586 = vmatprep.subr.bf16.mxu1 %v3734_v29 }
0x1bc7   :  { %3588 = vmatpush1.bf16.msra.mxu1 %v3587_v49 }
0x1bc8   :  { %3589 = vmatprep.subr.bf16.mxu1 %v3734_v29 }
0x1bcb   :  { %3591 = vmatpush1.bf16.msra.mxu1 %v3590_v8 }
0x1bcc   :  { %3592 = vmatprep.subr.bf16.mxu1 %v3734_v29 }
0x1bcf   :  { %3594 = vmatpush1.bf16.msra.mxu1 %v3593_v24 }
0x1bd0   :  { %3595 = vmatprep.subr.bf16.mxu1 %v3734_v29 }
0x1bd3   :  { %3597 = vmatpush1.bf16.msra.mxu1 %v3596_v12 }
0x1bd4   :  { %3598 = vmatprep.subr.bf16.mxu1 %v3734_v29 }
0x1bd7   :  { %3600 = vmatpush1.bf16.msra.mxu1 %v3599_v30 }
0x1bd8   :  { %3601 = vmatprep.subr.bf16.mxu1 %v3734_v29 }
0x1bdb   :  { %3603 = vmatpush1.bf16.msra.mxu1 %v3602_v20 }
0x1c8b   :  { %v2688_v3 = vpop.f32.mrb[38].mxu0 }
0x1c8c   :  { %v2689_v15 = vadd.f32 1e-07, %v2688_v3  ;;  %v2690_v16 = vpop.f32.mrb[39].mxu0 }
0x1c8e   :  { %3702 = vrsqrt.f32 %v2689_v15 }
0x1c98   :  { %v3703_v17 = vpop.eup %3702 }
0x1c99   :  { %3220 = vmatmul.mubr.msk.f32.vlgmr.msra.gmra.mrb[40].mxu0 %vm4865_vm13, %v3703_v17 }
0x1d6c   :  { %v2762_v21 = vpop.f32.mrb[40].mxu0 }
0x1d6d   :  { %v2767_v29 = vmul.f32 %v2762_v21, %v4644_v62  ;;  %v2764_v22 = vpop.f32.mrb[41].mxu0 }
0x1d6e   :  { %v2768_v25 = vmul.f32 %v2764_v22, %v4646_v63 }
0x1d70   :  { %3222 = vmatprep.mubr.msk.f32.mxu1 %vm4866_vm4, %v2768_v25 }
0x1d71   :  { %2864 = vmatmul.mubr.f32.vlgmr.msra.gmra.mrb[44].mxu1 %v2767_v29 }
0x1e44   :  { %v2865_v31 = vpop.f32.mrb[44].mxu1 }
0x1e45   :  { %v2866_v34 = vadd.f32 %v3221_v28, %v2865_v31  ;;  %v2867_v35 = vpop.f32.mrb[45].mxu1 }
0x1e47   :  { %v3223_v37 = vmul.f32 -1.442695, %v2866_v34 }
0x1e49   :  { %3704 = vpow2.f32 %v3223_v37 }
0x1e53   :  { %v3705_v39 = vpop.eup %3704 }
0x1e54   :  { %v2872_v40 = vadd.f32 1.0, %v3705_v39 }
0x1e56   :  { %3706 = vrcp.f32 %v2872_v40 }
0x1e60   :  { %v3707_v41 = vpop.eup %3706 }
0x1e61   :  { %2876 = vst.msk [vmem:[#allocation2] sm:$0x3] %vm2875_vm5, %v3707_v41 }
0x1e62   :  { %3719 = shalt.err (!%p3716_p4)
}
0x1e63   :  { %s3720_s20 = scalar_lea.hbm %s4749_s4, 32 }
0x1e64   :  { %p3721_p5 = scmp.ne.s32.totalorder %s4749_s4, %s3720_s20  ;;  %p3724_p6 = scmp.lt.u32.totalorder %s3720_s20, %s4749_s4 }
0x1e66   :  { %p3726_p7 = pnand %p3724_p6, %p3721_p5 }
0x1e68   :  { %3729 = shalt.err (!%p3726_p7)
}
0x1e69   :  { %2886 = dma.vmem_to_hbm [thread:$0]  %s2884_s17, 32, %s4749_s4, [#allocation3]  }
0x1e6a   :  { %3730 = dma.done.wait [#allocation3], 32  }
0x1e6b   :  { %3731 = vsyncadd [#allocation3], 4294967264 }
0x1e6c   :  { %2890 = vsyncpa [#allocation3], 1 }

</bundles_post_ra>
